<compile_context>
chip_gen: v7x
topology: tpu7x:2x2x1
jax: 0.10.0
libtpu: 0.0.40
codegen_flags: <defaults>
</compile_context>

<pallas_src>
import functools

import jax
import jax.numpy as jnp
from jax import lax
from jax.experimental import pallas as pl
from jax.experimental.pallas import tpu as pltpu


# ----------------------------------------------------------------------------
# Pallas kernel: KKT stationarity residual + Newton-style update (z-part of y)
# ----------------------------------------------------------------------------
def kkt_update_kernel(coeff_ref, z_ref, lam_ref, nu_ref, a_ref, c_ref, o_ref,
                      *, a_shared, c_shared):
    """out = coeff + (1 - 2e-5) * z - A^T lam - C^T nu   (row-wise over batch).

    Blocks (natural layout, batch tiled on the leading grid axis):
      coeff / z / out : (BT, n)
      shared A / C    : (m, n) / (p, n)        -> VMEM-resident, MXU matmul
      per-batch A / C : (BT, m, n) / (BT, p, n)-> looped VPU accumulation
      lam / nu        : (BT, m) / (BT, p) when the matrix is shared,
                        (BT, m, 1) / (BT, p, 1) when per-batch (lane-broadcast)
    """
    acc = (coeff_ref[...].astype(jnp.float32)
           + (1.0 - 2.0e-5) * z_ref[...].astype(jnp.float32))

    if a_shared:
        # Batch-shared A stays in VMEM across all grid steps (DMA'd once):
        # one small MXU matmul (BT, m) @ (m, n); no per-step A DMA at all.
        acc = acc - jnp.dot(lam_ref[...], a_ref[...],
                            preferred_element_type=jnp.float32)
    else:
        # Per-batch A: accumulate over the constraint (sublane) axis one row
        # at a time instead of materializing the (BT, m, n) broadcast product,
        # so live vreg/VMEM pressure stays bounded at large batch tiles.
        # TODO(synk): for very large m*n, add a second ("arbitrary") grid axis
        # over the constraint dim with a pl.when-initialized VMEM accumulator.
        for k in range(a_ref.shape[1]):
            acc = acc - a_ref[:, k, :] * lam_ref[:, k, :]

    if c_shared:
        acc = acc - jnp.dot(nu_ref[...], c_ref[...],
                            preferred_element_type=jnp.float32)
    else:
        for k in range(c_ref.shape[1]):
            acc = acc - c_ref[:, k, :] * nu_ref[:, k, :]

    o_ref[...] = acc.astype(o_ref.dtype)


# ----------------------------------------------------------------------------
# Tile / VMEM planning (per chip generation)
# ----------------------------------------------------------------------------
def _rup(x, k):
    return ((x + k - 1) // k) * k


def _vmem_block_bytes(shape, itemsize=4):
    """Conservative VMEM footprint of one pipeline buffer (last two dims are
    padded to the (8, 128) tile)."""
    shape = tuple(int(s) for s in shape)
    if len(shape) == 1:
        lead, sub, lane = 1, 1, shape[0]
    else:
        lead = 1
        for s in shape[:-2]:
            lead *= s
        sub, lane = shape[-2], shape[-1]
    return lead * _rup(sub, 8) * _rup(lane, 128) * itemsize


def _chip_info():
    """(vmem_capacity_bytes, has_two_tensorcores) with conservative fallbacks."""
    kind = ""
    try:
        kind = jax.devices()[0].device_kind.lower()
    except Exception:
        pass
    vmem_cap = None
    try:
        vmem_cap = int(pltpu.get_tpu_info().vmem_capacity_bytes)
    except Exception:
        pass
    if not vmem_cap or vmem_cap <= 0:
        # v7x has 64 MiB / TensorCore; v5e/v6e have 128 MiB.
        vmem_cap = 64 * 1024 * 1024 if "v7" in kind else 128 * 1024 * 1024
    two_tc = ("v7" in kind) or vmem_cap <= 64 * 1024 * 1024
    return vmem_cap, two_tc


def _pick_batch_tile(B, n, m, p, a_shared, c_shared, vmem_cap, two_tc):
    """Largest batch tile (multiple of 8, or the full batch) that divides B and
    keeps the double-buffered working set under a per-generation VMEM budget.
    Returns (batch_tile, vmem_limit_bytes)."""
    # Review targets: ~48-64 MiB of double-buffered blocks on v5e/v6e
    # (128 MiB physical), ~24-32 MiB on v7x (64 MiB per TensorCore).
    budget = min(vmem_cap // 2, (28 if two_tc else 56) * 1024 * 1024)

    def footprint(bt):
        blocks = [(bt, n)] * 3                                   # coeff, z, out
        blocks.append((bt, m) if a_shared else (bt, m, 1))       # lam
        blocks.append((bt, p) if c_shared else (bt, p, 1))       # nu
        blocks.append((m, n) if a_shared else (bt, m, n))        # A
        blocks.append((p, n) if c_shared else (bt, p, n))        # C
        return 2 * sum(_vmem_block_bytes(s) for s in blocks)     # 2x: dbl-buffer

    cands = sorted({bt for bt in range(8, B, 8) if B % bt == 0} | {B})
    fitting = [bt for bt in cands if footprint(bt) <= budget]
    if fitting:
        if two_tc:
            # v7x (2 TensorCores): keep >=2 parallel grid steps so both cores
            # get work; on 1-TC v5e/v6e just take the single largest tile.
            multi = [bt for bt in fitting if B // bt >= 2]
            bt = max(multi) if multi else max(fitting)
        else:
            bt = max(fitting)
    else:
        # Nothing fits the budget: take the smallest candidate and raise the
        # scoped-VMEM limit to cover it (capped below physical VMEM).
        # TODO(synk): for huge m*n split the constraint axis onto a second
        # grid dimension instead of relying on a bigger scoped limit.
        bt = min(cands)

    vmem_limit = int(min(0.9 * vmem_cap,
                         max(32 * 1024 * 1024, 1.5 * footprint(bt))))
    return bt, vmem_limit


# ----------------------------------------------------------------------------
# Pallas launch wrapper
# ----------------------------------------------------------------------------
def kkt_newton_step(coeff, A, C, z, lam, nu):
    """z-part of y = vec(z,lam,nu) - vec(kkt(...)), as a Pallas TPU kernel.

    A and C may be 2D (batch-shared, hoisted to VMEM-resident blocks) or 3D
    (per-batch, streamed over the batch grid axis).  No HBM relayouts are done
    here: every array keeps its natural layout.
    """
    B, n = coeff.shape
    a_shared = (A.ndim == 2)
    c_shared = (C.ndim == 2)
    m = A.shape[0] if a_shared else A.shape[1]
    p = C.shape[0] if c_shared else C.shape[1]

    # Multipliers: (B, m)/(B, p) for the shared-matrix MXU path; trailing unit
    # lane dim for the per-batch lane-broadcast path (free metadata reshape).
    lam_in = lam if a_shared else lam.reshape(B, m, 1)
    nu_in = nu if c_shared else nu.reshape(B, p, 1)

    vmem_cap, two_tc = _chip_info()
    bt, vmem_limit = _pick_batch_tile(B, n, m, p, a_shared, c_shared,
                                      vmem_cap, two_tc)
    grid = (B // bt,)

    in_specs = [
        pl.BlockSpec((bt, n), lambda i: (i, 0)),                      # coeff
        pl.BlockSpec((bt, n), lambda i: (i, 0)),                      # z
    ]
    in_specs.append(pl.BlockSpec((bt, m), lambda i: (i, 0)) if a_shared
                    else pl.BlockSpec((bt, m, 1), lambda i: (i, 0, 0)))   # lam
    in_specs.append(pl.BlockSpec((bt, p), lambda i: (i, 0)) if c_shared
                    else pl.BlockSpec((bt, p, 1), lambda i: (i, 0, 0)))   # nu
    in_specs.append(pl.BlockSpec((m, n), lambda i: (0, 0)) if a_shared       # A
                    else pl.BlockSpec((bt, m, n), lambda i: (i, 0, 0)))
    in_specs.append(pl.BlockSpec((p, n), lambda i: (0, 0)) if c_shared       # C
                    else pl.BlockSpec((bt, p, n), lambda i: (i, 0, 0)))

    kernel = functools.partial(kkt_update_kernel,
                               a_shared=a_shared, c_shared=c_shared)

    return pl.pallas_call(
        kernel,
        out_shape=jax.ShapeDtypeStruct((B, n), coeff.dtype),
        grid_spec=pltpu.PrefetchScalarGridSpec(
            num_scalar_prefetch=0,
            grid=grid,
            in_specs=in_specs,
            out_specs=pl.BlockSpec((bt, n), lambda i: (i, 0)),
        ),
        compiler_params=pltpu.CompilerParams(
            dimension_semantics=("parallel",),
            vmem_limit_bytes=vmem_limit,
        ),
    )(coeff, z, lam_in, nu_in, A, C)


# ----------------------------------------------------------------------------
# Plain-JAX glue: small primal-dual interior-point QP solver (stands in for
# the cvxpy `problem.solve()` call of the original module).
# ----------------------------------------------------------------------------
# TODO(synk): cvxpy's exact solver has no Pallas equivalent; replaced by this
# in-script infeasible-start primal-dual interior-point method (plain JAX glue).
def solve_qp(coeff, A, b, C, d, iters=60, sigma=0.1):
    n = coeff.shape[0]
    m = A.shape[0]
    p = C.shape[0]
    dt = coeff.dtype

    Q = (2.0e-5) * jnp.eye(n, dtype=dt)
    q = -coeff

    x0 = jnp.zeros((n,), dt)
    lam0 = jnp.ones((m,), dt)
    nu0 = jnp.zeros((p,), dt)
    s0 = jnp.ones((m,), dt)

    def body(_, state):
        x, lam, nu, s = state
        mu = sigma * jnp.dot(lam, s) / m

        r_dual = Q @ x + q + A.T @ lam + C.T @ nu
        r_cent = lam * s - mu
        r_pi = A @ x + s - b
        r_pe = C @ x - d

        K = jnp.block([
            [Q, A.T, C.T, jnp.zeros((n, m), dt)],
            [jnp.zeros((m, n), dt), jnp.diag(s), jnp.zeros((m, p), dt), jnp.diag(lam)],
            [A, jnp.zeros((m, m), dt), jnp.zeros((m, p), dt), jnp.eye(m, dtype=dt)],
            [C, jnp.zeros((p, m), dt), jnp.zeros((p, p), dt), jnp.zeros((p, m), dt)],
        ])
        rhs = -jnp.concatenate([r_dual, r_cent, r_pi, r_pe])
        delta = jnp.linalg.solve(K, rhs)

        dx = delta[:n]
        dlam = delta[n:n + m]
        dnu = delta[n + m:n + m + p]
        ds = delta[n + m + p:]

        def maxstep(v, dv):
            ratio = jnp.where(dv < 0, -v / dv, jnp.inf)
            return jnp.minimum(1.0, 0.99 * jnp.min(ratio))

        alpha = jnp.minimum(maxstep(lam, dlam), maxstep(s, ds))
        return (x + alpha * dx, lam + alpha * dlam, nu + alpha * dnu, s + alpha * ds)

    x, lam, nu, _ = lax.fori_loop(0, iters, body, (x0, lam0, nu0, s0))
    return x, lam, nu


# ----------------------------------------------------------------------------
# OptLayer.forward equivalent
# ----------------------------------------------------------------------------
@jax.jit
def opt_layer_forward(coeff, A, b, C, d):
    """A and C may be 2D (shared across the batch) or 3D (per-batch)."""
    a_axis = None if A.ndim == 2 else 0
    c_axis = None if C.ndim == 2 else 0
    # Per-batch QP solve (glue), then the Pallas kernel for the KKT update.
    z, lam, nu = jax.vmap(solve_qp, in_axes=(0, a_axis, 0, c_axis, 0))(
        coeff, A, b, C, d)
    # TODO(synk): per-batch KKT Jacobian / torch.inverse / register_hook are
    # backward-pass machinery only and are not implemented here.
    return kkt_newton_step(coeff, A, C, z, lam, nu)


if __name__ == "__main__":
    key = jax.random.PRNGKey(0)
    B, n, p = 2, 8, 4
    m = 2 * n  # box constraints:  x <= x0 + 1  and  -x <= 1 - x0

    k1, k2, k3 = jax.random.split(key, 3)
    x_feas = jax.random.normal(k1, (B, n), dtype=jnp.float32)
    coeff = jax.random.normal(k2, (B, n), dtype=jnp.float32)
    C = jax.random.normal(k3, (B, p, n), dtype=jnp.float32)          # per-batch
    d = jnp.einsum("bpn,bn->bp", C, x_feas)

    eye = jnp.eye(n, dtype=jnp.float32)
    A_shared = jnp.concatenate([eye, -eye], axis=0)                  # (m, n), shared
    b_vec = jnp.concatenate([x_feas + 1.0, 1.0 - x_feas], axis=-1)

    out = opt_layer_forward(coeff, A_shared, b_vec, C, d)
    out = jax.block_until_ready(out)
    assert out.shape == (B, n) and out.dtype == jnp.float32

    # Cross-check the Pallas kernel against the same formula in plain JAX.
    z, lam, nu = jax.jit(jax.vmap(solve_qp, in_axes=(0, None, 0, 0, 0)))(
        coeff, A_shared, b_vec, C, d)
    ref = (coeff + (1.0 - 2.0e-5) * z
           - lam @ A_shared
           - jnp.einsum("bp,bpn->bn", nu, C))
    assert jnp.allclose(out, ref, rtol=1e-4, atol=1e-4), (out, ref)

    # Also exercise the per-batch (3D) constraint-matrix path of the kernel.
    A_batched = jnp.broadcast_to(A_shared, (B, m, n))
    out_b = jax.block_until_ready(
        jax.jit(kkt_newton_step)(coeff, A_batched, C, z, lam, nu))
    assert jnp.allclose(out_b, ref, rtol=1e-4, atol=1e-4), (out_b, ref)

    print("KERNEL_OK")
</pallas_src>

<mosaic_0001>
module attributes {stable_mosaic.version = 11 : i64} {
  func.func @kkt_update_kernel(%arg0: i32, %arg1: memref<2x8xf32, #tpu.memory_space<vmem>>, %arg2: memref<2x8xf32, #tpu.memory_space<vmem>>, %arg3: memref<2x16xf32, #tpu.memory_space<vmem>>, %arg4: memref<2x4x1xf32, #tpu.memory_space<vmem>>, %arg5: memref<16x8xf32, #tpu.memory_space<vmem>>, %arg6: memref<2x4x8xf32, #tpu.memory_space<vmem>>, %arg7: memref<2x8xf32, #tpu.memory_space<vmem>>) attributes {dimension_semantics = [#tpu.dimension_semantics<parallel>], iteration_bounds = array<i64: 1>, scalar_prefetch = 0 : i64, scratch_operands = 0 : i64, tpu.core_type = #tpu.core_type<tc>, window_params = [{transform_indices = @transform_0, window_bounds = array<i64: 2, 8>}, {transform_indices = @transform_1, window_bounds = array<i64: 2, 8>}, {transform_indices = @transform_2, window_bounds = array<i64: 2, 16>}, {transform_indices = @transform_3, window_bounds = array<i64: 2, 4, 1>}, {pipeline_mode = #tpu.pipeline_mode<synchronous>, transform_indices = @transform_4, window_bounds = array<i64: 16, 8>}, {transform_indices = @transform_5, window_bounds = array<i64: 2, 4, 8>}, {transform_indices = @transform_6, window_bounds = array<i64: 2, 8>}]} {
    %c0 = arith.constant 0 : index
    %c0_0 = arith.constant 0 : index
    %0 = vector.load %arg1[%c0, %c0_0] : memref<2x8xf32, #tpu.memory_space<vmem>>, vector<2x8xf32>
    %c0_1 = arith.constant 0 : index
    %c0_2 = arith.constant 0 : index
    %1 = vector.load %arg2[%c0_1, %c0_2] : memref<2x8xf32, #tpu.memory_space<vmem>>, vector<2x8xf32>
    %cst = arith.constant 0.999979972 : f32
    %2 = vector.broadcast %cst : f32 to vector<2x8xf32>
    %3 = arith.mulf %2, %1 : vector<2x8xf32>
    %4 = arith.addf %0, %3 : vector<2x8xf32>
    %c0_3 = arith.constant 0 : index
    %c0_4 = arith.constant 0 : index
    %5 = vector.load %arg3[%c0_3, %c0_4] : memref<2x16xf32, #tpu.memory_space<vmem>>, vector<2x16xf32>
    %c0_5 = arith.constant 0 : index
    %c0_6 = arith.constant 0 : index
    %6 = vector.load %arg5[%c0_5, %c0_6] : memref<16x8xf32, #tpu.memory_space<vmem>>, vector<16x8xf32>
    %cst_7 = arith.constant dense<0.000000e+00> : vector<2x8xf32>
    %7 = tpu.matmul %5, %6, %cst_7 {dimension_numbers = #tpu.dot_dimension_numbers<[1], [0], [0], [1], [0, 0, 1, 1], [], []>} : vector<2x16xf32>, vector<16x8xf32>, vector<2x8xf32> -> vector<2x8xf32>
    %8 = arith.subf %4, %7 : vector<2x8xf32>
    %c0_8 = arith.constant 0 : index
    %c0_9 = arith.constant 0 : index
    %c0_10 = arith.constant 0 : index
    %9 = vector.load %arg6[%c0_8, %c0_9, %c0_10] : memref<2x4x8xf32, #tpu.memory_space<vmem>>, vector<2x1x8xf32>
    %10 = vector.shape_cast %9 : vector<2x1x8xf32> to vector<2x8xf32>
    %c0_11 = arith.constant 0 : index
    %c0_12 = arith.constant 0 : index
    %c0_13 = arith.constant 0 : index
    %11 = vector.load %arg4[%c0_11, %c0_12, %c0_13] : memref<2x4x1xf32, #tpu.memory_space<vmem>>, vector<2x1x1xf32>
    %12 = vector.shape_cast %11 : vector<2x1x1xf32> to vector<2x1xf32>
    %13 = vector.broadcast %12 : vector<2x1xf32> to vector<2x8xf32>
    %14 = arith.mulf %10, %13 : vector<2x8xf32>
    %15 = arith.subf %8, %14 : vector<2x8xf32>
    %c0_14 = arith.constant 0 : index
    %c1 = arith.constant 1 : index
    %c0_15 = arith.constant 0 : index
    %16 = vector.load %arg6[%c0_14, %c1, %c0_15] : memref<2x4x8xf32, #tpu.memory_space<vmem>>, vector<2x1x8xf32>
    %17 = vector.shape_cast %16 : vector<2x1x8xf32> to vector<2x8xf32>
    %c0_16 = arith.constant 0 : index
    %c1_17 = arith.constant 1 : index
    %c0_18 = arith.constant 0 : index
    %18 = vector.load %arg4[%c0_16, %c1_17, %c0_18] : memref<2x4x1xf32, #tpu.memory_space<vmem>>, vector<2x1x1xf32>
    %19 = vector.shape_cast %18 : vector<2x1x1xf32> to vector<2x1xf32>
    %20 = vector.broadcast %19 : vector<2x1xf32> to vector<2x8xf32>
    %21 = arith.mulf %17, %20 : vector<2x8xf32>
    %22 = arith.subf %15, %21 : vector<2x8xf32>
    %c0_19 = arith.constant 0 : index
    %c2 = arith.constant 2 : index
    %c0_20 = arith.constant 0 : index
    %23 = vector.load %arg6[%c0_19, %c2, %c0_20] : memref<2x4x8xf32, #tpu.memory_space<vmem>>, vector<2x1x8xf32>
    %24 = vector.shape_cast %23 : vector<2x1x8xf32> to vector<2x8xf32>
    %c0_21 = arith.constant 0 : index
    %c2_22 = arith.constant 2 : index
    %c0_23 = arith.constant 0 : index
    %25 = vector.load %arg4[%c0_21, %c2_22, %c0_23] : memref<2x4x1xf32, #tpu.memory_space<vmem>>, vector<2x1x1xf32>
    %26 = vector.shape_cast %25 : vector<2x1x1xf32> to vector<2x1xf32>
    %27 = vector.broadcast %26 : vector<2x1xf32> to vector<2x8xf32>
    %28 = arith.mulf %24, %27 : vector<2x8xf32>
    %29 = arith.subf %22, %28 : vector<2x8xf32>
    %c0_24 = arith.constant 0 : index
    %c3 = arith.constant 3 : index
    %c0_25 = arith.constant 0 : index
    %30 = vector.load %arg6[%c0_24, %c3, %c0_25] : memref<2x4x8xf32, #tpu.memory_space<vmem>>, vector<2x1x8xf32>
    %31 = vector.shape_cast %30 : vector<2x1x8xf32> to vector<2x8xf32>
    %c0_26 = arith.constant 0 : index
    %c3_27 = arith.constant 3 : index
    %c0_28 = arith.constant 0 : index
    %32 = vector.load %arg4[%c0_26, %c3_27, %c0_28] : memref<2x4x1xf32, #tpu.memory_space<vmem>>, vector<2x1x1xf32>
    %33 = vector.shape_cast %32 : vector<2x1x1xf32> to vector<2x1xf32>
    %34 = vector.broadcast %33 : vector<2x1xf32> to vector<2x8xf32>
    %35 = arith.mulf %31, %34 : vector<2x8xf32>
    %36 = arith.subf %29, %35 : vector<2x8xf32>
    %c0_29 = arith.constant 0 : index
    %c0_30 = arith.constant 0 : index
    %37 = vector.load %arg7[%c0_29, %c0_30] : memref<2x8xf32, #tpu.memory_space<vmem>>, vector<2x8xf32>
    tpu.vector_store %arg7[%c0_29, %c0_30], %36 {strides = array<i32>} : memref<2x8xf32, #tpu.memory_space<vmem>>, vector<2x8xf32>,
    return
  }
  func.func @transform_0(%arg0: i32) -> (i32, i32) {
    %c0_i32 = arith.constant 0 : i32
    %c0_i32_0 = arith.constant 0 : i32
    return %arg0, %c0_i32 : i32, i32
  }
  func.func @transform_1(%arg0: i32) -> (i32, i32) {
    %c0_i32 = arith.constant 0 : i32
    %c0_i32_0 = arith.constant 0 : i32
    return %arg0, %c0_i32 : i32, i32
  }
  func.func @transform_2(%arg0: i32) -> (i32, i32) {
    %c0_i32 = arith.constant 0 : i32
    %c0_i32_0 = arith.constant 0 : i32
    return %arg0, %c0_i32 : i32, i32
  }
  func.func @transform_3(%arg0: i32) -> (i32, i32, i32) {
    %c0_i32 = arith.constant 0 : i32
    %c0_i32_0 = arith.constant 0 : i32
    %c0_i32_1 = arith.constant 0 : i32
    return %arg0, %c0_i32, %c0_i32_0 : i32, i32, i32
  }
  func.func @transform_4(%arg0: i32) -> (i32, i32) {
    %c0_i32 = arith.constant 0 : i32
    %c0_i32_0 = arith.constant 0 : i32
    %c0_i32_1 = arith.constant 0 : i32
    return %c0_i32, %c0_i32_0 : i32, i32
  }
  func.func @transform_5(%arg0: i32) -> (i32, i32, i32) {
    %c0_i32 = arith.constant 0 : i32
    %c0_i32_0 = arith.constant 0 : i32
    %c0_i32_1 = arith.constant 0 : i32
    return %arg0, %c0_i32, %c0_i32_0 : i32, i32, i32
  }
  func.func @transform_6(%arg0: i32) -> (i32, i32) {
    %c0_i32 = arith.constant 0 : i32
    %c0_i32_0 = arith.constant 0 : i32
    return %arg0, %c0_i32 : i32, i32
  }
}

</mosaic_0001>

<bundles_post_ra>
// kernel: custom-call.27
= control target key start
LH: loop header
LB: loop body
LE: loop exit
PB: predicated region body
PF: predicated region fallthrough
CT: control target
= control target key end

     0   :  { %s6_s0 = inlined_call_operand.vmem [shape: f32[2,8], index: 0, kind: output, shape index: {}]  }

// kernel: custom-call.28
= control target key start
LH: loop header
LB: loop body
LE: loop exit
PB: predicated region body
PF: predicated region fallthrough
CT: control target
= control target key end

     0   :  { %s6_s0 = inlined_call_operand.vmem [shape: f32[2,16], index: 0, kind: output, shape index: {}]  }

// kernel: custom-call.29
= control target key start
LH: loop header
LB: loop body
LE: loop exit
PB: predicated region body
PF: predicated region fallthrough
CT: control target
= control target key end

     0   :  { %s6_s0 = inlined_call_operand.vmem [shape: f32[2,4], index: 0, kind: output, shape index: {}]  }

// kernel: neg.7
= control target key start
LH: loop header
LB: loop body
LE: loop exit
PB: predicated region body
PF: predicated region fallthrough
CT: control target
= control target key end

     0   :  { %s24_s0 = inlined_call_operand.vmem [shape: f32[2,8], index: 0, kind: input, shape index: {}]   ;;  %s25_s1 = inlined_call_operand.vmem [shape: f32[2,8], index: 1, kind: output, shape index: {}]  }
   0x1   :  { %v2_v0 = vld [vmem:[%s24_s0] sm:$0x3] }
   0x2   :  { %v5_v1 = vxor.u32 2147483648, %v2_v0 }
   0x4   :  { %7 = vst [vmem:[%s25_s1] sm:$0x3] %v5_v1 }

// kernel: custom-call.43
= control target key start
LH: loop header
LB: loop body
LE: loop exit
PB: predicated region body
PF: predicated region fallthrough
CT: control target
= control target key end

     0   :  { %5 = vsyncpa [#allocation4], 0  ;;  %s1236_s0 = inlined_call_operand.vmem [shape: f32[2,44,44], index: 0, kind: input, shape index: {}]   ;;  %s1237_s1 = inlined_call_operand.vmem [shape: f32[2,44,44], index: 1, kind: output, shape index: {0}]   ;;  %s1238_s2 = inlined_call_operand.hbm [shape: s32[2,44], index: 2, kind: output, shape index: {1}]   ;;  %s1239_s3 = inlined_call_operand.vmem [shape: s32[2,44], index: 3, kind: output, shape index: {2}]  }
   0x1   :  { %7 = vsyncpa [#allocation4 + $0x1], 0  ;;  %s925_s12 = smov 0   ;;  %s927_s13 = smov 0  }
   0x2   :  { %s929_s14 = smov 0   ;;  %s931_s15 = smov 0  }
   0x3 LB: > { %s946_s16 = sadd.s32 4294967295, %s893_s15   ;;  %s709_s17 = sadd.s32 4294967294, %s893_s15   ;;  %s893_s15 = sphi %s931_s15, %s1247_s15   ;;  %s889_s14 = sphi %s929_s14, %s1246_s14   ;;  %s885_s13 = sphi %s927_s13, %s1245_s13   ;;  %s881_s12 = sphi %s925_s12, %s1244_s12  }
   0x4   : > { %s950_s18 = sadd.s32 1, %s893_s15   ;;  %s17_s19 = sshrl.u32 %s893_s15, 3 }
   0x5   : > { %s18_s20 = sshrl.u32 %s950_s18, 3  ;;  %s22_s21 = sadd.s32 1, %s889_s14 }
   0x6   : > { %s19_s22 = ssub.s32 %s17_s19, %s18_s20  ;;  %p32_p0 = scmp.ne.s32.totalorder %s889_s14, %s885_s13 }
   0x7   : > { %p20_p1 = scmp.eq.s32.totalorder %s19_s22, 0  ;;  %p33_p2 = scmp.eq.s32.totalorder %s946_s16, 1 }
   0x8   : > { %p38_p3 = scmp.ne.s32.totalorder %s885_s13, %s881_s12  ;;  %p39_p4 = scmp.eq.s32.totalorder %s709_s17, 1 }
   0x9   : > { %s961_s23 = scalar_select %p20_p1, %s889_s14, %s22_s21  }
   0xa   : > { %p963_p5 = por %p33_p2, %p32_p0  ;;  %p967_p6 = por %p39_p4, %p38_p3 }
   0xb   : > { %p711_p7 = scmp.ge.s32.totalorder %s893_s15, 2 }
   0xc   : > { %s85_s26 = sand.u32 (!%p711_p7), 1, %s893_s15   ;;  %s750_s27 = smul.u32 (!%p711_p7), 48, %s893_s15 }
   0xd   : > { %83 = sbr.rel (%p711_p7) target bundleno = 20 (0x14), region = 16 }
   0xe   : > { %s749_s28 = smul.u32 (!%p711_p7), 48, %s85_s26  ;;  %s89_s4 = scalar_lea.vmem (!%p711_p7), %s1236_s0, %s750_s27 }
   0xf   : > { %v102_v0 = vld [vmem:[%s89_s4] sm:$0xff] (!%p711_p7)  ;;  %v104_v1 = vld [vmem:[%s89_s4 + $0x8] sm:$0xff] (!%p711_p7)  ;;  %v106_v2 = vld [vmem:[%s89_s4 + $0x10] sm:$0xff] (!%p711_p7) }
  0x10   : > { %s87_s5 = scalar_lea.vmem (!%p711_p7), [#allocation0], %s749_s28  ;;  %v108_v3 = vld [vmem:[%s89_s4 + $0x18] sm:$0xff] (!%p711_p7)  ;;  %v110_v4 = vld [vmem:[%s89_s4 + $0x20] sm:$0xff] (!%p711_p7)  ;;  %v112_v5 = vld [vmem:[%s89_s4 + $0x28] sm:$0xff] (!%p711_p7) }
  0x11   : > { %103 = vst [vmem:[%s87_s5] sm:$0xff] (!%p711_p7), %v102_v0  ;;  %105 = vst [vmem:[%s87_s5 + $0x8] sm:$0xff] (!%p711_p7), %v104_v1 }
  0x12   : > { %107 = vst [vmem:[%s87_s5 + $0x10] sm:$0xff] (!%p711_p7), %v106_v2  ;;  %109 = vst [vmem:[%s87_s5 + $0x18] sm:$0xff] (!%p711_p7), %v108_v3 }
  0x13   : > { %111 = vst [vmem:[%s87_s5 + $0x20] sm:$0xff] (!%p711_p7), %v110_v4  ;;  %113 = vst [vmem:[%s87_s5 + $0x28] sm:$0xff] (!%p711_p7), %v112_v5 }
  0x14 PF: > { %p712_p8 = scmp.ge.s32.totalorder %s893_s15, 1  ;;  %p118_p9 = scmp.lt.s32.totalorder %s893_s15, 3 }
  0x16   : > { %p119_p10 = pnand %p712_p8, %p118_p9 }
  0x18   : > { %122 = sbr.rel (%p119_p10) target bundleno = 597 (0x255), region = 39 }
  0x1f   : > { %s125_s6 = sand.u32 1, %s946_s16   ;;  %s140_s7 = sand.u32 1, %s885_s13   ;;  %v178_v6 = vlaneseq  ;;  %v903_v14 = vmov 0  }
  0x20   : > { %s751_s8 = smul.u32 48, %s125_s6  ;;  %s985_s9 = sshll.u32 %s140_s7, 1 }
  0x21   : > { %v988_v7 = vshrl.u32 %v178_v6, 7  ;;  %s173_s11 = sand.u32 7, %s946_s16   ;;  %s142_s20 = scalar_lea.vmem [#allocation3], %s985_s9 }
  0x22   : > { %s127_s10 = scalar_lea.vmem [#allocation0], %s751_s8  ;;  %s991_s17 = scalar_lea.vmem [#allocation1], %s751_s8 }
  0x23   : > { %v151_v8 = vld [vmem:[%s127_s10] sm:$0xff]  ;;  %v715_v9 = vld [vmem:[%s127_s10 + $0x8] sm:$0xff]  ;;  %v717_v10 = vld [vmem:[%s127_s10 + $0x10] sm:$0xff]  ;;  %s999_s19 = scalar_lea.vmem [#allocation2], %s173_s11  ;;  %s148_s21 = scalar_lea.vmem [#allocation6], %s985_s9 }
  0x24   : > { %152 = vst [vmem:[%s991_s17] sm:$0xff] %v151_v8  ;;  %716 = vst [vmem:[%s991_s17 + $0x8] sm:$0xff] %v715_v9  ;;  %v719_v11 = vld [vmem:[%s127_s10 + $0x18] sm:$0xff]  ;;  %v721_v12 = vld [vmem:[%s127_s10 + $0x20] sm:$0xff]  ;;  %s1004_s22 = scalar_lea.vmem [#allocation5], %s173_s11  ;;  %s895_s26 = smov 0  }
  0x25   : > { %718 = vst [vmem:[%s991_s17 + $0x10] sm:$0xff] %v717_v10  ;;  %v723_v13 = vld [vmem:[%s127_s10 + $0x28] sm:$0xff]  ;;  %720 = vst [vmem:[%s991_s17 + $0x18] sm:$0xff] %v719_v11 }
  0x26   : > { %722 = vst [vmem:[%s991_s17 + $0x20] sm:$0xff] %v721_v12  ;;  %724 = vst [vmem:[%s991_s17 + $0x28] sm:$0xff] %v723_v13 }
  0x27   : > { %177 = vst [vmem:[%s999_s19] sm:$0x1] %v903_v14 }
  0x28 LB: >> { %s725_s27 = sshll.u32 %s897_s26, 3  ;;  %s186_s26 = sadd.s32 1, %s897_s26   ;;  %s897_s26 = sphi %s895_s26, %s186_s26  }
  0x29   : >> { %v190_v15 = vstv %s725_s27  ;;  %s188_s28 = scalar_lea.vmem [#allocation7], %s725_s27  ;;  %p183_p11 = scmp.ge.s32.totalorder %s186_s26, 6  }
  0x2a   : >> { %v191_v16 = vadd.s32 %v190_v15, %v988_v7  ;;  %s1007_s29 = smov (%p183_p11), 0  }
  0x2b   : > { %185 = sbr.rel (!%p183_p11) target bundleno = 40 (0x28), region = 207 }
  0x2c   : >> { %192 = vst [vmem:[%s188_s28] sm:$0xff] %v191_v16 }
  0x32 LB: >> { %v203_v17 = vld [vmem:[%s991_s17] sm:$0xff]  ;;  %v728_v18 = vld [vmem:[%s991_s17 + $0x8] sm:$0xff]  ;;  %v1015_v19 = vadd.s32 8, %v988_v7  ;;  %v1018_v21 = vstv %s901_s29  ;;  %v729_v23 = vld [vmem:[%s991_s17 + $0x10] sm:$0xff]  ;;  %v1024_v24 = vadd.s32 16, %v988_v7  ;;  %v1032_v29 = vadd.s32 24, %v988_v7  ;;  %s321_s4 = scalar_lea.vmem %s991_s17, %s901_s29 [#allocation1]  ;;  %s901_s29 = sphi %s1007_s29, %s198_s29  }
  0x33   : >> { %v204_v20 = vand.u32 2147483647, %v203_v17  ;;  %v216_v22 = vand.u32 2147483647, %v728_v18  ;;  %vm207_vm0 = vcmp.ge.s32.totalorder %v988_v7, %v1018_v21  ;;  %v228_v27 = vand.u32 2147483647, %v729_v23 }
  0x34   : >> { %vm219_vm3 = vcmp.ge.s32.totalorder %v1015_v19, %v1018_v21  ;;  %v730_v28 = vld [vmem:[%s991_s17 + $0x18] sm:$0xff]  ;;  %vm231_vm6 = vcmp.ge.s32.totalorder %v1024_v24, %v1018_v21  ;;  %v731_v33 = vld [vmem:[%s991_s17 + $0x20] sm:$0xff]  ;;  %v1039_v34 = vadd.s32 40, %v988_v7  ;;  %v1042_v35 = vadd.s32 32, %v988_v7  ;;  %v732_v39 = vld [vmem:[%s991_s17 + $0x28] sm:$0xff]  ;;  %s309_s30 = ssub.s32 128, %s901_s29 }
  0x35   : >> { %vm727_vm1 = vcmp.gt.f32.partialorder %v204_v20, -inf  ;;  %v240_v32 = vand.u32 2147483647, %v730_v28  ;;  %vm243_vm9 = vcmp.ge.s32.totalorder %v1032_v29, %v1018_v21  ;;  %v252_v38 = vand.u32 2147483647, %v731_v33  ;;  %s327_s6 = scalar_lea.vmem [#allocation7], %s901_s29 }
  0x36   : >> { %vm211_vm2 = vmand %vm207_vm0, %vm727_vm1  ;;  %vm267_vm11 = vcmp.ge.s32.totalorder %v1039_v34, %v1018_v21  ;;  %vm268_vm12 = vcmp.lt.s32.totalorder %v1039_v34, 44  ;;  %vm255_vm14 = vcmp.ge.s32.totalorder %v1042_v35, %v1018_v21  ;;  %v264_v42 = vand.u32 2147483647, %v732_v39  ;;  %v318_v15 = vld [vmem:[%s999_s19] ss:$0 sm:$0xff]  ;;  %s198_s29 = sadd.s32 1, %s901_s29  }
  0x37   : >> { %v212_v25 = vsel %vm211_vm2, %v988_v7, %v1018_v21  ;;  %v213_v26 = vsel %vm211_vm2, %v204_v20, -inf  ;;  %vm269_vm0 = vmand %vm267_vm11, %vm268_vm12  ;;  %v1058_v13 = vand.u32 127, %v178_v6  ;;  %v323_v16 = vld [vmem:[%s321_s4] ss:$0 sm:$0xff]  ;;  %p195_p12 = scmp.ge.s32.totalorder %s198_s29, 44  }
  0x38   : >> { %vm222_vm4 = vcmp.lt.f32.partialorder %v213_v26, %v216_v22  ;;  %v329_v17 = vld [vmem:[%s327_s6] ss:$0 sm:$0xff]  ;;  %s754_s11 = smul.u32 (%p195_p12), 48, %s946_s16  ;;  %s544_s26 = sshrl.u32 (%p195_p12), %s946_s16, 3 }
  0x39   : >> { %vm223_vm5 = vmand %vm219_vm3, %vm222_vm4  ;;  %vm1064_vm11 = vcmp.eq.s32.totalorder %v1058_v13, %v1018_v21  ;;  %s551_s27 = sshll.u32 (%p195_p12), %s142_s20, 4  ;;  %s1181_s27 = int_to_ptr.vmem [resolvable:$true] %s551_s27 }
  0x3a   : >> { %v224_v30 = vsel %vm223_vm5, %v1015_v19, %v212_v25  ;;  %v225_v31 = vsel %vm223_vm5, %v216_v22, %v213_v26 }
  0x3b   : >> { %vm234_vm7 = vcmp.lt.f32.partialorder %v225_v31, %v228_v27 }
  0x3c   : >> { %vm235_vm8 = vmand %vm231_vm6, %vm234_vm7 }
  0x3d   : >> { %v236_v36 = vsel %vm235_vm8, %v1024_v24, %v224_v30  ;;  %v237_v37 = vsel %vm235_vm8, %v228_v27, %v225_v31 }
  0x3e   : >> { %vm246_vm10 = vcmp.lt.f32.partialorder %v237_v37, %v240_v32 }
  0x3f   : >> { %vm247_vm13 = vmand %vm243_vm9, %vm246_vm10 }
  0x40   : >> { %v248_v40 = vsel %vm247_vm13, %v1032_v29, %v236_v36  ;;  %v249_v41 = vsel %vm247_vm13, %v240_v32, %v237_v37  ;;  %vm362_vm13 = vcmp.gt.s32.totalorder %v1015_v19, %v1018_v21 }
  0x41   : >> { %vm258_vm15 = vcmp.lt.f32.partialorder %v249_v41, %v252_v38 }
  0x42   : >> { %vm259_vm1 = vmand %vm255_vm14, %vm258_vm15  ;;  %vm347_vm14 = vcmp.gt.s32.totalorder %v988_v7, %v1018_v21  ;;  %vm377_vm15 = vcmp.gt.s32.totalorder %v1024_v24, %v1018_v21 }
  0x43   : >> { %v260_v43 = vsel %vm259_vm1, %v1042_v35, %v248_v40  ;;  %v261_v44 = vsel %vm259_vm1, %v252_v38, %v249_v41  ;;  %vm392_vm1 = vcmp.gt.s32.totalorder %v1032_v29, %v1018_v21 }
  0x44   : >> { %vm270_vm2 = vcmp.lt.f32.partialorder %v261_v44, %v264_v42 }
  0x45   : >> { %vm271_vm3 = vmand %vm269_vm0, %vm270_vm2  ;;  %vm407_vm2 = vcmp.gt.s32.totalorder %v1042_v35, %v1018_v21 }
  0x46   : >> { %v272_v45 = vsel %vm271_vm3, %v1039_v34, %v260_v43  ;;  %v273_v46 = vsel %vm271_vm3, %v264_v42, %v261_v44  ;;  %vm422_vm3 = vcmp.gt.s32.totalorder %v1039_v34, %v1018_v21 }
  0x47   : >> { %v274_v47 = vrot.slane %v273_v46, 1  ;;  %v275_v48 = vrot.slane %v272_v45, 1 }
  0x49   : >> { %vm276_vm4 = vcmp.ge.f32.partialorder %v274_v47, %v273_v46  ;;  %v279_v49 = vrot.slane %v274_v47, 1  ;;  %v280_v50 = vrot.slane %v275_v48, 1 }
  0x4a   : >> { %v277_v51 = vsel %vm276_vm4, %v274_v47, %v273_v46  ;;  %v278_v52 = vsel %vm276_vm4, %v275_v48, %v272_v45  ;;  %vm366_vm4 = vmand %vm362_vm13, %vm1064_vm11 }
  0x4b   : >> { %vm281_vm5 = vcmp.ge.f32.partialorder %v279_v49, %v277_v51  ;;  %v284_v53 = vrot.slane %v279_v49, 1  ;;  %v285_v54 = vrot.slane %v280_v50, 1 }
  0x4c   : >> { %v282_v55 = vsel %vm281_vm5, %v279_v49, %v277_v51  ;;  %v283_v56 = vsel %vm281_vm5, %v280_v50, %v278_v52  ;;  %vm351_vm5 = vmand %vm347_vm14, %vm1064_vm11 }
  0x4d   : >> { %vm286_vm6 = vcmp.ge.f32.partialorder %v284_v53, %v282_v55  ;;  %v289_v57 = vrot.slane %v284_v53, 1  ;;  %v290_v58 = vrot.slane %v285_v54, 1 }
  0x4e   : >> { %v287_v59 = vsel %vm286_vm6, %v284_v53, %v282_v55  ;;  %v288_v60 = vsel %vm286_vm6, %v285_v54, %v283_v56  ;;  %vm381_vm6 = vmand %vm377_vm15, %vm1064_vm11 }
  0x4f   : >> { %vm291_vm7 = vcmp.ge.f32.partialorder %v289_v57, %v287_v59  ;;  %v294_v61 = vrot.slane %v289_v57, 1  ;;  %v295_v62 = vrot.slane %v290_v58, 1 }
  0x50   : >> { %v292_v63 = vsel %vm291_vm7, %v289_v57, %v287_v59  ;;  %v293_v0 = vsel %vm291_vm7, %v290_v58, %v288_v60  ;;  %vm396_vm7 = vmand %vm392_vm1, %vm1064_vm11 }
  0x51   : >> { %vm296_vm8 = vcmp.ge.f32.partialorder %v294_v61, %v292_v63  ;;  %v299_v1 = vrot.slane %v294_v61, 1  ;;  %v300_v2 = vrot.slane %v295_v62, 1 }
  0x52   : >> { %v297_v3 = vsel %vm296_vm8, %v294_v61, %v292_v63  ;;  %v298_v4 = vsel %vm296_vm8, %v295_v62, %v293_v0  ;;  %vm411_vm8 = vmand %vm407_vm2, %vm1064_vm11 }
  0x53   : >> { %vm301_vm9 = vcmp.ge.f32.partialorder %v299_v1, %v297_v3  ;;  %v304_v5 = vrot.slane %v299_v1, 1  ;;  %v305_v8 = vrot.slane %v300_v2, 1 }
  0x54   : >> { %v302_v9 = vsel %vm301_vm9, %v299_v1, %v297_v3  ;;  %v303_v10 = vsel %vm301_vm9, %v300_v2, %v298_v4  ;;  %vm426_vm9 = vmand %vm422_vm3, %vm1064_vm11 }
  0x55   : >> { %vm306_vm10 = vcmp.ge.f32.partialorder %v304_v5, %v302_v9 }
  0x56   : >> { %v308_v11 = vsel %vm306_vm10, %v305_v8, %v303_v10  ;;  %vm339_vm10 = vcmp.gt.s32.totalorder %v1058_v13, %v1018_v21 }
  0x57   : >> { %310 = vrot.lane.b32.xlu0 %v308_v11, %s309_s30  ;;  %s513_s30 = scalar_lea.vmem (%p195_p12), %s1237_s1, %s754_s11 }
  0xc9   : >> { %v311_v12 = vpop.permute.xlu0 %310 }
  0xca   : >> { %752 = vpush %v311_v12 }
  0xfb   : >> { %s753_s5 = spop %752 }
  0xfc   : >> { %v317_v18 = vstv %s753_s5  ;;  %s322_s8 = scalar_lea.vmem %s991_s17, %s753_s5 [#allocation1]  ;;  %s328_s10 = scalar_lea.vmem [#allocation7], %s753_s5 }
  0xfd   : >> { %v319_v20 = vsel %vm1064_vm11, %v317_v18, %v318_v15  ;;  %v1073_v22 = vld [vmem:[%s322_s8] ss:$0 sm:$0xff] }
  0xfe   : >> { %v330_v23 = vld [vmem:[%s328_s10] ss:$0 sm:$0xff]  ;;  %320 = vst [vmem:[%s999_s19] sm:$0x1] %v319_v20  ;;  %325 = vst [vmem:[%s322_s8] sm:$0x1] %v323_v16  ;;  %vm333_vm12 = vcmp.ne.f32.partialorder %v1073_v22, 0.0  ;;  %v340_v35 = vsel %vm339_vm10, %v1073_v22, 0.0 }
  0xff   : >> { %331 = vst [vmem:[%s328_s10] sm:$0x1] %v329_v17  ;;  %326 = vst [vmem:[%s321_s4] sm:$0x1] %v1073_v22  ;;  %s745_s19 = sshll.u32 (%p195_p12), %s544_s26, 5  ;;  %s823_s8 = scalar_lea.vmem (%p195_p12), %s1181_s27, 32 }
 0x100   : >> { %332 = vst [vmem:[%s327_s6] sm:$0x1] %v330_v23  ;;  %vm334_vm0 = vmand %vm1064_vm11, %vm333_vm12  ;;  %s1179_s6 = scalar_lea.hbm (%p195_p12), %s1238_s2, %s745_s19  ;;  %p824_p13 = scmp.ne.s32.totalorder (%p195_p12), %s1181_s27, %s823_s8 }
 0x101   : >> { %v335_v25 = vsel %vm334_vm0, %v1073_v22, 1.0 }
 0x102   : >> { %v363_v26 = vsel %vm362_vm13, %v335_v25, 1.0  ;;  %v348_v27 = vsel %vm347_vm14, %v335_v25, 1.0  ;;  %v378_v28 = vsel %vm377_vm15, %v335_v25, 1.0  ;;  %v393_v30 = vsel %vm392_vm1, %v335_v25, 1.0  ;;  %p825_p0 = pnand (%p195_p12), %p824_p13, %p963_p5 }
 0x103   : >> { %811 = vrcp.f32 %v363_v26  ;;  %v408_v31 = vsel %vm407_vm2, %v335_v25, 1.0  ;;  %v423_v32 = vsel %vm422_vm3, %v335_v25, 1.0 }
 0x104   : >> { %813 = vrcp.f32 %v348_v27  ;;  %p826_p1 = pneg (%p195_p12), %p825_p0 }
 0x105   : >> { %815 = vrcp.f32 %v378_v28  ;;  %v490_v14 = vld [vmem:[#allocation2] sm:$0x3] (%p195_p12) }
 0x106   : >> { %817 = vrcp.f32 %v393_v30  ;;  %v733_v36 = vld [vmem:[%s991_s17 + $0x8] sm:$0xff]  ;;  %v344_v39 = vld [vmem:[%s991_s17] sm:$0xff]  ;;  %v735_v42 = vld [vmem:[%s991_s17 + $0x10] sm:$0xff]  ;;  %492 = vst [vmem:[%s142_s20] sm:$0x3] (%p195_p12), %v490_v14  ;;  %s504_s20 = scalar_lea.sflag (%p195_p12), [#allocation4], %s140_s7 }
 0x107   : >> { %819 = vrcp.f32 %v408_v31  ;;  %v737_v46 = vld [vmem:[%s991_s17 + $0x18] sm:$0xff]  ;;  %v739_v50 = vld [vmem:[%s991_s17 + $0x20] sm:$0xff]  ;;  %v741_v24 = vld [vmem:[%s991_s17 + $0x28] sm:$0xff] }
 0x108   : >> { %821 = vrcp.f32 %v423_v32  ;;  %v433_v10 = vld [vmem:[#allocation7] sm:$0xff] (%p195_p12)  ;;  %v435_v11 = vld [vmem:[#allocation7 + $0x8] sm:$0xff] (%p195_p12)  ;;  %v437_v12 = vld [vmem:[#allocation7 + $0x10] sm:$0xff] (%p195_p12) }
 0x109   : > { %v439_v13 = vld [vmem:[#allocation7 + $0x18] sm:$0xff] (%p195_p12) }
 0x10d   : >> { %v812_v33 = vpop.eup %811 }
 0x10e   : >> { %v814_v37 = vpop.eup %813  ;;  %v365_v38 = vmul.f32 %v812_v33, %v733_v36 }
 0x10f   : >> { %v816_v40 = vpop.eup %815  ;;  %v350_v41 = vmul.f32 %v814_v37, %v344_v39 }
 0x110   : >> { %v367_v43 = vsel %vm366_vm4, %v365_v38, 0.0  ;;  %v380_v44 = vmul.f32 %v816_v40, %v735_v42  ;;  %v818_v45 = vpop.eup %817 }
 0x111   : >> { %368 = vadd.xlane.f32.xlu1 %v367_v43  ;;  %v352_v19 = vsel %vm351_vm5, %v350_v41, 0.0  ;;  %v395_v48 = vmul.f32 %v818_v45, %v737_v46  ;;  %v820_v49 = vpop.eup %819 }
 0x112   : >> { %353 = vadd.xlane.f32.xlu0 %v352_v19  ;;  %v382_v47 = vsel %vm381_vm6, %v380_v44, 0.0  ;;  %v410_v52 = vmul.f32 %v820_v49, %v739_v50  ;;  %v822_v53 = vpop.eup %821 }
 0x113   : >> { %v397_v51 = vsel %vm396_vm7, %v395_v48, 0.0  ;;  %v425_v55 = vmul.f32 %v822_v53, %v741_v24 }
 0x114   : >> { %v412_v54 = vsel %vm411_vm8, %v410_v52, 0.0 }
 0x115   : >> { %383 = vadd.xlane.f32.xlu1 %v382_v47  ;;  %v427_v29 = vsel %vm426_vm9, %v425_v55, 0.0 }
 0x119   : >> { %398 = vadd.xlane.f32.xlu1 %v397_v51 }
 0x11d   : >> { %413 = vadd.xlane.f32.xlu1 %v412_v54 }
 0x121   : >> { %428 = vadd.xlane.f32.xlu1 %v427_v29 }
 0x13f   : > { %454 = vxpose.xlu0.b32.start [1/6] (short) (narrow) (%p195_p12), %v433_v10, 8 }
 0x143   : > { %455 = vxpose.xlu0.b32.cont [2/6] (short) (narrow) (%p195_p12), %v435_v11, 8 }
 0x147   : > { %456 = vxpose.xlu0.b32.cont [3/6] (short) (narrow) (%p195_p12), %v437_v12, 8 }
 0x19e   : >> { %v369_v56 = vpop.xlane.xlu1 %368 }
 0x19f   : >> { %v370_v57 = vmul.f32 %v369_v56, %v340_v35  ;;  %v354_v58 = vpop.xlane.xlu0 %353 }
 0x1a0   : >> { %v355_v59 = vmul.f32 %v354_v58, %v340_v35 }
 0x1a1   : >> { %v371_v60 = vsub.f32 %v365_v38, %v370_v57 }
 0x1a2   : >> { %v356_v61 = vsub.f32 %v350_v41, %v355_v59  ;;  %v384_v62 = vpop.xlane.xlu1 %383 }
 0x1a3   : >> { %734 = vst [vmem:[%s991_s17 + $0x8] sm:$0xff] %v371_v60  ;;  %v385_v34 = vmul.f32 %v384_v62, %v340_v35 }
 0x1a4   : >> { %357 = vst [vmem:[%s991_s17] sm:$0xff] %v356_v61 }
 0x1a5   : >> { %v386_v63 = vsub.f32 %v380_v44, %v385_v34 }
 0x1a6   : >> { %v399_v0 = vpop.xlane.xlu1 %398 }
 0x1a7   : >> { %736 = vst [vmem:[%s991_s17 + $0x10] sm:$0xff] %v386_v63  ;;  %v400_v1 = vmul.f32 %v399_v0, %v340_v35 }
 0x1a9   : >> { %v401_v21 = vsub.f32 %v395_v48, %v400_v1 }
 0x1aa   : >> { %v414_v2 = vpop.xlane.xlu1 %413  ;;  %v528_v7 = vld [vmem:[%s991_s17 + $0x8] sm:$0xff] (%p195_p12) }
 0x1ab   : >> { %738 = vst [vmem:[%s991_s17 + $0x18] sm:$0xff] %v401_v21  ;;  %v415_v3 = vmul.f32 %v414_v2, %v340_v35  ;;  %v526_v6 = vld [vmem:[%s991_s17] sm:$0xff] (%p195_p12)  ;;  %529 = vst [vmem:[%s513_s30 + $0x8] sm:$0xff] (%p195_p12), %v528_v7 }
 0x1ac   : > { %527 = vst [vmem:[%s513_s30] sm:$0xff] (%p195_p12), %v526_v6 }
 0x1ad   : >> { %v416_v4 = vsub.f32 %v410_v52, %v415_v3 }
 0x1ae   : >> { %v429_v5 = vpop.xlane.xlu1 %428  ;;  %197 = sbr.rel (!%p195_p12) target bundleno = 50 (0x32), region = 218  ;;  %v530_v15 = vld [vmem:[%s991_s17 + $0x10] sm:$0xff] (%p195_p12) }
 0x1af   : >> { %740 = vst [vmem:[%s991_s17 + $0x20] sm:$0xff] %v416_v4  ;;  %v430_v8 = vmul.f32 %v429_v5, %v340_v35  ;;  %531 = vst [vmem:[%s513_s30 + $0x10] sm:$0xff] (%p195_p12), %v530_v15 }
 0x1b1   : >> { %v431_v9 = vsub.f32 %v425_v55, %v430_v8 }
 0x1b2   : > { %v532_v16 = vld [vmem:[%s991_s17 + $0x18] sm:$0xff] (%p195_p12) }
 0x1b3   : >> { %742 = vst [vmem:[%s991_s17 + $0x28] sm:$0xff] %v431_v9  ;;  %533 = vst [vmem:[%s513_s30 + $0x18] sm:$0xff] (%p195_p12), %v532_v16 }
 0x1b6   : > { %v534_v17 = vld [vmem:[%s991_s17 + $0x20] sm:$0xff] }
 0x1b7   : > { %535 = vst [vmem:[%s513_s30 + $0x20] sm:$0xff] %v534_v17 }
 0x1ba   : > { %v536_v18 = vld [vmem:[%s991_s17 + $0x28] sm:$0xff]  ;;  %s904_s17 = smov [#allocation3]  }
 0x1bb   : > { %537 = vst [vmem:[%s513_s30 + $0x28] sm:$0xff] %v536_v18  ;;  %s827_s10 = sshll.u32 %s904_s17, 4  ;;  %s828_s10 = int_to_ptr.vmem [resolvable:$false] %s827_s10 }
 0x1bc   : > { %s829_s11 = scalar_lea.vmem %s828_s10, 64  ;;  %p830_p2 = scmp.lt.s32.totalorder %s1181_s27, %s828_s10 }
 0x1bd   : > { %p831_p3 = scmp.lt.s32.totalorder %s829_s11, %s823_s8 }
 0x1bf   : > { %p832_p4 = por %p831_p3, %p830_p2 }
 0x1c1   : > { %p833_p8 = pnand %p832_p4, %p826_p1 }
 0x1c3   : > { %836 = shalt.err (!%p833_p8)
}
 0x1c4   : > { %s837_s7 = scalar_lea.hbm %s1179_s6, 32  ;;  %s841_s29 = scalar_lea.hbm %s1238_s2, 32 }
 0x1c5   : > { %p838_p9 = scmp.ne.s32.totalorder %s1179_s6, %s837_s7  ;;  %p842_p12 = scmp.lt.u32.totalorder %s1179_s6, %s1238_s2 }
 0x1c6   : > { %p843_p13 = scmp.lt.u32.totalorder %s841_s29, %s837_s7  ;;  %p845_p1 = scmp.lt.u32.totalorder %s837_s7, %s1179_s6 }
 0x1c7   : > { %p839_p10 = pnand %p838_p9, %p963_p5 }
 0x1c8   : > { %p844_p0 = por %p843_p13, %p842_p12 }
 0x1c9   : > { %p840_p11 = pneg %p839_p10 }
 0x1ca   : > { %p846_p2 = por %p845_p1, %p844_p0 }
 0x1cc   : > { %p847_p3 = pnand %p846_p2, %p840_p11 }
 0x1ce   : > { %850 = shalt.err (!%p847_p3)
}
 0x1cf   : > { %755 = dma.vmem_to_hbm [thread:$0]  (%p963_p5), %s1181_s27, 32, %s1179_s6, %s504_s20   ;;  %457 = vxpose.xlu0.b32.cont [4/6] (short) (narrow) %v439_v13, 8  ;;  %v441_v20 = vld [vmem:[#allocation7 + $0x20] sm:$0xff]  ;;  %v443_v22 = vld [vmem:[#allocation7 + $0x28] sm:$0xff] }
 0x1d0   : > { %s746_s5 = sshll.u32 (%p963_p5), %s544_s26, 1 }
 0x1d1   : > { %s560_s20 = scalar_lea.vmem (%p963_p5), %s1239_s3, %s746_s5 }
 0x1d3   : > { %458 = vxpose.xlu0.b32.cont [5/6] (short) (narrow) %v441_v20, 8 }
 0x1d7   : > { %459 = vxpose.xlu0.b32.end [6/6] (short) (narrow) %v443_v22, 8 }
 0x243   : > { %v470_v23 = vpop.trf.xlu0 }
 0x244   : > { %486 = vst [vmem:[%s1004_s22] sm:$0x1] %v470_v23 }
 0x246   : > { %557 = sbr.rel (!%p963_p5) target bundleno = 597 (0x255), region = 80 }
 0x24b   : > { %v496_v25 = vld [vmem:[#allocation5] sm:$0x3] }
 0x24c   : > { %498 = vst [vmem:[%s148_s21] sm:$0x3] %v496_v25 }
 0x253   : > { %v576_v26 = vld [vmem:[%s148_s21] sm:$0x3] }
 0x254   : > { %577 = vst [vmem:[%s560_s20] sm:$0x3] %v576_v26 }
 0x255 PF: > { %s604_s22 = sand.u32 1, %s881_s12   ;;  %p758_p5 = pnand %p711_p7, %p967_p6 }
 0x256   : > { %s605_s24 = scalar_lea.sflag [#allocation4], %s604_s22 }
 0x257   : > { %876 = dma.done.wait (!%p758_p5), %s605_s24, 32  }
 0x258   : > { %878 = vsyncadd (!%p758_p5), %s605_s24, 4294967264  ;;  %p10_p4 = scmp.ge.s32.totalorder %s950_s18, 4   ;;  %s1244_s12 = smov %s885_s13 }
 0x259   : > { %s1245_s13 = smov %s889_s14  ;;  %s1246_s14 = smov %s961_s23 }
 0x25a   : > { %s1247_s15 = smov %s950_s18  ;;  %12 = sbr.rel (!%p10_p4) target bundleno = 3 (0x3), region = 229 }
 0x261   :  { %617 = vsyncpa [#allocation4], 1 }
 0x262   :  { %619 = vsyncpa [#allocation4 + $0x1], 1 }

// kernel: custom-call.45
= control target key start
LH: loop header
LB: loop body
LE: loop exit
PB: predicated region body
PF: predicated region fallthrough
CT: control target
= control target key end

     0   :  { %s1360_s6 = smov 0   ;;  %s1362_s7 = smov 0   ;;  %s1709_s0 = inlined_call_operand.vmem [shape: f32[2,1,44,44], index: 0, kind: input, shape index: {}]   ;;  %s1710_s1 = inlined_call_operand.vmem [shape: f32[2,1,44,44], index: 1, kind: output, shape index: {}]  }
   0x1   :  { %s1364_s8 = smov 0  }
   0x2 LB: > { %s1264_s9 = sadd.s32 4294967295, %s1346_s8   ;;  %s33_s10 = sadd.s32 1, %s1342_s7  ;;  %s1346_s8 = sphi %s1364_s8, %s7_s8   ;;  %s1342_s7 = sphi %s1362_s7, %s1712_s7   ;;  %s1338_s6 = sphi %s1360_s6, %s1711_s6  }
   0x3   : > { %p35_p0 = scmp.ge.s32.totalorder %s33_s10, 2  ;;  %p1266_p1 = scmp.ge.s32.totalorder %s1346_s8, 2 }
   0x4   : > { %s49_s11 = sand.u32 (!%p1266_p1), 1, %s1346_s8   ;;  %s1283_s12 = smul.u32 (!%p1266_p1), 48, %s1342_s7 }
   0x5   : > { %s1714_s10 = smov (%p35_p0, %s33_s10), 0  ;;  %47 = sbr.rel (%p1266_p1) target bundleno = 12 (0xc), region = 16 }
   0x6   : > { %s1282_s13 = smul.u32 (!%p1266_p1), 48, %s49_s11  ;;  %s58_s16 = scalar_lea.vmem (!%p1266_p1), %s1709_s0, %s1283_s12 }
   0x7   : > { %v96_v0 = vld [vmem:[%s58_s16] sm:$0xff] (!%p1266_p1)  ;;  %v98_v1 = vld [vmem:[%s58_s16 + $0x8] sm:$0xff] (!%p1266_p1)  ;;  %v100_v2 = vld [vmem:[%s58_s16 + $0x10] sm:$0xff] (!%p1266_p1) }
   0x8   : > { %s51_s17 = scalar_lea.vmem (!%p1266_p1), [#allocation0], %s1282_s13  ;;  %v102_v3 = vld [vmem:[%s58_s16 + $0x18] sm:$0xff] (!%p1266_p1)  ;;  %v104_v4 = vld [vmem:[%s58_s16 + $0x20] sm:$0xff] (!%p1266_p1)  ;;  %v106_v5 = vld [vmem:[%s58_s16 + $0x28] sm:$0xff] (!%p1266_p1) }
   0x9   : > { %97 = vst [vmem:[%s51_s17] sm:$0xff] (!%p1266_p1), %v96_v0  ;;  %99 = vst [vmem:[%s51_s17 + $0x8] sm:$0xff] (!%p1266_p1), %v98_v1 }
   0xa   : > { %101 = vst [vmem:[%s51_s17 + $0x10] sm:$0xff] (!%p1266_p1), %v100_v2  ;;  %103 = vst [vmem:[%s51_s17 + $0x18] sm:$0xff] (!%p1266_p1), %v102_v3 }
   0xb   : > { %105 = vst [vmem:[%s51_s17 + $0x20] sm:$0xff] (!%p1266_p1), %v104_v4  ;;  %107 = vst [vmem:[%s51_s17 + $0x28] sm:$0xff] (!%p1266_p1), %v106_v5 }
   0xc PF: > { %p1268_p2 = scmp.ge.s32.totalorder %s1346_s8, 1  ;;  %p112_p3 = scmp.lt.s32.totalorder %s1346_s8, 3 }
   0xe   : > { %p113_p4 = pnand %p1268_p2, %p112_p3 }
  0x10   : > { %116 = sbr.rel (%p113_p4) target bundleno = 6445 (0x192d), region = 54 }
  0x17   : > { %s119_s18 = sand.u32 1, %s1264_s9   ;;  %v130_v6 = vlaneseq  ;;  %v1348_v15 = vmov -1.0   ;;  %v1349_v59 = vmov 0.0   ;;  %s1285_s21 = smul.u32 48, %s1338_s6 }
  0x18   : > { %s1284_s19 = smul.u32 48, %s119_s18 }
  0x19   : > { %v1387_v7 = vand.u32 127, %v130_v6  ;;  %v1389_v8 = vshrl.u32 %v130_v6, 7  ;;  %s1670_s24 = scalar_lea.vmem %s1710_s1, %s1285_s21 }
  0x1a   : > { %s1393_s20 = scalar_lea.vmem [#allocation0], %s1284_s19 }
  0x1b   : > { %vm136_vm0 = vcmp.eq.s32.totalorder %v1389_v8, %v1387_v7  ;;  %v137_v9 = vld [vmem:[%s1393_s20] sm:$0xff]  ;;  %vm132_vm1 = vcmp.lt.s32.totalorder %v1387_v7, 44  ;;  %vm141_vm2 = vcmp.ge.s32.totalorder %v1389_v8, %v1387_v7  ;;  %vm235_vm4 = vcmp.eq.s32.totalorder %v1387_v7, 0  ;;  %v1269_v42 = vld [vmem:[%s1393_s20 + $0x8] sm:$0xff] }
  0x1c   : > { %v138_v10 = vsel %vm136_vm0, %v137_v9, 0.0  ;;  %vm142_vm3 = vmand %vm141_vm2, %vm132_vm1  ;;  %vm232_vm5 = vcmp.eq.s32.totalorder %v1387_v7, %v1389_v8  ;;  %v236_v16 = vsel %vm235_vm4, 1.0, %v1348_v15  ;;  %vm278_vm6 = vcmp.eq.s32.totalorder %v1387_v7, 1 }
  0x1d   : > { %139 = vadd.xlane.f32.xlu0 %v138_v10  ;;  %v143_v12 = vsel %vm142_vm3, %v137_v9, 0.0  ;;  %v237_v17 = vsel %vm232_vm5, %v236_v16, 0.0  ;;  %vm288_vm7 = vcmp.eq.s32.totalorder %v1387_v7, 2  ;;  %vm298_vm8 = vcmp.eq.s32.totalorder %v1387_v7, 3 }
  0x1e   : > { %vm308_vm9 = vcmp.eq.s32.totalorder %v1387_v7, 4  ;;  %v151_v37 = vadd.s32 8, %v1389_v8  ;;  %vm318_vm11 = vcmp.eq.s32.totalorder %v1387_v7, 5  ;;  %vm328_vm14 = vcmp.eq.s32.totalorder %v1387_v7, 6 }
  0x1f   : > { %vm338_vm0 = vcmp.eq.s32.totalorder %v1387_v7, 7  ;;  %vm348_vm2 = vcmp.eq.s32.totalorder %v1387_v7, 8  ;;  %vm362_vm3 = vcmp.eq.s32.totalorder %v1387_v7, 9  ;;  %vm376_vm4 = vcmp.eq.s32.totalorder %v1387_v7, 10 }
  0x20   : > { %vm152_vm10 = vcmp.eq.s32.totalorder %v151_v37, %v1387_v7  ;;  %vm157_vm12 = vcmp.ge.s32.totalorder %v151_v37, %v1387_v7  ;;  %vm243_vm15 = vcmp.eq.s32.totalorder %v1387_v7, %v151_v37  ;;  %vm390_vm5 = vcmp.eq.s32.totalorder %v1387_v7, 11 }
  0x21   : > { %v154_v43 = vsel %vm152_vm10, %v1269_v42, 0.0  ;;  %vm158_vm13 = vmand %vm157_vm12, %vm132_vm1  ;;  %v244_v60 = vsel %vm243_vm15, -1.0, %v1349_v59  ;;  %vm446_vm12 = vcmp.eq.s32.totalorder %v1387_v7, 15  ;;  %vm478_vm15 = vcmp.eq.s32.totalorder %v1387_v7, 17 }
  0x22   : > { %v159_v50 = vsel %vm158_vm13, %v1269_v42, 0.0 }
  0xaa   : > { %v1396_v11 = vpop.xlane.xlu0 %139 }
  0xab   : > { %1312 = vrcp.f32 %v1396_v11 }
  0xb5   : > { %v1404_v13 = vpop.eup %1312 }
  0xb6   : > { %v145_v14 = vmul.f32 %v1404_v13, %v143_v12 }
  0xb8   : > { %146 = vst [vmem:[#allocation2] sm:$0xff] %v145_v14 }
  0xbf   : > { %v274_v18 = vld [vmem:[#allocation2 + $0x1] ss:$0 sm:$0xff]  ;;  %v284_v21 = vld [vmem:[#allocation2 + $0x2] ss:$0 sm:$0xff]  ;;  %v294_v26 = vld [vmem:[#allocation2 + $0x3] ss:$0 sm:$0xff] }
  0xc0   : > { %v275_v19 = vxor.u32 2147483648, %v274_v18  ;;  %v285_v23 = vxor.u32 2147483648, %v284_v21  ;;  %v295_v28 = vxor.u32 2147483648, %v294_v26  ;;  %v304_v31 = vld [vmem:[#allocation2 + $0x4] ss:$0 sm:$0xff] }
  0xc1   : > { %v305_v33 = vxor.u32 2147483648, %v304_v31  ;;  %v314_v36 = vld [vmem:[#allocation2 + $0x5] ss:$0 sm:$0xff]  ;;  %v324_v44 = vld [vmem:[#allocation2 + $0x6] ss:$0 sm:$0xff] }
  0xc2   : > { %v279_v20 = vmul.f32 %v275_v19, %v237_v17  ;;  %v315_v39 = vxor.u32 2147483648, %v314_v36  ;;  %v325_v46 = vxor.u32 2147483648, %v324_v44  ;;  %v334_v53 = vld [vmem:[#allocation2 + $0x7] ss:$0 sm:$0xff] }
  0xc3   : > { %v335_v56 = vxor.u32 2147483648, %v334_v53  ;;  %v167_v53 = vadd.s32 16, %v1389_v8 }
  0xc4   : > { %280 = vadd.xlane.f32.xlu0 %v279_v20 }
  0xc5   : > { %vm173_vm10 = vcmp.ge.s32.totalorder %v167_v53, %v1387_v7  ;;  %vm250_vm13 = vcmp.eq.s32.totalorder %v1387_v7, %v167_v53 }
 0x151   : > { %v281_v22 = vpop.xlane.xlu0 %280 }
 0x152   : > { %v282_v24 = vsel %vm278_vm6, %v281_v22, %v237_v17  ;;  %vm404_vm6 = vcmp.eq.s32.totalorder %v1387_v7, 12 }
 0x153   : > { %v289_v25 = vmul.f32 %v285_v23, %v282_v24 }
 0x155   : > { %290 = vadd.xlane.f32.xlu1 %v289_v25 }
 0x1e2   : > { %v291_v27 = vpop.xlane.xlu1 %290 }
 0x1e3   : > { %v292_v29 = vsel %vm288_vm7, %v291_v27, %v282_v24  ;;  %vm418_vm7 = vcmp.eq.s32.totalorder %v1387_v7, 13 }
 0x1e4   : > { %v299_v30 = vmul.f32 %v295_v28, %v292_v29 }
 0x1e6   : > { %300 = vadd.xlane.f32.xlu1 %v299_v30 }
 0x273   : > { %v301_v32 = vpop.xlane.xlu1 %300 }
 0x274   : > { %v302_v34 = vsel %vm298_vm8, %v301_v32, %v292_v29  ;;  %vm168_vm8 = vcmp.eq.s32.totalorder %v167_v53, %v1387_v7 }
 0x275   : > { %v309_v35 = vmul.f32 %v305_v33, %v302_v34 }
 0x277   : > { %310 = vadd.xlane.f32.xlu0 %v309_v35 }
 0x304   : > { %v311_v38 = vpop.xlane.xlu0 %310 }
 0x305   : > { %v312_v40 = vsel %vm308_vm9, %v311_v38, %v302_v34  ;;  %vm432_vm9 = vcmp.eq.s32.totalorder %v1387_v7, 14 }
 0x306   : > { %v319_v41 = vmul.f32 %v315_v39, %v312_v40 }
 0x308   : > { %320 = vadd.xlane.f32.xlu1 %v319_v41 }
 0x30c   : > { %155 = vadd.xlane.f32.xlu1 %v154_v43 }
 0x395   : > { %v321_v45 = vpop.xlane.xlu1 %320 }
 0x396   : > { %v322_v47 = vsel %vm318_vm11, %v321_v45, %v312_v40  ;;  %vm174_vm11 = vmand %vm173_vm10, %vm132_vm1 }
 0x397   : > { %v329_v48 = vmul.f32 %v325_v46, %v322_v47 }
 0x399   : > { %330 = vadd.xlane.f32.xlu0 %v329_v48  ;;  %v1418_v49 = vpop.xlane.xlu1 %155 }
 0x39a   : > { %1314 = vrcp.f32 %v1418_v49 }
 0x3a4   : > { %v1424_v51 = vpop.eup %1314 }
 0x3a5   : > { %v161_v52 = vmul.f32 %v1424_v51, %v159_v50 }
 0x3a7   : > { %162 = vst [vmem:[#allocation2 + $0x8] sm:$0xff] %v161_v52 }
 0x3ae   : > { %v344_v54 = vld [vmem:[#allocation2 + $0x8] ss:$0 sm:$0xff]  ;;  %v358_v1 = vld [vmem:[#allocation2 + $0x9] ss:$0 sm:$0xff]  ;;  %v372_v12 = vld [vmem:[#allocation2 + $0xa] ss:$0 sm:$0xff] }
 0x3af   : > { %v345_v57 = vxor.u32 2147483648, %v344_v54  ;;  %v359_v4 = vxor.u32 2147483648, %v358_v1  ;;  %v373_v16 = vxor.u32 2147483648, %v372_v12  ;;  %v386_v21 = vld [vmem:[#allocation2 + $0xb] ss:$0 sm:$0xff] }
 0x3b0   : > { %v387_v24 = vxor.u32 2147483648, %v386_v21  ;;  %v400_v29 = vld [vmem:[#allocation2 + $0xc] ss:$0 sm:$0xff]  ;;  %v414_v37 = vld [vmem:[#allocation2 + $0xd] ss:$0 sm:$0xff] }
 0x3b1   : > { %v353_v62 = vmul.f32 %v345_v57, %v244_v60  ;;  %v401_v32 = vxor.u32 2147483648, %v400_v29  ;;  %v415_v40 = vxor.u32 2147483648, %v414_v37  ;;  %v428_v45 = vld [vmem:[#allocation2 + $0xe] ss:$0 sm:$0xff] }
 0x3b2   : > { %v429_v48 = vxor.u32 2147483648, %v428_v45 }
 0x426   : > { %v331_v55 = vpop.xlane.xlu0 %330 }
 0x427   : > { %v332_v58 = vsel %vm328_vm14, %v331_v55, %v322_v47  ;;  %vm460_vm14 = vcmp.eq.s32.totalorder %v1387_v7, 16 }
 0x428   : > { %v339_v61 = vmul.f32 %v335_v56, %v332_v58 }
 0x42a   : > { %340 = vadd.xlane.f32.xlu0 %v339_v61  ;;  %v442_v61 = vld [vmem:[#allocation2 + $0xf] ss:$0 sm:$0xff] }
 0x42e   : > { %354 = vadd.xlane.f32.xlu0 %v353_v62 }
 0x4b7   : > { %v341_v63 = vpop.xlane.xlu0 %340 }
 0x4b8   : > { %v342_v0 = vsel %vm338_vm0, %v341_v63, %v332_v58  ;;  %v443_v63 = vxor.u32 2147483648, %v442_v61  ;;  %vm496_vm0 = vcmp.eq.s32.totalorder %v1387_v7, 18 }
 0x4b9   : > { %v349_v2 = vmul.f32 %v345_v57, %v342_v0  ;;  %v1270_v57 = vld [vmem:[%s1393_s20 + $0x10] sm:$0xff] }
 0x4bb   : > { %v355_v3 = vpop.xlane.xlu0 %354  ;;  %350 = vadd.xlane.f32.xlu1 %v349_v2 }
 0x4bc   : > { %v356_v5 = vsel %vm348_vm2, %v355_v3, %v244_v60  ;;  %v170_v60 = vsel %vm168_vm8, %v1270_v57, 0.0 }
 0x4bd   : > { %v367_v6 = vmul.f32 %v359_v4, %v356_v5 }
 0x4bf   : > { %368 = vadd.xlane.f32.xlu0 %v367_v6 }
 0x548   : > { %v351_v9 = vpop.xlane.xlu1 %350 }
 0x549   : > { %v352_v10 = vsel %vm348_vm2, %v351_v9, %v342_v0  ;;  %vm514_vm2 = vcmp.eq.s32.totalorder %v1387_v7, 19 }
 0x54a   : > { %v363_v14 = vmul.f32 %v359_v4, %v352_v10 }
 0x54c   : > { %v369_v15 = vpop.xlane.xlu0 %368  ;;  %364 = vadd.xlane.f32.xlu1 %v363_v14 }
 0x54d   : > { %v370_v17 = vsel %vm362_vm3, %v369_v15, %v356_v5  ;;  %v175_v5 = vsel %vm174_vm11, %v1270_v57, 0.0  ;;  %vm604_vm11 = vcmp.eq.s32.totalorder %v1387_v7, 24 }
 0x54e   : > { %v381_v18 = vmul.f32 %v373_v16, %v370_v17 }
 0x550   : > { %382 = vadd.xlane.f32.xlu0 %v381_v18 }
 0x5d9   : > { %v365_v19 = vpop.xlane.xlu1 %364 }
 0x5da   : > { %v366_v20 = vsel %vm362_vm3, %v365_v19, %v352_v10  ;;  %vm532_vm3 = vcmp.eq.s32.totalorder %v1387_v7, 20 }
 0x5db   : > { %v377_v22 = vmul.f32 %v373_v16, %v366_v20 }
 0x5dd   : > { %v383_v23 = vpop.xlane.xlu0 %382  ;;  %378 = vadd.xlane.f32.xlu1 %v377_v22 }
 0x5de   : > { %v384_v25 = vsel %vm376_vm4, %v383_v23, %v370_v17 }
 0x5df   : > { %v395_v26 = vmul.f32 %v387_v24, %v384_v25 }
 0x5e1   : > { %396 = vadd.xlane.f32.xlu0 %v395_v26 }
 0x66a   : > { %v379_v27 = vpop.xlane.xlu1 %378 }
 0x66b   : > { %v380_v28 = vsel %vm376_vm4, %v379_v27, %v366_v20  ;;  %v251_v20 = vsel %vm250_vm13, -1.0, %v1349_v59  ;;  %vm550_vm4 = vcmp.eq.s32.totalorder %v1387_v7, 21  ;;  %vm648_vm13 = vcmp.eq.s32.totalorder %v1387_v7, 26 }
 0x66c   : > { %v391_v30 = vmul.f32 %v387_v24, %v380_v28 }
 0x66e   : > { %v397_v31 = vpop.xlane.xlu0 %396  ;;  %392 = vadd.xlane.f32.xlu1 %v391_v30 }
 0x66f   : > { %v398_v33 = vsel %vm390_vm5, %v397_v31, %v384_v25 }
 0x670   : > { %v409_v34 = vmul.f32 %v401_v32, %v398_v33 }
 0x672   : > { %410 = vadd.xlane.f32.xlu0 %v409_v34 }
 0x6fb   : > { %v393_v35 = vpop.xlane.xlu1 %392 }
 0x6fc   : > { %v394_v36 = vsel %vm390_vm5, %v393_v35, %v380_v28 }
 0x6fd   : > { %v405_v38 = vmul.f32 %v401_v32, %v394_v36 }
 0x6ff   : > { %v411_v39 = vpop.xlane.xlu0 %410  ;;  %406 = vadd.xlane.f32.xlu1 %v405_v38 }
 0x700   : > { %v412_v41 = vsel %vm404_vm6, %v411_v39, %v398_v33 }
 0x701   : > { %v423_v42 = vmul.f32 %v415_v40, %v412_v41 }
 0x703   : > { %424 = vadd.xlane.f32.xlu0 %v423_v42 }
 0x78c   : > { %v407_v43 = vpop.xlane.xlu1 %406 }
 0x78d   : > { %v408_v44 = vsel %vm404_vm6, %v407_v43, %v394_v36  ;;  %vm568_vm6 = vcmp.eq.s32.totalorder %v1387_v7, 22 }
 0x78e   : > { %v419_v46 = vmul.f32 %v415_v40, %v408_v44 }
 0x790   : > { %v425_v47 = vpop.xlane.xlu0 %424  ;;  %420 = vadd.xlane.f32.xlu1 %v419_v46 }
 0x791   : > { %v426_v50 = vsel %vm418_vm7, %v425_v47, %v412_v41 }
 0x792   : > { %v437_v52 = vmul.f32 %v429_v48, %v426_v50 }
 0x794   : > { %438 = vadd.xlane.f32.xlu0 %v437_v52 }
 0x81d   : > { %v421_v54 = vpop.xlane.xlu1 %420 }
 0x81e   : > { %v422_v55 = vsel %vm418_vm7, %v421_v54, %v408_v44 }
 0x81f   : > { %v433_v56 = vmul.f32 %v429_v48, %v422_v55 }
 0x821   : > { %v439_v58 = vpop.xlane.xlu0 %438  ;;  %434 = vadd.xlane.f32.xlu1 %v433_v56 }
 0x822   : > { %v440_v62 = vsel %vm432_vm9, %v439_v58, %v426_v50 }
 0x823   : > { %v451_v0 = vmul.f32 %v443_v63, %v440_v62 }
 0x825   : > { %171 = vadd.xlane.f32.xlu1 %v170_v60 }
 0x829   : > { %452 = vadd.xlane.f32.xlu1 %v451_v0 }
 0x8ae   : > { %v435_v1 = vpop.xlane.xlu1 %434 }
 0x8af   : > { %v436_v2 = vsel %vm432_vm9, %v435_v1, %v422_v55  ;;  %vm586_vm9 = vcmp.eq.s32.totalorder %v1387_v7, 23 }
 0x8b0   : > { %v447_v3 = vmul.f32 %v443_v63, %v436_v2 }
 0x8b2   : > { %448 = vadd.xlane.f32.xlu0 %v447_v3  ;;  %v1441_v4 = vpop.xlane.xlu1 %171 }
 0x8b3   : > { %1316 = vrcp.f32 %v1441_v4 }
 0x8b6   : > { %v453_v10 = vpop.xlane.xlu1 %452 }
 0x8b7   : > { %v454_v15 = vsel %vm446_vm12, %v453_v10, %v440_v62 }
 0x8bd   : > { %v1447_v6 = vpop.eup %1316 }
 0x8be   : > { %v177_v9 = vmul.f32 %v1447_v6, %v175_v5 }
 0x8c0   : > { %178 = vst [vmem:[#allocation2 + $0x10] sm:$0xff] %v177_v9 }
 0x8c7   : > { %v456_v12 = vld [vmem:[#allocation2 + $0x10] ss:$0 sm:$0xff]  ;;  %v474_v22 = vld [vmem:[#allocation2 + $0x11] ss:$0 sm:$0xff]  ;;  %v492_v33 = vld [vmem:[#allocation2 + $0x12] ss:$0 sm:$0xff] }
 0x8c8   : > { %v457_v14 = vxor.u32 2147483648, %v456_v12  ;;  %v475_v24 = vxor.u32 2147483648, %v474_v22  ;;  %v493_v35 = vxor.u32 2147483648, %v492_v33  ;;  %v510_v44 = vld [vmem:[#allocation2 + $0x13] ss:$0 sm:$0xff] }
 0x8c9   : > { %v511_v46 = vxor.u32 2147483648, %v510_v44  ;;  %v528_v57 = vld [vmem:[#allocation2 + $0x14] ss:$0 sm:$0xff]  ;;  %v546_v9 = vld [vmem:[#allocation2 + $0x15] ss:$0 sm:$0xff] }
 0x8ca   : > { %v465_v16 = vmul.f32 %v457_v14, %v454_v15  ;;  %v469_v21 = vmul.f32 %v457_v14, %v251_v20  ;;  %v529_v60 = vxor.u32 2147483648, %v528_v57  ;;  %v547_v12 = vxor.u32 2147483648, %v546_v9  ;;  %v564_v22 = vld [vmem:[#allocation2 + $0x16] ss:$0 sm:$0xff] }
 0x8cc   : > { %466 = vadd.xlane.f32.xlu1 %v465_v16 }
 0x93f   : > { %v449_v17 = vpop.xlane.xlu0 %448 }
 0x940   : > { %v450_v18 = vsel %vm446_vm12, %v449_v17, %v436_v2  ;;  %vm626_vm12 = vcmp.eq.s32.totalorder %v1387_v7, 25 }
 0x941   : > { %v461_v19 = vmul.f32 %v457_v14, %v450_v18 }
 0x943   : > { %462 = vadd.xlane.f32.xlu0 %v461_v19 }
 0x947   : > { %470 = vadd.xlane.f32.xlu0 %v469_v21 }
 0x959   : > { %v467_v23 = vpop.xlane.xlu1 %466 }
 0x95a   : > { %v468_v25 = vsel %vm460_vm14, %v467_v23, %v454_v15  ;;  %v183_v23 = vadd.s32 24, %v1389_v8 }
 0x95b   : > { %v483_v26 = vmul.f32 %v475_v24, %v468_v25 }
 0x95c   : > { %vm184_vm5 = vcmp.eq.s32.totalorder %v183_v23, %v1387_v7  ;;  %vm189_vm7 = vcmp.ge.s32.totalorder %v183_v23, %v1387_v7  ;;  %vm257_vm10 = vcmp.eq.s32.totalorder %v1387_v7, %v183_v23 }
 0x95d   : > { %484 = vadd.xlane.f32.xlu0 %v483_v26  ;;  %vm190_vm8 = vmand %vm189_vm7, %vm132_vm1  ;;  %v258_v57 = vsel %vm257_vm10, -1.0, %v1349_v59  ;;  %vm832_vm10 = vcmp.eq.s32.totalorder %v1387_v7, 34 }
 0x9d0   : > { %v463_v27 = vpop.xlane.xlu0 %462 }
 0x9d1   : > { %v464_v28 = vsel %vm460_vm14, %v463_v27, %v450_v18 }
 0x9d2   : > { %v479_v29 = vmul.f32 %v475_v24, %v464_v28 }
 0x9d4   : > { %v471_v30 = vpop.xlane.xlu0 %470  ;;  %480 = vadd.xlane.f32.xlu1 %v479_v29 }
 0x9d5   : > { %v472_v31 = vsel %vm460_vm14, %v471_v30, %v251_v20  ;;  %vm670_vm14 = vcmp.eq.s32.totalorder %v1387_v7, 27 }
 0x9d6   : > { %v487_v32 = vmul.f32 %v475_v24, %v472_v31 }
 0x9d8   : > { %488 = vadd.xlane.f32.xlu1 %v487_v32 }
 0x9ea   : > { %v485_v34 = vpop.xlane.xlu0 %484 }
 0x9eb   : > { %v486_v36 = vsel %vm478_vm15, %v485_v34, %v468_v25  ;;  %v565_v25 = vxor.u32 2147483648, %v564_v22 }
 0x9ec   : > { %v501_v37 = vmul.f32 %v493_v35, %v486_v36 }
 0x9ee   : > { %502 = vadd.xlane.f32.xlu1 %v501_v37 }
 0xa61   : > { %v481_v38 = vpop.xlane.xlu1 %480 }
 0xa62   : > { %v482_v39 = vsel %vm478_vm15, %v481_v38, %v464_v28  ;;  %v1271_v28 = vld [vmem:[%s1393_s20 + $0x18] sm:$0xff] }
 0xa63   : > { %v497_v40 = vmul.f32 %v493_v35, %v482_v39  ;;  %v186_v29 = vsel %vm184_vm5, %v1271_v28, 0.0 }
 0xa65   : > { %498 = vadd.xlane.f32.xlu0 %v497_v40  ;;  %v489_v41 = vpop.xlane.xlu1 %488 }
 0xa66   : > { %v490_v42 = vsel %vm478_vm15, %v489_v41, %v472_v31  ;;  %vm692_vm15 = vcmp.eq.s32.totalorder %v1387_v7, 28 }
 0xa67   : > { %v505_v43 = vmul.f32 %v493_v35, %v490_v42 }
 0xa69   : > { %506 = vadd.xlane.f32.xlu0 %v505_v43 }
 0xa7b   : > { %v503_v45 = vpop.xlane.xlu1 %502 }
 0xa7c   : > { %v504_v47 = vsel %vm496_vm0, %v503_v45, %v486_v36  ;;  %v582_v36 = vld [vmem:[#allocation2 + $0x17] ss:$0 sm:$0xff] }
 0xa7d   : > { %v519_v48 = vmul.f32 %v511_v46, %v504_v47  ;;  %v583_v38 = vxor.u32 2147483648, %v582_v36 }
 0xa7f   : > { %520 = vadd.xlane.f32.xlu0 %v519_v48 }
 0xaf2   : > { %v499_v50 = vpop.xlane.xlu0 %498 }
 0xaf3   : > { %v500_v52 = vsel %vm496_vm0, %v499_v50, %v482_v39 }
 0xaf4   : > { %v515_v53 = vmul.f32 %v511_v46, %v500_v52 }
 0xaf6   : > { %516 = vadd.xlane.f32.xlu1 %v515_v53  ;;  %v507_v54 = vpop.xlane.xlu0 %506 }
 0xaf7   : > { %v508_v55 = vsel %vm496_vm0, %v507_v54, %v490_v42  ;;  %v191_v42 = vsel %vm190_vm8, %v1271_v28, 0.0  ;;  %vm714_vm0 = vcmp.eq.s32.totalorder %v1387_v7, 29  ;;  %vm780_vm8 = vcmp.eq.s32.totalorder %v1387_v7, 32 }
 0xaf8   : > { %v523_v56 = vmul.f32 %v511_v46, %v508_v55 }
 0xafa   : > { %524 = vadd.xlane.f32.xlu1 %v523_v56 }
 0xb0c   : > { %v521_v58 = vpop.xlane.xlu0 %520 }
 0xb0d   : > { %v522_v61 = vsel %vm514_vm2, %v521_v58, %v504_v47 }
 0xb0e   : > { %v537_v62 = vmul.f32 %v529_v60, %v522_v61 }
 0xb10   : > { %538 = vadd.xlane.f32.xlu1 %v537_v62 }
 0xb83   : > { %v517_v63 = vpop.xlane.xlu1 %516 }
 0xb84   : > { %v518_v0 = vsel %vm514_vm2, %v517_v63, %v500_v52 }
 0xb85   : > { %v533_v1 = vmul.f32 %v529_v60, %v518_v0 }
 0xb87   : > { %534 = vadd.xlane.f32.xlu0 %v533_v1  ;;  %v525_v2 = vpop.xlane.xlu1 %524 }
 0xb88   : > { %v526_v3 = vsel %vm514_vm2, %v525_v2, %v508_v55 }
 0xb89   : > { %v541_v5 = vmul.f32 %v529_v60, %v526_v3 }
 0xb8b   : > { %542 = vadd.xlane.f32.xlu0 %v541_v5 }
 0xb9d   : > { %v539_v10 = vpop.xlane.xlu1 %538 }
 0xb9e   : > { %v540_v14 = vsel %vm532_vm3, %v539_v10, %v522_v61 }
 0xb9f   : > { %v555_v15 = vmul.f32 %v547_v12, %v540_v14 }
 0xba1   : > { %556 = vadd.xlane.f32.xlu0 %v555_v15 }
 0xc14   : > { %v535_v16 = vpop.xlane.xlu0 %534 }
 0xc15   : > { %v536_v17 = vsel %vm532_vm3, %v535_v16, %v518_v0 }
 0xc16   : > { %v551_v18 = vmul.f32 %v547_v12, %v536_v17 }
 0xc18   : > { %552 = vadd.xlane.f32.xlu1 %v551_v18  ;;  %v543_v19 = vpop.xlane.xlu0 %542 }
 0xc19   : > { %v544_v20 = vsel %vm532_vm3, %v543_v19, %v526_v3  ;;  %vm736_vm3 = vcmp.eq.s32.totalorder %v1387_v7, 30 }
 0xc1a   : > { %v559_v21 = vmul.f32 %v547_v12, %v544_v20 }
 0xc1c   : > { %560 = vadd.xlane.f32.xlu1 %v559_v21 }
 0xc2e   : > { %v557_v24 = vpop.xlane.xlu0 %556 }
 0xc2f   : > { %v558_v26 = vsel %vm550_vm4, %v557_v24, %v540_v14 }
 0xc30   : > { %v573_v27 = vmul.f32 %v565_v25, %v558_v26 }
 0xc32   : > { %574 = vadd.xlane.f32.xlu1 %v573_v27 }
 0xc36   : > { %187 = vadd.xlane.f32.xlu1 %v186_v29 }
 0xca5   : > { %v553_v30 = vpop.xlane.xlu1 %552 }
 0xca6   : > { %v554_v31 = vsel %vm550_vm4, %v553_v30, %v536_v17 }
 0xca7   : > { %v569_v32 = vmul.f32 %v565_v25, %v554_v31 }
 0xca9   : > { %570 = vadd.xlane.f32.xlu0 %v569_v32  ;;  %v561_v33 = vpop.xlane.xlu1 %560 }
 0xcaa   : > { %v562_v34 = vsel %vm550_vm4, %v561_v33, %v544_v20 }
 0xcab   : > { %v577_v35 = vmul.f32 %v565_v25, %v562_v34 }
 0xcad   : > { %578 = vadd.xlane.f32.xlu0 %v577_v35 }
 0xcbf   : > { %v575_v37 = vpop.xlane.xlu1 %574 }
 0xcc0   : > { %v576_v39 = vsel %vm568_vm6, %v575_v37, %v558_v26 }
 0xcc1   : > { %v591_v40 = vmul.f32 %v583_v38, %v576_v39 }
 0xcc3   : > { %592 = vadd.xlane.f32.xlu1 %v591_v40  ;;  %v1471_v41 = vpop.xlane.xlu1 %187 }
 0xcc4   : > { %1318 = vrcp.f32 %v1471_v41 }
 0xcce   : > { %v1477_v43 = vpop.eup %1318 }
 0xccf   : > { %v193_v44 = vmul.f32 %v1477_v43, %v191_v42 }
 0xcd1   : > { %194 = vst [vmem:[#allocation2 + $0x18] sm:$0xff] %v193_v44 }
 0xcd8   : > { %v600_v53 = vld [vmem:[#allocation2 + $0x18] ss:$0 sm:$0xff]  ;;  %v622_v3 = vld [vmem:[#allocation2 + $0x19] ss:$0 sm:$0xff]  ;;  %v644_v23 = vld [vmem:[#allocation2 + $0x1a] ss:$0 sm:$0xff] }
 0xcd9   : > { %v601_v54 = vxor.u32 2147483648, %v600_v53  ;;  %v623_v9 = vxor.u32 2147483648, %v622_v3  ;;  %v645_v25 = vxor.u32 2147483648, %v644_v23  ;;  %v666_v37 = vld [vmem:[#allocation2 + $0x1b] ss:$0 sm:$0xff] }
 0xcdb   : > { %v617_v60 = vmul.f32 %v601_v54, %v258_v57 }
 0xd36   : > { %v571_v45 = vpop.xlane.xlu0 %570 }
 0xd37   : > { %v572_v46 = vsel %vm568_vm6, %v571_v45, %v554_v31 }
 0xd38   : > { %v587_v47 = vmul.f32 %v583_v38, %v572_v46 }
 0xd3a   : > { %588 = vadd.xlane.f32.xlu0 %v587_v47  ;;  %v579_v48 = vpop.xlane.xlu0 %578 }
 0xd3b   : > { %v580_v50 = vsel %vm568_vm6, %v579_v48, %v562_v34  ;;  %vm758_vm6 = vcmp.eq.s32.totalorder %v1387_v7, 31 }
 0xd3c   : > { %v595_v52 = vmul.f32 %v583_v38, %v580_v50 }
 0xd3e   : > { %596 = vadd.xlane.f32.xlu0 %v595_v52 }
 0xd50   : > { %v593_v55 = vpop.xlane.xlu1 %592 }
 0xd51   : > { %v594_v56 = vsel %vm586_vm9, %v593_v55, %v576_v39  ;;  %v667_v39 = vxor.u32 2147483648, %v666_v37  ;;  %v688_v55 = vld [vmem:[#allocation2 + $0x1c] ss:$0 sm:$0xff]  ;;  %v199_v37 = vadd.s32 32, %v1389_v8 }
 0xd52   : > { %v609_v58 = vmul.f32 %v601_v54, %v594_v56 }
 0xd53   : > { %vm200_vm2 = vcmp.eq.s32.totalorder %v199_v37, %v1387_v7  ;;  %vm205_vm4 = vcmp.ge.s32.totalorder %v199_v37, %v1387_v7  ;;  %vm264_vm7 = vcmp.eq.s32.totalorder %v1387_v7, %v199_v37 }
 0xd54   : > { %610 = vadd.xlane.f32.xlu0 %v609_v58  ;;  %vm206_vm5 = vmand %vm205_vm4, %vm132_vm1  ;;  %vm988_vm4 = vcmp.eq.s32.totalorder %v1387_v7, 40 }
 0xd58   : > { %618 = vadd.xlane.f32.xlu0 %v617_v60 }
 0xdc7   : > { %v589_v61 = vpop.xlane.xlu0 %588 }
 0xdc8   : > { %v590_v62 = vsel %vm586_vm9, %v589_v61, %v572_v46 }
 0xdc9   : > { %v605_v63 = vmul.f32 %v601_v54, %v590_v62 }
 0xdcb   : > { %v597_v0 = vpop.xlane.xlu0 %596  ;;  %606 = vadd.xlane.f32.xlu1 %v605_v63 }
 0xdcc   : > { %v598_v1 = vsel %vm586_vm9, %v597_v0, %v580_v50  ;;  %vm806_vm9 = vcmp.eq.s32.totalorder %v1387_v7, 33 }
 0xdcd   : > { %v613_v2 = vmul.f32 %v601_v54, %v598_v1 }
 0xdcf   : > { %614 = vadd.xlane.f32.xlu1 %v613_v2 }
 0xde1   : > { %v611_v5 = vpop.xlane.xlu0 %610 }
 0xde2   : > { %v612_v10 = vsel %vm604_vm11, %v611_v5, %v594_v56 }
 0xde3   : > { %v631_v12 = vmul.f32 %v623_v9, %v612_v10 }
 0xde5   : > { %632 = vadd.xlane.f32.xlu0 %v631_v12  ;;  %v619_v14 = vpop.xlane.xlu0 %618 }
 0xde6   : > { %v620_v15 = vsel %vm604_vm11, %v619_v14, %v258_v57  ;;  %v689_v57 = vxor.u32 2147483648, %v688_v55 }
 0xde7   : > { %v639_v16 = vmul.f32 %v623_v9, %v620_v15 }
 0xde9   : > { %640 = vadd.xlane.f32.xlu0 %v639_v16 }
 0xe58   : > { %v607_v17 = vpop.xlane.xlu1 %606 }
 0xe59   : > { %v608_v18 = vsel %vm604_vm11, %v607_v17, %v590_v62 }
 0xe5a   : > { %v627_v19 = vmul.f32 %v623_v9, %v608_v18 }
 0xe5c   : > { %628 = vadd.xlane.f32.xlu1 %v627_v19  ;;  %v615_v20 = vpop.xlane.xlu1 %614 }
 0xe5d   : > { %v616_v21 = vsel %vm604_vm11, %v615_v20, %v598_v1  ;;  %vm858_vm11 = vcmp.eq.s32.totalorder %v1387_v7, 35 }
 0xe5e   : > { %v635_v22 = vmul.f32 %v623_v9, %v616_v21 }
 0xe60   : > { %636 = vadd.xlane.f32.xlu1 %v635_v22 }
 0xe72   : > { %v633_v24 = vpop.xlane.xlu0 %632 }
 0xe73   : > { %v634_v26 = vsel %vm626_vm12, %v633_v24, %v612_v10  ;;  %v710_v10 = vld [vmem:[#allocation2 + $0x1d] ss:$0 sm:$0xff] }
 0xe74   : > { %v653_v27 = vmul.f32 %v645_v25, %v634_v26  ;;  %v711_v14 = vxor.u32 2147483648, %v710_v10 }
 0xe76   : > { %654 = vadd.xlane.f32.xlu0 %v653_v27  ;;  %v641_v28 = vpop.xlane.xlu0 %640 }
 0xe77   : > { %v642_v29 = vsel %vm626_vm12, %v641_v28, %v620_v15 }
 0xe78   : > { %v661_v30 = vmul.f32 %v645_v25, %v642_v29 }
 0xe7a   : > { %662 = vadd.xlane.f32.xlu0 %v661_v30 }
 0xee9   : > { %v629_v31 = vpop.xlane.xlu1 %628 }
 0xeea   : > { %v630_v32 = vsel %vm626_vm12, %v629_v31, %v608_v18 }
 0xeeb   : > { %v649_v33 = vmul.f32 %v645_v25, %v630_v32 }
 0xeed   : > { %650 = vadd.xlane.f32.xlu1 %v649_v33  ;;  %v637_v34 = vpop.xlane.xlu1 %636 }
 0xeee   : > { %v638_v35 = vsel %vm626_vm12, %v637_v34, %v616_v21  ;;  %vm884_vm12 = vcmp.eq.s32.totalorder %v1387_v7, 36 }
 0xeef   : > { %v657_v36 = vmul.f32 %v645_v25, %v638_v35 }
 0xef1   : > { %658 = vadd.xlane.f32.xlu1 %v657_v36 }
 0xf03   : > { %v655_v38 = vpop.xlane.xlu0 %654 }
 0xf04   : > { %v656_v40 = vsel %vm648_vm13, %v655_v38, %v634_v26  ;;  %v732_v26 = vld [vmem:[#allocation2 + $0x1e] ss:$0 sm:$0xff] }
 0xf05   : > { %v675_v42 = vmul.f32 %v667_v39, %v656_v40  ;;  %v733_v28 = vxor.u32 2147483648, %v732_v26 }
 0xf07   : > { %676 = vadd.xlane.f32.xlu0 %v675_v42  ;;  %v663_v44 = vpop.xlane.xlu0 %662  ;;  %v1272_v42 = vld [vmem:[%s1393_s20 + $0x20] sm:$0xff] }
 0xf08   : > { %v664_v45 = vsel %vm648_vm13, %v663_v44, %v642_v29  ;;  %v202_v44 = vsel %vm200_vm2, %v1272_v42, 0.0 }
 0xf09   : > { %v683_v46 = vmul.f32 %v667_v39, %v664_v45 }
 0xf0b   : > { %684 = vadd.xlane.f32.xlu0 %v683_v46 }
 0xf7a   : > { %v651_v47 = vpop.xlane.xlu1 %650 }
 0xf7b   : > { %v652_v48 = vsel %vm648_vm13, %v651_v47, %v630_v32 }
 0xf7c   : > { %v671_v50 = vmul.f32 %v667_v39, %v652_v48 }
 0xf7e   : > { %672 = vadd.xlane.f32.xlu1 %v671_v50  ;;  %v659_v52 = vpop.xlane.xlu1 %658 }
 0xf7f   : > { %v660_v53 = vsel %vm648_vm13, %v659_v52, %v638_v35  ;;  %vm910_vm13 = vcmp.eq.s32.totalorder %v1387_v7, 37 }
 0xf80   : > { %v679_v54 = vmul.f32 %v667_v39, %v660_v53 }
 0xf82   : > { %680 = vadd.xlane.f32.xlu1 %v679_v54 }
 0xf94   : > { %v677_v56 = vpop.xlane.xlu0 %676 }
 0xf95   : > { %v678_v58 = vsel %vm670_vm14, %v677_v56, %v656_v40 }
 0xf96   : > { %v697_v60 = vmul.f32 %v689_v57, %v678_v58 }
 0xf98   : > { %698 = vadd.xlane.f32.xlu0 %v697_v60  ;;  %v685_v61 = vpop.xlane.xlu0 %684 }
 0xf99   : > { %v686_v62 = vsel %vm670_vm14, %v685_v61, %v664_v45  ;;  %v754_v45 = vld [vmem:[#allocation2 + $0x1f] ss:$0 sm:$0xff] }
 0xf9a   : > { %v705_v63 = vmul.f32 %v689_v57, %v686_v62  ;;  %v755_v47 = vxor.u32 2147483648, %v754_v45 }
 0xf9c   : > { %706 = vadd.xlane.f32.xlu0 %v705_v63  ;;  %v207_v63 = vsel %vm206_vm5, %v1272_v42, 0.0  ;;  %vm1018_vm5 = vcmp.eq.s32.totalorder %v1387_v7, 41 }
0x100b   : > { %v673_v0 = vpop.xlane.xlu1 %672 }
0x100c   : > { %v674_v1 = vsel %vm670_vm14, %v673_v0, %v652_v48 }
0x100d   : > { %v693_v2 = vmul.f32 %v689_v57, %v674_v1 }
0x100f   : > { %694 = vadd.xlane.f32.xlu1 %v693_v2  ;;  %v681_v3 = vpop.xlane.xlu1 %680 }
0x1010   : > { %v682_v5 = vsel %vm670_vm14, %v681_v3, %v660_v53 }
0x1011   : > { %v701_v9 = vmul.f32 %v689_v57, %v682_v5 }
0x1013   : > { %702 = vadd.xlane.f32.xlu1 %v701_v9 }
0x1025   : > { %v699_v12 = vpop.xlane.xlu0 %698 }
0x1026   : > { %v700_v15 = vsel %vm692_vm15, %v699_v12, %v678_v58 }
0x1027   : > { %v719_v16 = vmul.f32 %v711_v14, %v700_v15 }
0x1029   : > { %720 = vadd.xlane.f32.xlu0 %v719_v16  ;;  %v707_v17 = vpop.xlane.xlu0 %706 }
0x102a   : > { %v708_v18 = vsel %vm692_vm15, %v707_v17, %v686_v62 }
0x102b   : > { %v727_v19 = vmul.f32 %v711_v14, %v708_v18 }
0x102d   : > { %728 = vadd.xlane.f32.xlu0 %v727_v19 }
0x109c   : > { %v695_v20 = vpop.xlane.xlu1 %694 }
0x109d   : > { %v696_v21 = vsel %vm692_vm15, %v695_v20, %v674_v1 }
0x109e   : > { %v715_v22 = vmul.f32 %v711_v14, %v696_v21 }
0x10a0   : > { %716 = vadd.xlane.f32.xlu1 %v715_v22  ;;  %v703_v23 = vpop.xlane.xlu1 %702  ;;  %v265_v22 = vsel %vm264_vm7, -1.0, %v1349_v59  ;;  %vm1078_vm7 = vcmp.eq.s32.totalorder %v1387_v7, 43 }
0x10a1   : > { %v704_v24 = vsel %vm692_vm15, %v703_v23, %v682_v5  ;;  %vm936_vm15 = vcmp.eq.s32.totalorder %v1387_v7, 38 }
0x10a2   : > { %v723_v25 = vmul.f32 %v711_v14, %v704_v24 }
0x10a4   : > { %724 = vadd.xlane.f32.xlu1 %v723_v25 }
0x10b6   : > { %v721_v27 = vpop.xlane.xlu0 %720 }
0x10b7   : > { %v722_v29 = vsel %vm714_vm0, %v721_v27, %v700_v15 }
0x10b8   : > { %v741_v30 = vmul.f32 %v733_v28, %v722_v29 }
0x10ba   : > { %742 = vadd.xlane.f32.xlu0 %v741_v30  ;;  %v729_v31 = vpop.xlane.xlu0 %728 }
0x10bb   : > { %v730_v32 = vsel %vm714_vm0, %v729_v31, %v708_v18 }
0x10bc   : > { %v749_v33 = vmul.f32 %v733_v28, %v730_v32 }
0x10be   : > { %750 = vadd.xlane.f32.xlu0 %v749_v33 }
0x112d   : > { %v717_v34 = vpop.xlane.xlu1 %716 }
0x112e   : > { %v718_v35 = vsel %vm714_vm0, %v717_v34, %v696_v21 }
0x112f   : > { %v737_v36 = vmul.f32 %v733_v28, %v718_v35 }
0x1131   : > { %738 = vadd.xlane.f32.xlu1 %v737_v36  ;;  %v725_v38 = vpop.xlane.xlu1 %724 }
0x1132   : > { %v726_v39 = vsel %vm714_vm0, %v725_v38, %v704_v24 }
0x1133   : > { %v745_v40 = vmul.f32 %v733_v28, %v726_v39 }
0x1135   : > { %746 = vadd.xlane.f32.xlu1 %v745_v40 }
0x1139   : > { %203 = vadd.xlane.f32.xlu1 %v202_v44 }
0x1147   : > { %v743_v46 = vpop.xlane.xlu0 %742 }
0x1148   : > { %v744_v48 = vsel %vm736_vm3, %v743_v46, %v722_v29 }
0x1149   : > { %v763_v50 = vmul.f32 %v755_v47, %v744_v48 }
0x114b   : > { %v751_v52 = vpop.xlane.xlu0 %750  ;;  %764 = vadd.xlane.f32.xlu1 %v763_v50 }
0x114c   : > { %v752_v53 = vsel %vm736_vm3, %v751_v52, %v730_v32 }
0x114d   : > { %v771_v54 = vmul.f32 %v755_v47, %v752_v53 }
0x114f   : > { %772 = vadd.xlane.f32.xlu1 %v771_v54 }
0x11be   : > { %v739_v55 = vpop.xlane.xlu1 %738 }
0x11bf   : > { %v740_v56 = vsel %vm736_vm3, %v739_v55, %v718_v35 }
0x11c0   : > { %v759_v57 = vmul.f32 %v755_v47, %v740_v56 }
0x11c2   : > { %760 = vadd.xlane.f32.xlu0 %v759_v57  ;;  %v747_v58 = vpop.xlane.xlu1 %746 }
0x11c3   : > { %v748_v60 = vsel %vm736_vm3, %v747_v58, %v726_v39 }
0x11c4   : > { %v767_v61 = vmul.f32 %v755_v47, %v748_v60 }
0x11c6   : > { %768 = vadd.xlane.f32.xlu0 %v767_v61  ;;  %v1505_v62 = vpop.xlane.xlu1 %203 }
0x11c7   : > { %1320 = vrcp.f32 %v1505_v62 }
0x11d1   : > { %v1511_v0 = vpop.eup %1320 }
0x11d2   : > { %v209_v1 = vmul.f32 %v1511_v0, %v207_v63 }
0x11d4   : > { %210 = vst [vmem:[#allocation2 + $0x20] sm:$0xff] %v209_v1 }
0x11d8   : > { %v765_v2 = vpop.xlane.xlu1 %764 }
0x11d9   : > { %v766_v10 = vsel %vm758_vm6, %v765_v2, %v744_v48 }
0x11db   : > { %v776_v3 = vld [vmem:[#allocation2 + $0x20] ss:$0 sm:$0xff]  ;;  %v802_v24 = vld [vmem:[#allocation2 + $0x21] ss:$0 sm:$0xff]  ;;  %v828_v42 = vld [vmem:[#allocation2 + $0x22] ss:$0 sm:$0xff] }
0x11dc   : > { %v773_v5 = vpop.xlane.xlu1 %772  ;;  %v777_v9 = vxor.u32 2147483648, %v776_v3  ;;  %v803_v26 = vxor.u32 2147483648, %v802_v24  ;;  %v829_v45 = vxor.u32 2147483648, %v828_v42  ;;  %v854_v1 = vld [vmem:[#allocation2 + $0x23] ss:$0 sm:$0xff] }
0x11dd   : > { %v774_v14 = vsel %vm758_vm6, %v773_v5, %v752_v53  ;;  %v855_v2 = vxor.u32 2147483648, %v854_v1  ;;  %v880_v24 = vld [vmem:[#allocation2 + $0x24] ss:$0 sm:$0xff]  ;;  %v906_v42 = vld [vmem:[#allocation2 + $0x25] ss:$0 sm:$0xff] }
0x11de   : > { %v785_v12 = vmul.f32 %v777_v9, %v766_v10  ;;  %v793_v15 = vmul.f32 %v777_v9, %v774_v14  ;;  %v797_v23 = vmul.f32 %v777_v9, %v265_v22  ;;  %v932_v1 = vld [vmem:[#allocation2 + $0x26] ss:$0 sm:$0xff] }
0x11e0   : > { %786 = vadd.xlane.f32.xlu1 %v785_v12 }
0x11e4   : > { %794 = vadd.xlane.f32.xlu1 %v793_v15 }
0x124f   : > { %v761_v16 = vpop.xlane.xlu0 %760 }
0x1250   : > { %v762_v20 = vsel %vm758_vm6, %v761_v16, %v740_v56 }
0x1251   : > { %v781_v21 = vmul.f32 %v777_v9, %v762_v20 }
0x1253   : > { %v769_v17 = vpop.xlane.xlu0 %768 }
0x1254   : > { %v770_v18 = vsel %vm758_vm6, %v769_v17, %v748_v60  ;;  %vm1048_vm6 = vcmp.eq.s32.totalorder %v1387_v7, 42 }
0x1255   : > { %v789_v19 = vmul.f32 %v777_v9, %v770_v18 }
0x1257   : > { %790 = vadd.xlane.f32.xlu0 %v789_v19 }
0x125b   : > { %782 = vadd.xlane.f32.xlu0 %v781_v21 }
0x125f   : > { %798 = vadd.xlane.f32.xlu0 %v797_v23 }
0x126d   : > { %v787_v25 = vpop.xlane.xlu1 %786 }
0x126e   : > { %v788_v27 = vsel %vm780_vm8, %v787_v25, %v766_v10  ;;  %v881_v25 = vxor.u32 2147483648, %v880_v24 }
0x126f   : > { %v811_v28 = vmul.f32 %v803_v26, %v788_v27 }
0x1271   : > { %812 = vadd.xlane.f32.xlu0 %v811_v28  ;;  %v795_v29 = vpop.xlane.xlu1 %794 }
0x1272   : > { %v796_v30 = vsel %vm780_vm8, %v795_v29, %v774_v14 }
0x1273   : > { %v819_v31 = vmul.f32 %v803_v26, %v796_v30 }
0x1275   : > { %820 = vadd.xlane.f32.xlu0 %v819_v31 }
0x12e4   : > { %v791_v32 = vpop.xlane.xlu0 %790 }
0x12e5   : > { %v792_v33 = vsel %vm780_vm8, %v791_v32, %v770_v18 }
0x12e6   : > { %v815_v34 = vmul.f32 %v803_v26, %v792_v33 }
0x12e8   : > { %v783_v35 = vpop.xlane.xlu0 %782  ;;  %816 = vadd.xlane.f32.xlu1 %v815_v34 }
0x12e9   : > { %v784_v36 = vsel %vm780_vm8, %v783_v35, %v762_v20 }
0x12ea   : > { %v807_v37 = vmul.f32 %v803_v26, %v784_v36 }
0x12ec   : > { %v799_v38 = vpop.xlane.xlu0 %798  ;;  %808 = vadd.xlane.f32.xlu1 %v807_v37 }
0x12ed   : > { %v800_v39 = vsel %vm780_vm8, %v799_v38, %v265_v22  ;;  %vm1110_vm8 = vweird.f32 %v1418_v49 }
0x12ee   : > { %v823_v40 = vmul.f32 %v803_v26, %v800_v39 }
0x12f0   : > { %824 = vadd.xlane.f32.xlu1 %v823_v40 }
0x12fe   : > { %v813_v44 = vpop.xlane.xlu0 %812 }
0x12ff   : > { %v814_v46 = vsel %vm806_vm9, %v813_v44, %v788_v27  ;;  %v907_v44 = vxor.u32 2147483648, %v906_v42 }
0x1300   : > { %v837_v47 = vmul.f32 %v829_v45, %v814_v46 }
0x1302   : > { %838 = vadd.xlane.f32.xlu1 %v837_v47  ;;  %v821_v48 = vpop.xlane.xlu0 %820 }
0x1303   : > { %v822_v50 = vsel %vm806_vm9, %v821_v48, %v796_v30 }
0x1304   : > { %v845_v52 = vmul.f32 %v829_v45, %v822_v50 }
0x1306   : > { %846 = vadd.xlane.f32.xlu1 %v845_v52 }
0x1375   : > { %v817_v53 = vpop.xlane.xlu1 %816 }
0x1376   : > { %v818_v54 = vsel %vm806_vm9, %v817_v53, %v792_v33 }
0x1377   : > { %v841_v55 = vmul.f32 %v829_v45, %v818_v54 }
0x1379   : > { %842 = vadd.xlane.f32.xlu0 %v841_v55  ;;  %v809_v56 = vpop.xlane.xlu1 %808 }
0x137a   : > { %v810_v57 = vsel %vm806_vm9, %v809_v56, %v784_v36 }
0x137b   : > { %v833_v58 = vmul.f32 %v829_v45, %v810_v57 }
0x137d   : > { %834 = vadd.xlane.f32.xlu0 %v833_v58  ;;  %v825_v60 = vpop.xlane.xlu1 %824 }
0x137e   : > { %v826_v61 = vsel %vm806_vm9, %v825_v60, %v800_v39  ;;  %vm1122_vm9 = vweird.f32 %v1471_v41 }
0x137f   : > { %v849_v63 = vmul.f32 %v829_v45, %v826_v61 }
0x1381   : > { %850 = vadd.xlane.f32.xlu0 %v849_v63 }
0x138f   : > { %v839_v3 = vpop.xlane.xlu1 %838 }
0x1390   : > { %v840_v5 = vsel %vm832_vm10, %v839_v3, %v814_v46 }
0x1391   : > { %v863_v9 = vmul.f32 %v855_v2, %v840_v5 }
0x1393   : > { %864 = vadd.xlane.f32.xlu0 %v863_v9  ;;  %v847_v10 = vpop.xlane.xlu1 %846 }
0x1394   : > { %v848_v12 = vsel %vm832_vm10, %v847_v10, %v822_v50  ;;  %v1576_v10 = vadd.s32 40, %v1389_v8 }
0x1395   : > { %v871_v14 = vmul.f32 %v855_v2, %v848_v12 }
0x1396   : > { %vm216_vm14 = vcmp.eq.s32.totalorder %v1576_v10, %v1387_v7  ;;  %vm221_vm0 = vcmp.ge.s32.totalorder %v1576_v10, %v1387_v7  ;;  %vm271_vm3 = vcmp.eq.s32.totalorder %v1387_v7, %v1576_v10 }
0x1397   : > { %872 = vadd.xlane.f32.xlu0 %v871_v14  ;;  %vm222_vm2 = vmand %vm221_vm0, %vm132_vm1  ;;  %vm962_vm1 = vcmp.eq.s32.totalorder %v1387_v7, 39 }
0x1406   : > { %v843_v15 = vpop.xlane.xlu0 %842 }
0x1407   : > { %v844_v16 = vsel %vm832_vm10, %v843_v15, %v818_v54 }
0x1408   : > { %v867_v17 = vmul.f32 %v855_v2, %v844_v16 }
0x140a   : > { %868 = vadd.xlane.f32.xlu1 %v867_v17  ;;  %v835_v18 = vpop.xlane.xlu0 %834 }
0x140b   : > { %v836_v19 = vsel %vm832_vm10, %v835_v18, %v810_v57 }
0x140c   : > { %v859_v20 = vmul.f32 %v855_v2, %v836_v19 }
0x140e   : > { %860 = vadd.xlane.f32.xlu1 %v859_v20  ;;  %v851_v21 = vpop.xlane.xlu0 %850 }
0x140f   : > { %v852_v22 = vsel %vm832_vm10, %v851_v21, %v826_v61 }
0x1410   : > { %v875_v23 = vmul.f32 %v855_v2, %v852_v22  ;;  %v933_v2 = vxor.u32 2147483648, %v932_v1 }
0x1412   : > { %876 = vadd.xlane.f32.xlu1 %v875_v23 }
0x1420   : > { %v865_v26 = vpop.xlane.xlu0 %864 }
0x1421   : > { %v866_v27 = vsel %vm858_vm11, %v865_v26, %v840_v5  ;;  %v958_v26 = vld [vmem:[#allocation2 + $0x27] ss:$0 sm:$0xff] }
0x1422   : > { %v889_v28 = vmul.f32 %v881_v25, %v866_v27 }
0x1424   : > { %890 = vadd.xlane.f32.xlu1 %v889_v28  ;;  %v873_v29 = vpop.xlane.xlu0 %872 }
0x1425   : > { %v874_v30 = vsel %vm858_vm11, %v873_v29, %v848_v12 }
0x1426   : > { %v897_v31 = vmul.f32 %v881_v25, %v874_v30 }
0x1428   : > { %898 = vadd.xlane.f32.xlu1 %v897_v31 }
0x1497   : > { %v869_v32 = vpop.xlane.xlu1 %868 }
0x1498   : > { %v870_v33 = vsel %vm858_vm11, %v869_v32, %v844_v16  ;;  %v1273_v16 = vld [vmem:[%s1393_s20 + $0x28] sm:$0xff] }
0x1499   : > { %v893_v34 = vmul.f32 %v881_v25, %v870_v33  ;;  %v218_v17 = vsel %vm216_vm14, %v1273_v16, 0.0 }
0x149b   : > { %894 = vadd.xlane.f32.xlu0 %v893_v34  ;;  %v861_v35 = vpop.xlane.xlu1 %860 }
0x149c   : > { %v862_v36 = vsel %vm858_vm11, %v861_v35, %v836_v19  ;;  %v223_v35 = vsel %vm222_vm2, %v1273_v16, 0.0 }
0x149d   : > { %v885_v37 = vmul.f32 %v881_v25, %v862_v36 }
0x149f   : > { %886 = vadd.xlane.f32.xlu0 %v885_v37  ;;  %v877_v38 = vpop.xlane.xlu1 %876 }
0x14a0   : > { %v878_v39 = vsel %vm858_vm11, %v877_v38, %v852_v22  ;;  %vm1116_vm11 = vweird.f32 %v1441_v4 }
0x14a1   : > { %v901_v40 = vmul.f32 %v881_v25, %v878_v39 }
0x14a3   : > { %902 = vadd.xlane.f32.xlu0 %v901_v40 }
0x14b1   : > { %v891_v45 = vpop.xlane.xlu1 %890 }
0x14b2   : > { %v892_v46 = vsel %vm884_vm12, %v891_v45, %v866_v27  ;;  %v959_v27 = vxor.u32 2147483648, %v958_v26 }
0x14b3   : > { %v915_v47 = vmul.f32 %v907_v44, %v892_v46 }
0x14b5   : > { %916 = vadd.xlane.f32.xlu0 %v915_v47  ;;  %v899_v48 = vpop.xlane.xlu1 %898 }
0x14b6   : > { %v900_v50 = vsel %vm884_vm12, %v899_v48, %v874_v30 }
0x14b7   : > { %v923_v52 = vmul.f32 %v907_v44, %v900_v50 }
0x14b9   : > { %924 = vadd.xlane.f32.xlu0 %v923_v52 }
0x1528   : > { %v895_v53 = vpop.xlane.xlu0 %894 }
0x1529   : > { %v896_v54 = vsel %vm884_vm12, %v895_v53, %v870_v33 }
0x152a   : > { %v919_v55 = vmul.f32 %v907_v44, %v896_v54 }
0x152c   : > { %920 = vadd.xlane.f32.xlu1 %v919_v55  ;;  %v887_v56 = vpop.xlane.xlu0 %886 }
0x152d   : > { %v888_v57 = vsel %vm884_vm12, %v887_v56, %v862_v36 }
0x152e   : > { %v911_v58 = vmul.f32 %v907_v44, %v888_v57 }
0x1530   : > { %912 = vadd.xlane.f32.xlu1 %v911_v58  ;;  %v903_v60 = vpop.xlane.xlu0 %902  ;;  %v272_v58 = vsel %vm271_vm3, -1.0, %v1349_v59 }
0x1531   : > { %v904_v61 = vsel %vm884_vm12, %v903_v60, %v878_v39  ;;  %vm1105_vm12 = vweird.f32 %v1396_v11 }
0x1532   : > { %v927_v63 = vmul.f32 %v907_v44, %v904_v61 }
0x1534   : > { %928 = vadd.xlane.f32.xlu1 %v927_v63 }
0x1542   : > { %v917_v3 = vpop.xlane.xlu0 %916 }
0x1543   : > { %v918_v5 = vsel %vm910_vm13, %v917_v3, %v892_v46 }
0x1544   : > { %v941_v9 = vmul.f32 %v933_v2, %v918_v5 }
0x1546   : > { %942 = vadd.xlane.f32.xlu1 %v941_v9  ;;  %v925_v12 = vpop.xlane.xlu0 %924 }
0x1547   : > { %v926_v14 = vsel %vm910_vm13, %v925_v12, %v900_v50 }
0x1548   : > { %v949_v15 = vmul.f32 %v933_v2, %v926_v14 }
0x154a   : > { %950 = vadd.xlane.f32.xlu1 %v949_v15 }
0x154e   : > { %219 = vadd.xlane.f32.xlu1 %v218_v17 }
0x15b9   : > { %v921_v18 = vpop.xlane.xlu1 %920 }
0x15ba   : > { %v922_v19 = vsel %vm910_vm13, %v921_v18, %v896_v54 }
0x15bb   : > { %v945_v20 = vmul.f32 %v933_v2, %v922_v19 }
0x15bd   : > { %946 = vadd.xlane.f32.xlu0 %v945_v20  ;;  %v913_v8 = vpop.xlane.xlu1 %912 }
0x15be   : > { %v914_v21 = vsel %vm910_vm13, %v913_v8, %v888_v57 }
0x15bf   : > { %v937_v22 = vmul.f32 %v933_v2, %v914_v21 }
0x15c1   : > { %938 = vadd.xlane.f32.xlu0 %v937_v22  ;;  %v929_v23 = vpop.xlane.xlu1 %928 }
0x15c2   : > { %v930_v24 = vsel %vm910_vm13, %v929_v23, %v904_v61  ;;  %vm1128_vm13 = vweird.f32 %v1505_v62 }
0x15c3   : > { %v953_v25 = vmul.f32 %v933_v2, %v930_v24 }
0x15c5   : > { %954 = vadd.xlane.f32.xlu0 %v953_v25 }
0x15d3   : > { %v943_v28 = vpop.xlane.xlu1 %942 }
0x15d4   : > { %v944_v29 = vsel %vm936_vm15, %v943_v28, %v918_v5 }
0x15d5   : > { %v967_v30 = vmul.f32 %v959_v27, %v944_v29 }
0x15d7   : > { %968 = vadd.xlane.f32.xlu1 %v967_v30  ;;  %v951_v31 = vpop.xlane.xlu1 %950 }
0x15d8   : > { %v952_v32 = vsel %vm936_vm15, %v951_v31, %v926_v14 }
0x15d9   : > { %v975_v33 = vmul.f32 %v959_v27, %v952_v32 }
0x15db   : > { %976 = vadd.xlane.f32.xlu1 %v975_v33  ;;  %v1594_v34 = vpop.xlane.xlu1 %219 }
0x15dc   : > { %1322 = vrcp.f32 %v1594_v34  ;;  %vm1134_vm10 = vweird.f32 %v1594_v34 }
0x15e6   : > { %v1601_v36 = vpop.eup %1322 }
0x15e7   : > { %v225_v37 = vmul.f32 %v1601_v36, %v223_v35 }
0x15e9   : > { %226 = vst [vmem:[#allocation2 + $0x28] sm:$0xff] %v225_v37 }
0x15f0   : > { %v984_v50 = vld [vmem:[#allocation2 + $0x28] ss:$0 sm:$0xff]  ;;  %v1014_v14 = vld [vmem:[#allocation2 + $0x29] ss:$0 sm:$0xff]  ;;  %v1044_v33 = vld [vmem:[#allocation2 + $0x2a] ss:$0 sm:$0xff] }
0x15f1   : > { %v985_v52 = vxor.u32 2147483648, %v984_v50  ;;  %v1015_v15 = vxor.u32 2147483648, %v1014_v14  ;;  %v1045_v35 = vxor.u32 2147483648, %v1044_v33 }
0x15f3   : > { %v1009_v61 = vmul.f32 %v985_v52, %v272_v58 }
0x164a   : > { %v947_v38 = vpop.xlane.xlu0 %946 }
0x164b   : > { %v948_v39 = vsel %vm936_vm15, %v947_v38, %v922_v19 }
0x164c   : > { %v971_v40 = vmul.f32 %v959_v27, %v948_v39 }
0x164e   : > { %v939_v42 = vpop.xlane.xlu0 %938  ;;  %972 = vadd.xlane.f32.xlu0 %v971_v40 }
0x164f   : > { %v940_v44 = vsel %vm936_vm15, %v939_v42, %v914_v21 }
0x1650   : > { %v963_v45 = vmul.f32 %v959_v27, %v940_v44 }
0x1652   : > { %964 = vadd.xlane.f32.xlu0 %v963_v45  ;;  %v955_v46 = vpop.xlane.xlu0 %954 }
0x1653   : > { %v956_v47 = vsel %vm936_vm15, %v955_v46, %v930_v24 }
0x1654   : > { %v979_v48 = vmul.f32 %v959_v27, %v956_v47 }
0x1656   : > { %980 = vadd.xlane.f32.xlu0 %v979_v48 }
0x1664   : > { %v969_v53 = vpop.xlane.xlu1 %968 }
0x1665   : > { %v970_v54 = vsel %vm962_vm1, %v969_v53, %v944_v29 }
0x1666   : > { %v993_v55 = vmul.f32 %v985_v52, %v970_v54 }
0x1668   : > { %994 = vadd.xlane.f32.xlu0 %v993_v55  ;;  %v977_v56 = vpop.xlane.xlu1 %976 }
0x1669   : > { %v978_v57 = vsel %vm962_vm1, %v977_v56, %v952_v32 }
0x166a   : > { %v1001_v60 = vmul.f32 %v985_v52, %v978_v57 }
0x166c   : > { %1002 = vadd.xlane.f32.xlu0 %v1001_v60  ;;  %v1074_v60 = vld [vmem:[#allocation2 + $0x2b] ss:$0 sm:$0xff] }
0x1670   : > { %1010 = vadd.xlane.f32.xlu0 %v1009_v61  ;;  %v1075_v61 = vxor.u32 2147483648, %v1074_v60 }
0x16db   : > { %v973_v63 = vpop.xlane.xlu0 %972 }
0x16dc   : > { %v974_v1 = vsel %vm962_vm1, %v973_v63, %v948_v39 }
0x16dd   : > { %v997_v2 = vmul.f32 %v985_v52, %v974_v1 }
0x16df   : > { %v965_v3 = vpop.xlane.xlu0 %964  ;;  %998 = vadd.xlane.f32.xlu1 %v997_v2 }
0x16e0   : > { %v966_v5 = vsel %vm962_vm1, %v965_v3, %v940_v44 }
0x16e1   : > { %v989_v9 = vmul.f32 %v985_v52, %v966_v5 }
0x16e3   : > { %v981_v10 = vpop.xlane.xlu0 %980  ;;  %990 = vadd.xlane.f32.xlu1 %v989_v9 }
0x16e4   : > { %v982_v59 = vsel %vm962_vm1, %v981_v10, %v956_v47 }
0x16e5   : > { %v1005_v12 = vmul.f32 %v985_v52, %v982_v59 }
0x16e7   : > { %1006 = vadd.xlane.f32.xlu1 %v1005_v12 }
0x16f5   : > { %v995_v16 = vpop.xlane.xlu0 %994 }
0x16f6   : > { %v996_v17 = vsel %vm988_vm4, %v995_v16, %v970_v54 }
0x16f7   : > { %v1023_v18 = vmul.f32 %v1015_v15, %v996_v17 }
0x16f9   : > { %1024 = vadd.xlane.f32.xlu0 %v1023_v18  ;;  %v1003_v19 = vpop.xlane.xlu0 %1002 }
0x16fa   : > { %v1004_v20 = vsel %vm988_vm4, %v1003_v19, %v978_v57 }
0x16fb   : > { %v1031_v8 = vmul.f32 %v1015_v15, %v1004_v20 }
0x16fd   : > { %1032 = vadd.xlane.f32.xlu0 %v1031_v8  ;;  %v1011_v21 = vpop.xlane.xlu0 %1010 }
0x16fe   : > { %v1012_v22 = vsel %vm988_vm4, %v1011_v21, %v272_v58 }
0x16ff   : > { %v1039_v23 = vmul.f32 %v1015_v15, %v1012_v22 }
0x1701   : > { %1040 = vadd.xlane.f32.xlu0 %v1039_v23 }
0x176c   : > { %v999_v24 = vpop.xlane.xlu1 %998 }
0x176d   : > { %v1000_v25 = vsel %vm988_vm4, %v999_v24, %v974_v1 }
0x176e   : > { %v1027_v26 = vmul.f32 %v1015_v15, %v1000_v25 }
0x1770   : > { %1028 = vadd.xlane.f32.xlu1 %v1027_v26  ;;  %v991_v27 = vpop.xlane.xlu1 %990 }
0x1771   : > { %v992_v28 = vsel %vm988_vm4, %v991_v27, %v966_v5 }
0x1772   : > { %v1019_v29 = vmul.f32 %v1015_v15, %v992_v28 }
0x1774   : > { %1020 = vadd.xlane.f32.xlu1 %v1019_v29  ;;  %v1007_v30 = vpop.xlane.xlu1 %1006 }
0x1775   : > { %v1008_v31 = vsel %vm988_vm4, %v1007_v30, %v982_v59 }
0x1776   : > { %v1035_v32 = vmul.f32 %v1015_v15, %v1008_v31 }
0x1778   : > { %1036 = vadd.xlane.f32.xlu1 %v1035_v32 }
0x1786   : > { %v1025_v37 = vpop.xlane.xlu0 %1024 }
0x1787   : > { %v1026_v38 = vsel %vm1018_vm5, %v1025_v37, %v996_v17 }
0x1788   : > { %v1053_v39 = vmul.f32 %v1045_v35, %v1026_v38 }
0x178a   : > { %1054 = vadd.xlane.f32.xlu0 %v1053_v39  ;;  %v1033_v40 = vpop.xlane.xlu0 %1032 }
0x178b   : > { %v1034_v42 = vsel %vm1018_vm5, %v1033_v40, %v1004_v20 }
0x178c   : > { %v1061_v44 = vmul.f32 %v1045_v35, %v1034_v42 }
0x178e   : > { %1062 = vadd.xlane.f32.xlu0 %v1061_v44  ;;  %v1041_v45 = vpop.xlane.xlu0 %1040 }
0x178f   : > { %v1042_v46 = vsel %vm1018_vm5, %v1041_v45, %v1012_v22 }
0x1790   : > { %v1069_v47 = vmul.f32 %v1045_v35, %v1042_v46 }
0x1792   : > { %1070 = vadd.xlane.f32.xlu0 %v1069_v47 }
0x17fd   : > { %v1029_v48 = vpop.xlane.xlu1 %1028 }
0x17fe   : > { %v1030_v50 = vsel %vm1018_vm5, %v1029_v48, %v1000_v25 }
0x17ff   : > { %v1057_v52 = vmul.f32 %v1045_v35, %v1030_v50 }
0x1801   : > { %1058 = vadd.xlane.f32.xlu1 %v1057_v52  ;;  %v1021_v53 = vpop.xlane.xlu1 %1020 }
0x1802   : > { %v1022_v54 = vsel %vm1018_vm5, %v1021_v53, %v992_v28 }
0x1803   : > { %v1049_v55 = vmul.f32 %v1045_v35, %v1022_v54 }
0x1805   : > { %1050 = vadd.xlane.f32.xlu1 %v1049_v55  ;;  %v1037_v56 = vpop.xlane.xlu1 %1036 }
0x1806   : > { %v1038_v57 = vsel %vm1018_vm5, %v1037_v56, %v1008_v31 }
0x1807   : > { %v1065_v58 = vmul.f32 %v1045_v35, %v1038_v57 }
0x1809   : > { %1066 = vadd.xlane.f32.xlu1 %v1065_v58 }
0x1817   : > { %v1055_v63 = vpop.xlane.xlu0 %1054 }
0x1818   : > { %v1056_v1 = vsel %vm1048_vm6, %v1055_v63, %v1026_v38 }
0x1819   : > { %v1083_v2 = vmul.f32 %v1075_v61, %v1056_v1 }
0x181b   : > { %1084 = vadd.xlane.f32.xlu0 %v1083_v2  ;;  %v1063_v3 = vpop.xlane.xlu0 %1062 }
0x181c   : > { %v1064_v5 = vsel %vm1048_vm6, %v1063_v3, %v1034_v42 }
0x181d   : > { %v1091_v9 = vmul.f32 %v1075_v61, %v1064_v5 }
0x181f   : > { %1092 = vadd.xlane.f32.xlu0 %v1091_v9  ;;  %v1071_v10 = vpop.xlane.xlu0 %1070 }
0x1820   : > { %v1072_v59 = vsel %vm1048_vm6, %v1071_v10, %v1042_v46 }
0x1821   : > { %v1099_v12 = vmul.f32 %v1075_v61, %v1072_v59 }
0x1823   : > { %1100 = vadd.xlane.f32.xlu0 %v1099_v12 }
0x188e   : > { %v1059_v14 = vpop.xlane.xlu1 %1058 }
0x188f   : > { %v1060_v15 = vsel %vm1048_vm6, %v1059_v14, %v1030_v50 }
0x1890   : > { %v1087_v16 = vmul.f32 %v1075_v61, %v1060_v15 }
0x1892   : > { %1088 = vadd.xlane.f32.xlu1 %v1087_v16  ;;  %v1051_v17 = vpop.xlane.xlu1 %1050 }
0x1893   : > { %v1052_v18 = vsel %vm1048_vm6, %v1051_v17, %v1022_v54 }
0x1894   : > { %v1079_v19 = vmul.f32 %v1075_v61, %v1052_v18 }
0x1896   : > { %1080 = vadd.xlane.f32.xlu1 %v1079_v19  ;;  %v1067_v20 = vpop.xlane.xlu1 %1066 }
0x1897   : > { %v1068_v8 = vsel %vm1048_vm6, %v1067_v20, %v1038_v57 }
0x1898   : > { %v1095_v21 = vmul.f32 %v1075_v61, %v1068_v8 }
0x189a   : > { %1096 = vadd.xlane.f32.xlu1 %v1095_v21 }
0x18a8   : > { %v1085_v22 = vpop.xlane.xlu0 %1084 }
0x18a9   : > { %v1086_v23 = vsel %vm1078_vm7, %v1085_v22, %v1056_v1 }
0x18aa   : > { %v1109_v24 = vmul.f32 %v1424_v51, %v1086_v23 }
0x18ac   : > { %v1111_v25 = vsel %vm1110_vm8, %v1086_v23, %v1109_v24  ;;  %v1093_v26 = vpop.xlane.xlu0 %1092 }
0x18ad   : > { %1189 = vst [vmem:[%s1670_s24 + $0x8] sm:$0xff] %v1111_v25  ;;  %v1094_v27 = vsel %vm1078_vm7, %v1093_v26, %v1064_v5 }
0x18ae   : > { %v1121_v28 = vmul.f32 %v1477_v43, %v1094_v27 }
0x18b0   : > { %v1123_v29 = vsel %vm1122_vm9, %v1094_v27, %v1121_v28  ;;  %v1101_v30 = vpop.xlane.xlu0 %1100 }
0x18b1   : > { %1193 = vst [vmem:[%s1670_s24 + $0x18] sm:$0xff] %v1123_v29  ;;  %v1102_v31 = vsel %vm1078_vm7, %v1101_v30, %v1072_v59 }
0x18b2   : > { %v1133_v51 = vmul.f32 %v1601_v36, %v1102_v31 }
0x18b4   : > { %v1135_v49 = vsel %vm1134_vm10, %v1102_v31, %v1133_v51 }
0x18b5   : > { %1197 = vst [vmem:[%s1670_s24 + $0x28] sm:$0xff] %v1135_v49 }
0x191f   : > { %v1089_v32 = vpop.xlane.xlu1 %1088 }
0x1920   : > { %v1090_v43 = vsel %vm1078_vm7, %v1089_v32, %v1060_v15 }
0x1921   : > { %v1115_v41 = vmul.f32 %v1447_v6, %v1090_v43 }
0x1923   : > { %v1117_v33 = vsel %vm1116_vm11, %v1090_v43, %v1115_v41  ;;  %v1081_v35 = vpop.xlane.xlu1 %1080 }
0x1924   : > { %1191 = vst [vmem:[%s1670_s24 + $0x10] sm:$0xff] %v1117_v33  ;;  %v1082_v36 = vsel %vm1078_vm7, %v1081_v35, %v1052_v18 }
0x1925   : > { %v1104_v37 = vmul.f32 %v1404_v13, %v1082_v36 }
0x1927   : > { %v1106_v34 = vsel %vm1105_vm12, %v1082_v36, %v1104_v37  ;;  %v1097_v38 = vpop.xlane.xlu1 %1096 }
0x1928   : > { %1187 = vst [vmem:[%s1670_s24] sm:$0xff] %v1106_v34  ;;  %v1098_v39 = vsel %vm1078_vm7, %v1097_v38, %v1068_v8 }
0x1929   : > { %v1127_v6 = vmul.f32 %v1511_v0, %v1098_v39 }
0x192b   : > { %v1129_v4 = vsel %vm1128_vm13, %v1098_v39, %v1127_v6 }
0x192c   : > { %1195 = vst [vmem:[%s1670_s24 + $0x20] sm:$0xff] %v1129_v4 }
0x192d PF: > { %s7_s8 = sadd.s32 1, %s1346_s8   ;;  %s1711_s6 = smov %s1342_s7 }
0x192e   : > { %p4_p5 = scmp.ge.s32.totalorder %s7_s8, 4   ;;  %s1712_s7 = smov %s1714_s10 }
0x1930   :  { %6 = sbr.rel (!%p4_p5) target bundleno = 2 (0x2), region = 176 }

// kernel: custom-call.44
= control target key start
LH: loop header
LB: loop body
LE: loop exit
PB: predicated region body
PF: predicated region fallthrough
CT: control target
= control target key end

     0   :  { %s1439_s6 = smov 0   ;;  %s1441_s7 = smov 0   ;;  %s1927_s0 = inlined_call_operand.vmem [shape: f32[2,1,44,44], index: 0, kind: input, shape index: {}]   ;;  %s1928_s1 = inlined_call_operand.vmem [shape: f32[2,1,44,44], index: 1, kind: output, shape index: {}]  }
   0x1   :  { %s1443_s8 = smov 0  }
   0x2 LB: > { %s1343_s9 = sadd.s32 4294967295, %s1425_s8   ;;  %s33_s10 = sadd.s32 1, %s1421_s7  ;;  %s1425_s8 = sphi %s1443_s8, %s7_s8   ;;  %s1421_s7 = sphi %s1441_s7, %s1930_s7   ;;  %s1417_s6 = sphi %s1439_s6, %s1929_s6  }
   0x3   : > { %p35_p0 = scmp.ge.s32.totalorder %s33_s10, 2  ;;  %p1345_p1 = scmp.ge.s32.totalorder %s1425_s8, 2 }
   0x4   : > { %s49_s11 = sand.u32 (!%p1345_p1), 1, %s1425_s8   ;;  %s1362_s12 = smul.u32 (!%p1345_p1), 48, %s1421_s7 }
   0x5   : > { %s1932_s10 = smov (%p35_p0, %s33_s10), 0  ;;  %47 = sbr.rel (%p1345_p1) target bundleno = 12 (0xc), region = 16 }
   0x6   : > { %s1361_s13 = smul.u32 (!%p1345_p1), 48, %s49_s11  ;;  %s58_s16 = scalar_lea.vmem (!%p1345_p1), %s1927_s0, %s1362_s12 }
   0x7   : > { %v96_v0 = vld [vmem:[%s58_s16] sm:$0xff] (!%p1345_p1)  ;;  %v98_v1 = vld [vmem:[%s58_s16 + $0x8] sm:$0xff] (!%p1345_p1)  ;;  %v100_v2 = vld [vmem:[%s58_s16 + $0x10] sm:$0xff] (!%p1345_p1) }
   0x8   : > { %s51_s17 = scalar_lea.vmem (!%p1345_p1), [#allocation0], %s1361_s13  ;;  %v102_v3 = vld [vmem:[%s58_s16 + $0x18] sm:$0xff] (!%p1345_p1)  ;;  %v104_v4 = vld [vmem:[%s58_s16 + $0x20] sm:$0xff] (!%p1345_p1)  ;;  %v106_v5 = vld [vmem:[%s58_s16 + $0x28] sm:$0xff] (!%p1345_p1) }
   0x9   : > { %97 = vst [vmem:[%s51_s17] sm:$0xff] (!%p1345_p1), %v96_v0  ;;  %99 = vst [vmem:[%s51_s17 + $0x8] sm:$0xff] (!%p1345_p1), %v98_v1 }
   0xa   : > { %101 = vst [vmem:[%s51_s17 + $0x10] sm:$0xff] (!%p1345_p1), %v100_v2  ;;  %103 = vst [vmem:[%s51_s17 + $0x18] sm:$0xff] (!%p1345_p1), %v102_v3 }
   0xb   : > { %105 = vst [vmem:[%s51_s17 + $0x20] sm:$0xff] (!%p1345_p1), %v104_v4  ;;  %107 = vst [vmem:[%s51_s17 + $0x28] sm:$0xff] (!%p1345_p1), %v106_v5 }
   0xc PF: > { %p1347_p2 = scmp.ge.s32.totalorder %s1425_s8, 1  ;;  %p112_p3 = scmp.lt.s32.totalorder %s1425_s8, 3 }
   0xe   : > { %p113_p4 = pnand %p1347_p2, %p112_p3 }
  0x10   : > { %116 = sbr.rel (%p113_p4) target bundleno = 6435 (0x1923), region = 54 }
  0x17   : > { %s119_s18 = sand.u32 1, %s1343_s9   ;;  %v130_v6 = vlaneseq  ;;  %v1427_v16 = vmov -1.0   ;;  %v1428_v39 = vmov 0.0   ;;  %s1364_s21 = smul.u32 48, %s1417_s6 }
  0x18   : > { %s1363_s19 = smul.u32 48, %s119_s18 }
  0x19   : > { %v1466_v7 = vand.u32 127, %v130_v6  ;;  %v1468_v8 = vshrl.u32 %v130_v6, 7  ;;  %s1886_s24 = scalar_lea.vmem %s1928_s1, %s1364_s21 }
  0x1a   : > { %s1472_s20 = scalar_lea.vmem [#allocation0], %s1363_s19 }
  0x1b   : > { %vm132_vm0 = vcmp.lt.s32.totalorder %v1466_v7, 44  ;;  %v215_v9 = vadd.s32 40, %v1468_v8  ;;  %v1352_v10 = vld [vmem:[%s1472_s20 + $0x28] sm:$0xff]  ;;  %vm270_vm4 = vcmp.eq.s32.totalorder %v1466_v7, 43  ;;  %vm278_vm6 = vcmp.eq.s32.totalorder %v1466_v7, 42  ;;  %v1351_v28 = vld [vmem:[%s1472_s20 + $0x20] sm:$0xff] }
  0x1c   : > { %v271_v17 = vsel %vm270_vm4, 1.0, %v1427_v16  ;;  %v199_v23 = vadd.s32 32, %v1468_v8  ;;  %vm288_vm8 = vcmp.eq.s32.totalorder %v1466_v7, 41  ;;  %vm298_vm12 = vcmp.eq.s32.totalorder %v1466_v7, 40 }
  0x1d   : > { %vm216_vm1 = vcmp.eq.s32.totalorder %v215_v9, %v1466_v7  ;;  %vm221_vm2 = vcmp.le.s32.totalorder %v215_v9, %v1466_v7  ;;  %vm267_vm5 = vcmp.eq.s32.totalorder %v1466_v7, %v215_v9  ;;  %vm308_vm13 = vcmp.eq.s32.totalorder %v1466_v7, 39 }
  0x1e   : > { %v218_v11 = vsel %vm216_vm1, %v1352_v10, 0.0  ;;  %vm222_vm3 = vmand %vm221_vm2, %vm132_vm0  ;;  %v272_v18 = vsel %vm267_vm5, %v271_v17, 0.0  ;;  %vm200_vm7 = vcmp.eq.s32.totalorder %v199_v23, %v1466_v7  ;;  %vm205_vm9 = vcmp.le.s32.totalorder %v199_v23, %v1466_v7 }
  0x1f   : > { %v223_v12 = vsel %vm222_vm3, %v1352_v10, 0.0  ;;  %219 = vadd.xlane.f32.xlu0 %v218_v11  ;;  %v202_v29 = vsel %vm200_vm7, %v1351_v28, 0.0  ;;  %vm206_vm10 = vmand %vm205_vm9, %vm132_vm0  ;;  %vm260_vm11 = vcmp.eq.s32.totalorder %v1466_v7, %v199_v23  ;;  %vm322_vm14 = vcmp.eq.s32.totalorder %v1466_v7, 38 }
  0x20   : > { %v207_v36 = vsel %vm206_vm10, %v1351_v28, 0.0  ;;  %v261_v40 = vsel %vm260_vm11, -1.0, %v1428_v39  ;;  %vm336_vm15 = vcmp.eq.s32.totalorder %v1466_v7, 37  ;;  %vm350_vm1 = vcmp.eq.s32.totalorder %v1466_v7, 36 }
  0x21   : > { %vm364_vm2 = vcmp.eq.s32.totalorder %v1466_v7, 35  ;;  %vm378_vm3 = vcmp.eq.s32.totalorder %v1466_v7, 34  ;;  %v183_v28 = vadd.s32 24, %v1468_v8  ;;  %vm392_vm5 = vcmp.eq.s32.totalorder %v1466_v7, 33 }
  0x22   : > { %vm406_vm9 = vcmp.eq.s32.totalorder %v1466_v7, 32  ;;  %vm420_vm10 = vcmp.eq.s32.totalorder %v1466_v7, 31  ;;  %vm438_vm11 = vcmp.eq.s32.totalorder %v1466_v7, 30 }
  0x23   : > { %vm184_vm4 = vcmp.eq.s32.totalorder %v183_v28, %v1466_v7 }
  0xac   : > { %v1479_v13 = vpop.xlane.xlu0 %219 }
  0xad   : > { %1391 = vrcp.f32 %v1479_v13 }
  0xb7   : > { %v1482_v14 = vpop.eup %1391 }
  0xb8   : > { %v225_v15 = vmul.f32 %v1482_v14, %v223_v12 }
  0xba   : > { %226 = vst [vmem:[#allocation2 + $0x28] sm:$0xff] %v225_v15 }
  0xc1   : > { %v274_v19 = vld [vmem:[#allocation2 + $0x2a] ss:$0 sm:$0xff]  ;;  %v284_v22 = vld [vmem:[#allocation2 + $0x29] ss:$0 sm:$0xff]  ;;  %v294_v30 = vld [vmem:[#allocation2 + $0x28] ss:$0 sm:$0xff] }
  0xc2   : > { %v275_v20 = vxor.u32 2147483648, %v274_v19  ;;  %v285_v25 = vxor.u32 2147483648, %v284_v22  ;;  %v295_v32 = vxor.u32 2147483648, %v294_v30 }
  0xc4   : > { %v279_v21 = vmul.f32 %v275_v20, %v272_v18 }
  0xc6   : > { %280 = vadd.xlane.f32.xlu0 %v279_v21 }
 0x153   : > { %v281_v24 = vpop.xlane.xlu0 %280 }
 0x154   : > { %v282_v26 = vsel %vm278_vm6, %v281_v24, %v272_v18  ;;  %vm189_vm6 = vcmp.le.s32.totalorder %v183_v28, %v1466_v7 }
 0x155   : > { %v289_v27 = vmul.f32 %v285_v25, %v282_v26  ;;  %vm190_vm7 = vmand %vm189_vm6, %vm132_vm0  ;;  %vm546_vm6 = vcmp.eq.s32.totalorder %v1466_v7, 24 }
 0x157   : > { %290 = vadd.xlane.f32.xlu1 %v289_v27 }
 0x15b   : > { %203 = vadd.xlane.f32.xlu1 %v202_v29 }
 0x1e4   : > { %v291_v31 = vpop.xlane.xlu1 %290 }
 0x1e5   : > { %v292_v33 = vsel %vm288_vm8, %v291_v31, %v282_v26  ;;  %vm253_vm8 = vcmp.eq.s32.totalorder %v1466_v7, %v183_v28 }
 0x1e6   : > { %v299_v34 = vmul.f32 %v295_v32, %v292_v33 }
 0x1e8   : > { %300 = vadd.xlane.f32.xlu0 %v299_v34  ;;  %v1492_v35 = vpop.xlane.xlu1 %203 }
 0x1e9   : > { %1393 = vrcp.f32 %v1492_v35 }
 0x1f3   : > { %v1498_v37 = vpop.eup %1393 }
 0x1f4   : > { %v209_v38 = vmul.f32 %v1498_v37, %v207_v36 }
 0x1f6   : > { %210 = vst [vmem:[#allocation2 + $0x20] sm:$0xff] %v209_v38 }
 0x1fd   : > { %v304_v41 = vld [vmem:[#allocation2 + $0x27] ss:$0 sm:$0xff]  ;;  %v318_v47 = vld [vmem:[#allocation2 + $0x26] ss:$0 sm:$0xff]  ;;  %v332_v55 = vld [vmem:[#allocation2 + $0x25] ss:$0 sm:$0xff] }
 0x1fe   : > { %v305_v42 = vxor.u32 2147483648, %v304_v41  ;;  %v319_v49 = vxor.u32 2147483648, %v318_v47  ;;  %v333_v57 = vxor.u32 2147483648, %v332_v55  ;;  %v346_v63 = vld [vmem:[#allocation2 + $0x24] ss:$0 sm:$0xff] }
 0x1ff   : > { %v347_v1 = vxor.u32 2147483648, %v346_v63  ;;  %v360_v9 = vld [vmem:[#allocation2 + $0x23] ss:$0 sm:$0xff]  ;;  %v374_v19 = vld [vmem:[#allocation2 + $0x22] ss:$0 sm:$0xff] }
 0x200   : > { %v309_v43 = vmul.f32 %v305_v42, %v261_v40  ;;  %v361_v11 = vxor.u32 2147483648, %v360_v9  ;;  %v375_v21 = vxor.u32 2147483648, %v374_v19  ;;  %v388_v27 = vld [vmem:[#allocation2 + $0x21] ss:$0 sm:$0xff]  ;;  %v402_v41 = vld [vmem:[#allocation2 + $0x20] ss:$0 sm:$0xff] }
 0x201   : > { %v389_v30 = vxor.u32 2147483648, %v388_v27 }
 0x202   : > { %310 = vadd.xlane.f32.xlu1 %v309_v43  ;;  %v403_v43 = vxor.u32 2147483648, %v402_v41 }
 0x275   : > { %v301_v44 = vpop.xlane.xlu0 %300 }
 0x276   : > { %v302_v45 = vsel %vm298_vm12, %v301_v44, %v292_v33  ;;  %v1350_v33 = vld [vmem:[%s1472_s20 + $0x18] sm:$0xff]  ;;  %vm456_vm12 = vcmp.eq.s32.totalorder %v1466_v7, 29 }
 0x277   : > { %v313_v46 = vmul.f32 %v305_v42, %v302_v45  ;;  %v186_v34 = vsel %vm184_vm4, %v1350_v33, 0.0  ;;  %v191_v47 = vsel %vm190_vm7, %v1350_v33, 0.0  ;;  %vm564_vm7 = vcmp.eq.s32.totalorder %v1466_v7, 23 }
 0x279   : > { %314 = vadd.xlane.f32.xlu0 %v313_v46 }
 0x28f   : > { %v311_v48 = vpop.xlane.xlu1 %310 }
 0x290   : > { %v312_v50 = vsel %vm308_vm13, %v311_v48, %v261_v40 }
 0x291   : > { %v323_v51 = vmul.f32 %v319_v49, %v312_v50 }
 0x293   : > { %324 = vadd.xlane.f32.xlu1 %v323_v51 }
 0x306   : > { %v315_v52 = vpop.xlane.xlu0 %314 }
 0x307   : > { %v316_v53 = vsel %vm308_vm13, %v315_v52, %v302_v45  ;;  %vm474_vm13 = vcmp.eq.s32.totalorder %v1466_v7, 28 }
 0x308   : > { %v327_v54 = vmul.f32 %v319_v49, %v316_v53 }
 0x30a   : > { %328 = vadd.xlane.f32.xlu0 %v327_v54 }
 0x320   : > { %v325_v56 = vpop.xlane.xlu1 %324 }
 0x321   : > { %v326_v58 = vsel %vm322_vm14, %v325_v56, %v312_v50  ;;  %v254_v50 = vsel %vm253_vm8, -1.0, %v1428_v39  ;;  %vm586_vm8 = vcmp.eq.s32.totalorder %v1466_v7, 22 }
 0x322   : > { %v337_v59 = vmul.f32 %v333_v57, %v326_v58 }
 0x324   : > { %338 = vadd.xlane.f32.xlu1 %v337_v59 }
 0x397   : > { %v329_v60 = vpop.xlane.xlu0 %328 }
 0x398   : > { %v330_v61 = vsel %vm322_vm14, %v329_v60, %v316_v53  ;;  %vm492_vm14 = vcmp.eq.s32.totalorder %v1466_v7, 27 }
 0x399   : > { %v341_v62 = vmul.f32 %v333_v57, %v330_v61 }
 0x39b   : > { %342 = vadd.xlane.f32.xlu0 %v341_v62 }
 0x3b1   : > { %v339_v0 = vpop.xlane.xlu1 %338 }
 0x3b2   : > { %v340_v2 = vsel %vm336_vm15, %v339_v0, %v326_v58 }
 0x3b3   : > { %v351_v3 = vmul.f32 %v347_v1, %v340_v2 }
 0x3b5   : > { %352 = vadd.xlane.f32.xlu1 %v351_v3 }
 0x428   : > { %v343_v4 = vpop.xlane.xlu0 %342 }
 0x429   : > { %v344_v5 = vsel %vm336_vm15, %v343_v4, %v330_v61  ;;  %vm510_vm15 = vcmp.eq.s32.totalorder %v1466_v7, 26 }
 0x42a   : > { %v355_v6 = vmul.f32 %v347_v1, %v344_v5 }
 0x42c   : > { %356 = vadd.xlane.f32.xlu0 %v355_v6 }
 0x442   : > { %v353_v10 = vpop.xlane.xlu1 %352 }
 0x443   : > { %v354_v12 = vsel %vm350_vm1, %v353_v10, %v340_v2 }
 0x444   : > { %v365_v15 = vmul.f32 %v361_v11, %v354_v12 }
 0x446   : > { %366 = vadd.xlane.f32.xlu1 %v365_v15 }
 0x4b9   : > { %v357_v16 = vpop.xlane.xlu0 %356 }
 0x4ba   : > { %v358_v17 = vsel %vm350_vm1, %v357_v16, %v344_v5 }
 0x4bb   : > { %v369_v18 = vmul.f32 %v361_v11, %v358_v17 }
 0x4bd   : > { %370 = vadd.xlane.f32.xlu0 %v369_v18 }
 0x4d3   : > { %v367_v20 = vpop.xlane.xlu1 %366 }
 0x4d4   : > { %v368_v22 = vsel %vm364_vm2, %v367_v20, %v354_v12 }
 0x4d5   : > { %v379_v23 = vmul.f32 %v375_v21, %v368_v22 }
 0x4d7   : > { %380 = vadd.xlane.f32.xlu1 %v379_v23 }
 0x54a   : > { %v371_v24 = vpop.xlane.xlu0 %370 }
 0x54b   : > { %v372_v25 = vsel %vm364_vm2, %v371_v24, %v358_v17  ;;  %vm528_vm2 = vcmp.eq.s32.totalorder %v1466_v7, 25 }
 0x54c   : > { %v383_v26 = vmul.f32 %v375_v21, %v372_v25 }
 0x54e   : > { %384 = vadd.xlane.f32.xlu0 %v383_v26 }
 0x564   : > { %v381_v29 = vpop.xlane.xlu1 %380 }
 0x565   : > { %v382_v31 = vsel %vm378_vm3, %v381_v29, %v368_v22 }
 0x566   : > { %v393_v32 = vmul.f32 %v389_v30, %v382_v31 }
 0x568   : > { %394 = vadd.xlane.f32.xlu1 %v393_v32 }
 0x56c   : > { %187 = vadd.xlane.f32.xlu1 %v186_v34 }
 0x5db   : > { %v385_v36 = vpop.xlane.xlu0 %384 }
 0x5dc   : > { %v386_v38 = vsel %vm378_vm3, %v385_v36, %v372_v25 }
 0x5dd   : > { %v397_v40 = vmul.f32 %v389_v30, %v386_v38 }
 0x5df   : > { %398 = vadd.xlane.f32.xlu0 %v397_v40 }
 0x5f5   : > { %v395_v42 = vpop.xlane.xlu1 %394 }
 0x5f6   : > { %v396_v44 = vsel %vm392_vm5, %v395_v42, %v382_v31 }
 0x5f7   : > { %v407_v45 = vmul.f32 %v403_v43, %v396_v44 }
 0x5f9   : > { %408 = vadd.xlane.f32.xlu0 %v407_v45  ;;  %v1516_v46 = vpop.xlane.xlu1 %187 }
 0x5fa   : > { %1395 = vrcp.f32 %v1516_v46 }
 0x604   : > { %v1522_v48 = vpop.eup %1395 }
 0x605   : > { %v193_v49 = vmul.f32 %v1522_v48, %v191_v47 }
 0x607   : > { %194 = vst [vmem:[#allocation2 + $0x18] sm:$0xff] %v193_v49 }
 0x60e   : > { %v416_v51 = vld [vmem:[#allocation2 + $0x1f] ss:$0 sm:$0xff]  ;;  %v434_v60 = vld [vmem:[#allocation2 + $0x1e] ss:$0 sm:$0xff]  ;;  %v452_v9 = vld [vmem:[#allocation2 + $0x1d] ss:$0 sm:$0xff] }
 0x60f   : > { %v417_v52 = vxor.u32 2147483648, %v416_v51  ;;  %v435_v61 = vxor.u32 2147483648, %v434_v60  ;;  %v453_v11 = vxor.u32 2147483648, %v452_v9  ;;  %v470_v22 = vld [vmem:[#allocation2 + $0x1c] ss:$0 sm:$0xff] }
 0x610   : > { %v471_v24 = vxor.u32 2147483648, %v470_v22  ;;  %v488_v33 = vld [vmem:[#allocation2 + $0x1b] ss:$0 sm:$0xff]  ;;  %v506_v49 = vld [vmem:[#allocation2 + $0x1a] ss:$0 sm:$0xff] }
 0x611   : > { %v421_v53 = vmul.f32 %v417_v52, %v254_v50  ;;  %v489_v36 = vxor.u32 2147483648, %v488_v33  ;;  %v507_v51 = vxor.u32 2147483648, %v506_v49  ;;  %v524_v60 = vld [vmem:[#allocation2 + $0x19] ss:$0 sm:$0xff] }
 0x613   : > { %422 = vadd.xlane.f32.xlu0 %v421_v53 }
 0x66c   : > { %v399_v54 = vpop.xlane.xlu0 %398 }
 0x66d   : > { %v400_v55 = vsel %vm392_vm5, %v399_v54, %v386_v38 }
 0x66e   : > { %v411_v56 = vmul.f32 %v403_v43, %v400_v55 }
 0x670   : > { %412 = vadd.xlane.f32.xlu1 %v411_v56 }
 0x686   : > { %v409_v57 = vpop.xlane.xlu0 %408 }
 0x687   : > { %v410_v58 = vsel %vm406_vm9, %v409_v57, %v396_v44 }
 0x688   : > { %v425_v59 = vmul.f32 %v417_v52, %v410_v58 }
 0x68a   : > { %426 = vadd.xlane.f32.xlu1 %v425_v59 }
 0x6a0   : > { %v423_v62 = vpop.xlane.xlu0 %422 }
 0x6a1   : > { %v424_v63 = vsel %vm420_vm10, %v423_v62, %v254_v50  ;;  %v525_v62 = vxor.u32 2147483648, %v524_v60 }
 0x6a2   : > { %v439_v0 = vmul.f32 %v435_v61, %v424_v63 }
 0x6a4   : > { %440 = vadd.xlane.f32.xlu1 %v439_v0 }
 0x6fd   : > { %v413_v1 = vpop.xlane.xlu1 %412 }
 0x6fe   : > { %v414_v2 = vsel %vm406_vm9, %v413_v1, %v400_v55  ;;  %vm608_vm9 = vcmp.eq.s32.totalorder %v1466_v7, 21 }
 0x6ff   : > { %v429_v3 = vmul.f32 %v417_v52, %v414_v2 }
 0x701   : > { %430 = vadd.xlane.f32.xlu0 %v429_v3 }
 0x717   : > { %v427_v4 = vpop.xlane.xlu1 %426 }
 0x718   : > { %v428_v5 = vsel %vm420_vm10, %v427_v4, %v410_v58  ;;  %v167_v4 = vadd.s32 16, %v1468_v8 }
 0x719   : > { %v443_v6 = vmul.f32 %v435_v61, %v428_v5 }
 0x71a   : > { %vm168_vm1 = vcmp.eq.s32.totalorder %v167_v4, %v1466_v7  ;;  %vm173_vm3 = vcmp.le.s32.totalorder %v167_v4, %v1466_v7  ;;  %vm246_vm5 = vcmp.eq.s32.totalorder %v1466_v7, %v167_v4 }
 0x71b   : > { %444 = vadd.xlane.f32.xlu0 %v443_v6  ;;  %vm174_vm4 = vmand %vm173_vm3, %vm132_vm0  ;;  %vm718_vm3 = vcmp.eq.s32.totalorder %v1466_v7, 16 }
 0x731   : > { %v441_v10 = vpop.xlane.xlu1 %440 }
 0x732   : > { %v442_v12 = vsel %vm438_vm11, %v441_v10, %v424_v63  ;;  %v1349_v10 = vld [vmem:[%s1472_s20 + $0x10] sm:$0xff] }
 0x733   : > { %v457_v15 = vmul.f32 %v453_v11, %v442_v12 }
 0x735   : > { %458 = vadd.xlane.f32.xlu0 %v457_v15 }
 0x78e   : > { %v431_v16 = vpop.xlane.xlu0 %430 }
 0x78f   : > { %v432_v17 = vsel %vm420_vm10, %v431_v16, %v414_v2  ;;  %vm630_vm10 = vcmp.eq.s32.totalorder %v1466_v7, 20 }
 0x790   : > { %v447_v18 = vmul.f32 %v435_v61, %v432_v17 }
 0x792   : > { %448 = vadd.xlane.f32.xlu1 %v447_v18 }
 0x7a8   : > { %v445_v19 = vpop.xlane.xlu0 %444 }
 0x7a9   : > { %v446_v20 = vsel %vm438_vm11, %v445_v19, %v428_v5 }
 0x7aa   : > { %v461_v21 = vmul.f32 %v453_v11, %v446_v20 }
 0x7ac   : > { %462 = vadd.xlane.f32.xlu1 %v461_v21 }
 0x7c2   : > { %v459_v23 = vpop.xlane.xlu0 %458 }
 0x7c3   : > { %v460_v25 = vsel %vm456_vm12, %v459_v23, %v442_v12 }
 0x7c4   : > { %v475_v26 = vmul.f32 %v471_v24, %v460_v25 }
 0x7c6   : > { %476 = vadd.xlane.f32.xlu1 %v475_v26  ;;  %v175_v26 = vsel %vm174_vm4, %v1349_v10, 0.0  ;;  %vm740_vm4 = vcmp.eq.s32.totalorder %v1466_v7, 15 }
 0x81f   : > { %v449_v27 = vpop.xlane.xlu1 %448 }
 0x820   : > { %v450_v28 = vsel %vm438_vm11, %v449_v27, %v432_v17  ;;  %v542_v17 = vld [vmem:[#allocation2 + $0x18] ss:$0 sm:$0xff]  ;;  %vm652_vm11 = vcmp.eq.s32.totalorder %v1466_v7, 19 }
 0x821   : > { %v465_v29 = vmul.f32 %v453_v11, %v450_v28  ;;  %v170_v11 = vsel %vm168_vm1, %v1349_v10, 0.0 }
 0x823   : > { %466 = vadd.xlane.f32.xlu0 %v465_v29  ;;  %v247_v29 = vsel %vm246_vm5, -1.0, %v1428_v39  ;;  %vm766_vm5 = vcmp.eq.s32.totalorder %v1466_v7, 14 }
 0x839   : > { %v463_v30 = vpop.xlane.xlu1 %462 }
 0x83a   : > { %v464_v31 = vsel %vm456_vm12, %v463_v30, %v446_v20  ;;  %v543_v20 = vxor.u32 2147483648, %v542_v17 }
 0x83b   : > { %v479_v32 = vmul.f32 %v471_v24, %v464_v31 }
 0x83d   : > { %480 = vadd.xlane.f32.xlu0 %v479_v32 }
 0x853   : > { %v477_v34 = vpop.xlane.xlu1 %476 }
 0x854   : > { %v478_v38 = vsel %vm474_vm13, %v477_v34, %v460_v25 }
 0x855   : > { %v493_v40 = vmul.f32 %v489_v36, %v478_v38 }
 0x857   : > { %494 = vadd.xlane.f32.xlu0 %v493_v40 }
 0x8b0   : > { %v467_v41 = vpop.xlane.xlu0 %466 }
 0x8b1   : > { %v468_v42 = vsel %vm456_vm12, %v467_v41, %v450_v28  ;;  %vm674_vm12 = vcmp.eq.s32.totalorder %v1466_v7, 18 }
 0x8b2   : > { %v483_v43 = vmul.f32 %v471_v24, %v468_v42 }
 0x8b4   : > { %484 = vadd.xlane.f32.xlu1 %v483_v43 }
 0x8ca   : > { %v481_v44 = vpop.xlane.xlu0 %480 }
 0x8cb   : > { %v482_v45 = vsel %vm474_vm13, %v481_v44, %v464_v31 }
 0x8cc   : > { %v497_v47 = vmul.f32 %v489_v36, %v482_v45 }
 0x8ce   : > { %498 = vadd.xlane.f32.xlu1 %v497_v47 }
 0x8e4   : > { %v495_v50 = vpop.xlane.xlu0 %494 }
 0x8e5   : > { %v496_v52 = vsel %vm492_vm14, %v495_v50, %v478_v38 }
 0x8e6   : > { %v511_v53 = vmul.f32 %v507_v51, %v496_v52 }
 0x8e8   : > { %512 = vadd.xlane.f32.xlu1 %v511_v53 }
 0x941   : > { %v485_v54 = vpop.xlane.xlu1 %484 }
 0x942   : > { %v486_v55 = vsel %vm474_vm13, %v485_v54, %v468_v42 }
 0x943   : > { %v501_v56 = vmul.f32 %v489_v36, %v486_v55 }
 0x945   : > { %502 = vadd.xlane.f32.xlu0 %v501_v56 }
 0x95b   : > { %v499_v57 = vpop.xlane.xlu1 %498 }
 0x95c   : > { %v500_v58 = vsel %vm492_vm14, %v499_v57, %v482_v45 }
 0x95d   : > { %v515_v59 = vmul.f32 %v507_v51, %v500_v58 }
 0x95f   : > { %516 = vadd.xlane.f32.xlu0 %v515_v59 }
 0x975   : > { %v513_v61 = vpop.xlane.xlu1 %512 }
 0x976   : > { %v514_v63 = vsel %vm510_vm15, %v513_v61, %v496_v52 }
 0x977   : > { %v529_v0 = vmul.f32 %v525_v62, %v514_v63 }
 0x979   : > { %530 = vadd.xlane.f32.xlu0 %v529_v0 }
 0x9d2   : > { %v503_v1 = vpop.xlane.xlu0 %502 }
 0x9d3   : > { %v504_v2 = vsel %vm492_vm14, %v503_v1, %v486_v55  ;;  %vm696_vm14 = vcmp.eq.s32.totalorder %v1466_v7, 17 }
 0x9d4   : > { %v519_v3 = vmul.f32 %v507_v51, %v504_v2 }
 0x9d6   : > { %520 = vadd.xlane.f32.xlu1 %v519_v3 }
 0x9ec   : > { %v517_v5 = vpop.xlane.xlu0 %516 }
 0x9ed   : > { %v518_v6 = vsel %vm510_vm15, %v517_v5, %v500_v58 }
 0x9ee   : > { %v533_v9 = vmul.f32 %v525_v62, %v518_v6 }
 0x9f0   : > { %534 = vadd.xlane.f32.xlu1 %v533_v9 }
 0x9f4   : > { %171 = vadd.xlane.f32.xlu1 %v170_v11 }
 0xa06   : > { %v531_v12 = vpop.xlane.xlu0 %530 }
 0xa07   : > { %v532_v19 = vsel %vm528_vm2, %v531_v12, %v514_v63 }
 0xa08   : > { %v547_v21 = vmul.f32 %v543_v20, %v532_v19 }
 0xa63   : > { %v521_v15 = vpop.xlane.xlu1 %520 }
 0xa64   : > { %v522_v16 = vsel %vm510_vm15, %v521_v15, %v504_v2 }
 0xa65   : > { %v537_v18 = vmul.f32 %v525_v62, %v522_v16 }
 0xa67   : > { %538 = vadd.xlane.f32.xlu0 %v537_v18 }
 0xa6b   : > { %548 = vadd.xlane.f32.xlu0 %v547_v21 }
 0xa7d   : > { %v535_v22 = vpop.xlane.xlu1 %534 }
 0xa7e   : > { %v536_v23 = vsel %vm528_vm2, %v535_v22, %v518_v6 }
 0xa7f   : > { %v551_v24 = vmul.f32 %v543_v20, %v536_v23 }
 0xa81   : > { %552 = vadd.xlane.f32.xlu1 %v551_v24  ;;  %v1580_v25 = vpop.xlane.xlu1 %171 }
 0xa82   : > { %1397 = vrcp.f32 %v1580_v25 }
 0xa8c   : > { %v1586_v27 = vpop.eup %1397 }
 0xa8d   : > { %v177_v28 = vmul.f32 %v1586_v27, %v175_v26 }
 0xa8f   : > { %178 = vst [vmem:[#allocation2 + $0x10] sm:$0xff] %v177_v28 }
 0xa96   : > { %v560_v30 = vld [vmem:[#allocation2 + $0x17] ss:$0 sm:$0xff]  ;;  %v582_v45 = vld [vmem:[#allocation2 + $0x16] ss:$0 sm:$0xff]  ;;  %v604_v61 = vld [vmem:[#allocation2 + $0x15] ss:$0 sm:$0xff] }
 0xa97   : > { %v561_v31 = vxor.u32 2147483648, %v560_v30  ;;  %v583_v47 = vxor.u32 2147483648, %v582_v45  ;;  %v605_v63 = vxor.u32 2147483648, %v604_v61  ;;  %v626_v15 = vld [vmem:[#allocation2 + $0x14] ss:$0 sm:$0xff] }
 0xa98   : > { %v627_v17 = vxor.u32 2147483648, %v626_v15  ;;  %v151_v15 = vadd.s32 8, %v1468_v8 }
 0xa99   : > { %v565_v32 = vmul.f32 %v561_v31, %v247_v29 }
 0xa9a   : > { %vm152_vm13 = vcmp.eq.s32.totalorder %v151_v15, %v1466_v7  ;;  %vm157_vm15 = vcmp.le.s32.totalorder %v151_v15, %v1466_v7 }
 0xa9b   : > { %566 = vadd.xlane.f32.xlu1 %v565_v32  ;;  %vm158_vm1 = vmand %vm157_vm15, %vm132_vm0  ;;  %vm948_vm15 = vcmp.eq.s32.totalorder %v1466_v7, 7 }
 0xaf4   : > { %v539_v33 = vpop.xlane.xlu0 %538 }
 0xaf5   : > { %v540_v34 = vsel %vm528_vm2, %v539_v33, %v522_v16  ;;  %vm239_vm2 = vcmp.eq.s32.totalorder %v1466_v7, %v151_v15 }
 0xaf6   : > { %v555_v36 = vmul.f32 %v543_v20, %v540_v34 }
 0xaf8   : > { %556 = vadd.xlane.f32.xlu0 %v555_v36  ;;  %v549_v38 = vpop.xlane.xlu0 %548 }
 0xaf9   : > { %v550_v40 = vsel %vm546_vm6, %v549_v38, %v532_v19 }
 0xafa   : > { %v569_v41 = vmul.f32 %v561_v31, %v550_v40 }
 0xafc   : > { %570 = vadd.xlane.f32.xlu0 %v569_v41 }
 0xb0e   : > { %v553_v42 = vpop.xlane.xlu1 %552 }
 0xb0f   : > { %v554_v43 = vsel %vm546_vm6, %v553_v42, %v536_v23 }
 0xb10   : > { %v573_v44 = vmul.f32 %v561_v31, %v554_v43 }
 0xb12   : > { %574 = vadd.xlane.f32.xlu1 %v573_v44 }
 0xb28   : > { %v567_v49 = vpop.xlane.xlu1 %566 }
 0xb29   : > { %v568_v50 = vsel %vm564_vm7, %v567_v49, %v247_v29 }
 0xb2a   : > { %v587_v51 = vmul.f32 %v583_v47, %v568_v50 }
 0xb2c   : > { %588 = vadd.xlane.f32.xlu1 %v587_v51 }
 0xb85   : > { %v557_v52 = vpop.xlane.xlu0 %556 }
 0xb86   : > { %v558_v53 = vsel %vm546_vm6, %v557_v52, %v540_v34  ;;  %vm792_vm6 = vcmp.eq.s32.totalorder %v1466_v7, 13 }
 0xb87   : > { %v577_v54 = vmul.f32 %v561_v31, %v558_v53  ;;  %v648_v31 = vld [vmem:[#allocation2 + $0x13] ss:$0 sm:$0xff] }
 0xb88   : > { %v649_v33 = vxor.u32 2147483648, %v648_v31 }
 0xb89   : > { %578 = vadd.xlane.f32.xlu0 %v577_v54  ;;  %v571_v55 = vpop.xlane.xlu0 %570 }
 0xb8a   : > { %v572_v56 = vsel %vm564_vm7, %v571_v55, %v550_v40 }
 0xb8b   : > { %v591_v57 = vmul.f32 %v583_v47, %v572_v56 }
 0xb8d   : > { %592 = vadd.xlane.f32.xlu0 %v591_v57 }
 0xb9f   : > { %v575_v58 = vpop.xlane.xlu1 %574 }
 0xba0   : > { %v576_v59 = vsel %vm564_vm7, %v575_v58, %v554_v43 }
 0xba1   : > { %v595_v60 = vmul.f32 %v583_v47, %v576_v59 }
 0xba3   : > { %596 = vadd.xlane.f32.xlu1 %v595_v60 }
 0xbb9   : > { %v589_v62 = vpop.xlane.xlu1 %588 }
 0xbba   : > { %v590_v0 = vsel %vm586_vm8, %v589_v62, %v568_v50  ;;  %v670_v50 = vld [vmem:[#allocation2 + $0x12] ss:$0 sm:$0xff] }
 0xbbb   : > { %v609_v1 = vmul.f32 %v605_v63, %v590_v0  ;;  %v671_v52 = vxor.u32 2147483648, %v670_v50 }
 0xbbd   : > { %610 = vadd.xlane.f32.xlu1 %v609_v1 }
 0xc16   : > { %v579_v2 = vpop.xlane.xlu0 %578 }
 0xc17   : > { %v580_v3 = vsel %vm564_vm7, %v579_v2, %v558_v53  ;;  %vm818_vm7 = vcmp.eq.s32.totalorder %v1466_v7, 12 }
 0xc18   : > { %v599_v4 = vmul.f32 %v583_v47, %v580_v3 }
 0xc1a   : > { %600 = vadd.xlane.f32.xlu0 %v599_v4  ;;  %v593_v5 = vpop.xlane.xlu0 %592 }
 0xc1b   : > { %v594_v6 = vsel %vm586_vm8, %v593_v5, %v572_v56 }
 0xc1c   : > { %v613_v9 = vmul.f32 %v605_v63, %v594_v6 }
 0xc1e   : > { %614 = vadd.xlane.f32.xlu0 %v613_v9 }
 0xc30   : > { %v597_v10 = vpop.xlane.xlu1 %596 }
 0xc31   : > { %v598_v11 = vsel %vm586_vm8, %v597_v10, %v576_v59 }
 0xc32   : > { %v617_v12 = vmul.f32 %v605_v63, %v598_v11 }
 0xc34   : > { %618 = vadd.xlane.f32.xlu1 %v617_v12 }
 0xc4a   : > { %v611_v16 = vpop.xlane.xlu1 %610 }
 0xc4b   : > { %v612_v18 = vsel %vm608_vm9, %v611_v16, %v590_v0  ;;  %v692_v0 = vld [vmem:[#allocation2 + $0x11] ss:$0 sm:$0xff] }
 0xc4c   : > { %v631_v19 = vmul.f32 %v627_v17, %v612_v18  ;;  %v693_v2 = vxor.u32 2147483648, %v692_v0 }
 0xc4e   : > { %632 = vadd.xlane.f32.xlu1 %v631_v19  ;;  %v1348_v19 = vld [vmem:[%s1472_s20 + $0x8] sm:$0xff] }
 0xca7   : > { %v601_v20 = vpop.xlane.xlu0 %600 }
 0xca8   : > { %v602_v21 = vsel %vm586_vm8, %v601_v20, %v580_v3  ;;  %v154_v20 = vsel %vm152_vm13, %v1348_v19, 0.0  ;;  %vm844_vm8 = vcmp.eq.s32.totalorder %v1466_v7, 11 }
 0xca9   : > { %v621_v22 = vmul.f32 %v605_v63, %v602_v21 }
 0xcab   : > { %622 = vadd.xlane.f32.xlu0 %v621_v22  ;;  %v615_v23 = vpop.xlane.xlu0 %614 }
 0xcac   : > { %v616_v24 = vsel %vm608_vm9, %v615_v23, %v594_v6 }
 0xcad   : > { %v635_v26 = vmul.f32 %v627_v17, %v616_v24 }
 0xcaf   : > { %636 = vadd.xlane.f32.xlu0 %v635_v26 }
 0xcc1   : > { %v619_v28 = vpop.xlane.xlu1 %618 }
 0xcc2   : > { %v620_v29 = vsel %vm608_vm9, %v619_v28, %v598_v11 }
 0xcc3   : > { %v639_v30 = vmul.f32 %v627_v17, %v620_v29 }
 0xcc5   : > { %640 = vadd.xlane.f32.xlu1 %v639_v30 }
 0xcdb   : > { %v633_v32 = vpop.xlane.xlu1 %632 }
 0xcdc   : > { %v634_v34 = vsel %vm630_vm10, %v633_v32, %v612_v18 }
 0xcdd   : > { %v653_v36 = vmul.f32 %v649_v33, %v634_v34 }
 0xcdf   : > { %654 = vadd.xlane.f32.xlu1 %v653_v36 }
 0xd38   : > { %v623_v38 = vpop.xlane.xlu0 %622 }
 0xd39   : > { %v624_v40 = vsel %vm608_vm9, %v623_v38, %v602_v21  ;;  %vm870_vm9 = vcmp.eq.s32.totalorder %v1466_v7, 10 }
 0xd3a   : > { %v643_v41 = vmul.f32 %v627_v17, %v624_v40 }
 0xd3c   : > { %644 = vadd.xlane.f32.xlu0 %v643_v41  ;;  %v637_v42 = vpop.xlane.xlu0 %636  ;;  %v159_v41 = vsel %vm158_vm1, %v1348_v19, 0.0  ;;  %vm978_vm1 = vcmp.eq.s32.totalorder %v1466_v7, 6 }
 0xd3d   : > { %v638_v43 = vsel %vm630_vm10, %v637_v42, %v616_v24  ;;  %v714_v24 = vld [vmem:[#allocation2 + $0x10] ss:$0 sm:$0xff] }
 0xd3e   : > { %v657_v44 = vmul.f32 %v649_v33, %v638_v43  ;;  %v715_v30 = vxor.u32 2147483648, %v714_v24 }
 0xd40   : > { %658 = vadd.xlane.f32.xlu0 %v657_v44  ;;  %v240_v44 = vsel %vm239_vm2, -1.0, %v1428_v39  ;;  %vm1008_vm2 = vcmp.eq.s32.totalorder %v1466_v7, 5 }
 0xd52   : > { %v641_v45 = vpop.xlane.xlu1 %640 }
 0xd53   : > { %v642_v47 = vsel %vm630_vm10, %v641_v45, %v620_v29 }
 0xd54   : > { %v661_v49 = vmul.f32 %v649_v33, %v642_v47 }
 0xd56   : > { %662 = vadd.xlane.f32.xlu1 %v661_v49 }
 0xd6c   : > { %v655_v51 = vpop.xlane.xlu1 %654 }
 0xd6d   : > { %v656_v53 = vsel %vm652_vm11, %v655_v51, %v634_v34 }
 0xd6e   : > { %v675_v54 = vmul.f32 %v671_v52, %v656_v53 }
 0xd70   : > { %676 = vadd.xlane.f32.xlu1 %v675_v54 }
 0xdc9   : > { %v645_v55 = vpop.xlane.xlu0 %644 }
 0xdca   : > { %v646_v56 = vsel %vm630_vm10, %v645_v55, %v624_v40  ;;  %vm136_vm10 = vcmp.eq.s32.totalorder %v1468_v8, %v1466_v7 }
 0xdcb   : > { %v665_v57 = vmul.f32 %v649_v33, %v646_v56 }
 0xdcd   : > { %666 = vadd.xlane.f32.xlu0 %v665_v57  ;;  %v659_v58 = vpop.xlane.xlu0 %658 }
 0xdce   : > { %v660_v59 = vsel %vm652_vm11, %v659_v58, %v638_v43 }
 0xdcf   : > { %v679_v60 = vmul.f32 %v671_v52, %v660_v59 }
 0xdd1   : > { %680 = vadd.xlane.f32.xlu0 %v679_v60 }
 0xde3   : > { %v663_v61 = vpop.xlane.xlu1 %662 }
 0xde4   : > { %v664_v62 = vsel %vm652_vm11, %v663_v61, %v642_v47 }
 0xde5   : > { %v683_v63 = vmul.f32 %v671_v52, %v664_v62 }
 0xde7   : > { %684 = vadd.xlane.f32.xlu1 %v683_v63 }
 0xdfd   : > { %v677_v1 = vpop.xlane.xlu1 %676 }
 0xdfe   : > { %v678_v3 = vsel %vm674_vm12, %v677_v1, %v656_v53 }
 0xdff   : > { %v697_v4 = vmul.f32 %v693_v2, %v678_v3 }
 0xe01   : > { %698 = vadd.xlane.f32.xlu1 %v697_v4 }
 0xe5a   : > { %v667_v5 = vpop.xlane.xlu0 %666 }
 0xe5b   : > { %v668_v6 = vsel %vm652_vm11, %v667_v5, %v646_v56  ;;  %vm896_vm11 = vcmp.eq.s32.totalorder %v1466_v7, 9 }
 0xe5c   : > { %v687_v9 = vmul.f32 %v671_v52, %v668_v6 }
 0xe5e   : > { %688 = vadd.xlane.f32.xlu0 %v687_v9  ;;  %v681_v10 = vpop.xlane.xlu0 %680 }
 0xe5f   : > { %v682_v11 = vsel %vm674_vm12, %v681_v10, %v660_v59 }
 0xe60   : > { %v701_v12 = vmul.f32 %v693_v2, %v682_v11 }
 0xe62   : > { %702 = vadd.xlane.f32.xlu0 %v701_v12 }
 0xe74   : > { %v685_v16 = vpop.xlane.xlu1 %684 }
 0xe75   : > { %v686_v17 = vsel %vm674_vm12, %v685_v16, %v664_v62 }
 0xe76   : > { %v705_v18 = vmul.f32 %v693_v2, %v686_v17 }
 0xe78   : > { %706 = vadd.xlane.f32.xlu1 %v705_v18 }
 0xe7c   : > { %155 = vadd.xlane.f32.xlu1 %v154_v20 }
 0xe8e   : > { %v699_v21 = vpop.xlane.xlu1 %698 }
 0xe8f   : > { %v700_v28 = vsel %vm696_vm14, %v699_v21, %v678_v3 }
 0xe90   : > { %v719_v32 = vmul.f32 %v715_v30, %v700_v28 }
 0xeeb   : > { %v689_v22 = vpop.xlane.xlu0 %688 }
 0xeec   : > { %v690_v23 = vsel %vm674_vm12, %v689_v22, %v668_v6  ;;  %vm141_vm12 = vcmp.le.s32.totalorder %v1468_v8, %v1466_v7 }
 0xeed   : > { %v709_v26 = vmul.f32 %v693_v2, %v690_v23  ;;  %vm142_vm13 = vmand %vm141_vm12, %vm132_vm0  ;;  %vm922_vm0 = vcmp.eq.s32.totalorder %v1466_v7, 8  ;;  %vm1207_vm12 = vweird.f32 %v1492_v35 }
 0xeef   : > { %710 = vadd.xlane.f32.xlu0 %v709_v26  ;;  %v703_v29 = vpop.xlane.xlu0 %702 }
 0xef0   : > { %v704_v31 = vsel %vm696_vm14, %v703_v29, %v682_v11 }
 0xef1   : > { %v723_v33 = vmul.f32 %v715_v30, %v704_v31 }
 0xef3   : > { %720 = vadd.xlane.f32.xlu0 %v719_v32  ;;  %724 = vadd.xlane.f32.xlu1 %v723_v33 }
 0xf05   : > { %v707_v34 = vpop.xlane.xlu1 %706 }
 0xf06   : > { %v708_v36 = vsel %vm696_vm14, %v707_v34, %v686_v17 }
 0xf07   : > { %v727_v38 = vmul.f32 %v715_v30, %v708_v36 }
 0xf09   : > { %728 = vadd.xlane.f32.xlu0 %v727_v38  ;;  %v1664_v40 = vpop.xlane.xlu1 %155 }
 0xf0a   : > { %1399 = vrcp.f32 %v1664_v40 }
 0xf14   : > { %v1670_v42 = vpop.eup %1399 }
 0xf15   : > { %v161_v43 = vmul.f32 %v1670_v42, %v159_v41 }
 0xf17   : > { %162 = vst [vmem:[#allocation2 + $0x8] sm:$0xff] %v161_v43 }
 0xf1e   : > { %v736_v45 = vld [vmem:[#allocation2 + $0xf] ss:$0 sm:$0xff]  ;;  %v762_v62 = vld [vmem:[#allocation2 + $0xe] ss:$0 sm:$0xff]  ;;  %v788_v19 = vld [vmem:[#allocation2 + $0xd] ss:$0 sm:$0xff] }
 0xf1f   : > { %v737_v47 = vxor.u32 2147483648, %v736_v45  ;;  %v763_v63 = vxor.u32 2147483648, %v762_v62  ;;  %v789_v21 = vxor.u32 2147483648, %v788_v19  ;;  %v814_v43 = vld [vmem:[#allocation2 + $0xc] ss:$0 sm:$0xff] }
 0xf20   : > { %v815_v45 = vxor.u32 2147483648, %v814_v43  ;;  %v840_v62 = vld [vmem:[#allocation2 + $0xb] ss:$0 sm:$0xff]  ;;  %v866_v19 = vld [vmem:[#allocation2 + $0xa] ss:$0 sm:$0xff] }
 0xf21   : > { %v741_v49 = vmul.f32 %v737_v47, %v240_v44  ;;  %v892_v43 = vld [vmem:[#allocation2 + $0x9] ss:$0 sm:$0xff] }
 0xf23   : > { %742 = vadd.xlane.f32.xlu0 %v741_v49 }
 0xf7c   : > { %v711_v50 = vpop.xlane.xlu0 %710 }
 0xf7d   : > { %v712_v51 = vsel %vm696_vm14, %v711_v50, %v690_v23  ;;  %vm232_vm14 = vcmp.eq.s32.totalorder %v1466_v7, %v1468_v8 }
 0xf7e   : > { %v731_v52 = vmul.f32 %v715_v30, %v712_v51 }
 0xf80   : > { %v721_v53 = vpop.xlane.xlu0 %720  ;;  %732 = vadd.xlane.f32.xlu1 %v731_v52  ;;  %v725_v54 = vpop.xlane.xlu1 %724 }
 0xf81   : > { %v722_v55 = vsel %vm718_vm3, %v721_v53, %v700_v28  ;;  %v726_v56 = vsel %vm718_vm3, %v725_v54, %v704_v31 }
 0xf82   : > { %v745_v57 = vmul.f32 %v737_v47, %v722_v55  ;;  %v749_v58 = vmul.f32 %v737_v47, %v726_v56 }
 0xf84   : > { %746 = vadd.xlane.f32.xlu1 %v745_v57  ;;  %750 = vadd.xlane.f32.xlu0 %v749_v58 }
 0xf96   : > { %v729_v59 = vpop.xlane.xlu0 %728 }
 0xf97   : > { %v730_v60 = vsel %vm718_vm3, %v729_v59, %v708_v36 }
 0xf98   : > { %v753_v61 = vmul.f32 %v737_v47, %v730_v60 }
 0xf9a   : > { %754 = vadd.xlane.f32.xlu1 %v753_v61 }
 0xfb0   : > { %v743_v0 = vpop.xlane.xlu0 %742 }
 0xfb1   : > { %v744_v1 = vsel %vm740_vm4, %v743_v0, %v240_v44 }
 0xfb2   : > { %v767_v2 = vmul.f32 %v763_v63, %v744_v1 }
 0xfb4   : > { %768 = vadd.xlane.f32.xlu1 %v767_v2 }
0x100d   : > { %v733_v3 = vpop.xlane.xlu1 %732 }
0x100e   : > { %v734_v4 = vsel %vm718_vm3, %v733_v3, %v712_v51  ;;  %vm1038_vm3 = vcmp.eq.s32.totalorder %v1466_v7, 4 }
0x100f   : > { %v757_v5 = vmul.f32 %v737_v47, %v734_v4 }
0x1011   : > { %v751_v6 = vpop.xlane.xlu0 %750  ;;  %758 = vadd.xlane.f32.xlu0 %v757_v5  ;;  %v747_v9 = vpop.xlane.xlu1 %746 }
0x1012   : > { %v752_v10 = vsel %vm740_vm4, %v751_v6, %v726_v56  ;;  %v748_v11 = vsel %vm740_vm4, %v747_v9, %v722_v55 }
0x1013   : > { %v775_v12 = vmul.f32 %v763_v63, %v752_v10  ;;  %v771_v15 = vmul.f32 %v763_v63, %v748_v11 }
0x1015   : > { %776 = vadd.xlane.f32.xlu1 %v775_v12  ;;  %772 = vadd.xlane.f32.xlu0 %v771_v15 }
0x1027   : > { %v755_v16 = vpop.xlane.xlu1 %754 }
0x1028   : > { %v756_v17 = vsel %vm740_vm4, %v755_v16, %v730_v60 }
0x1029   : > { %v779_v18 = vmul.f32 %v763_v63, %v756_v17 }
0x102b   : > { %780 = vadd.xlane.f32.xlu0 %v779_v18 }
0x1041   : > { %v769_v20 = vpop.xlane.xlu1 %768 }
0x1042   : > { %v770_v22 = vsel %vm766_vm5, %v769_v20, %v744_v1  ;;  %v867_v20 = vxor.u32 2147483648, %v866_v19 }
0x1043   : > { %v793_v23 = vmul.f32 %v789_v21, %v770_v22 }
0x1045   : > { %794 = vadd.xlane.f32.xlu0 %v793_v23 }
0x109e   : > { %v759_v24 = vpop.xlane.xlu0 %758 }
0x109f   : > { %v760_v26 = vsel %vm740_vm4, %v759_v24, %v734_v4  ;;  %vm1068_vm4 = vcmp.eq.s32.totalorder %v1466_v7, 3 }
0x10a0   : > { %v783_v28 = vmul.f32 %v763_v63, %v760_v26  ;;  %v841_v63 = vxor.u32 2147483648, %v840_v62  ;;  %v137_v62 = vld [vmem:[%s1472_s20] sm:$0xff] }
0x10a2   : > { %784 = vadd.xlane.f32.xlu1 %v783_v28  ;;  %v773_v29 = vpop.xlane.xlu0 %772  ;;  %v777_v30 = vpop.xlane.xlu1 %776 }
0x10a3   : > { %v774_v31 = vsel %vm766_vm5, %v773_v29, %v748_v11  ;;  %v778_v32 = vsel %vm766_vm5, %v777_v30, %v752_v10 }
0x10a4   : > { %v797_v33 = vmul.f32 %v789_v21, %v774_v31  ;;  %v801_v34 = vmul.f32 %v789_v21, %v778_v32 }
0x10a6   : > { %798 = vadd.xlane.f32.xlu1 %v797_v33  ;;  %802 = vadd.xlane.f32.xlu0 %v801_v34 }
0x10b8   : > { %v781_v36 = vpop.xlane.xlu0 %780 }
0x10b9   : > { %v782_v38 = vsel %vm766_vm5, %v781_v36, %v756_v17 }
0x10ba   : > { %v805_v41 = vmul.f32 %v789_v21, %v782_v38 }
0x10bc   : > { %806 = vadd.xlane.f32.xlu1 %v805_v41 }
0x10d2   : > { %v795_v44 = vpop.xlane.xlu0 %794 }
0x10d3   : > { %v796_v47 = vsel %vm792_vm6, %v795_v44, %v770_v22  ;;  %v893_v44 = vxor.u32 2147483648, %v892_v43 }
0x10d4   : > { %v819_v49 = vmul.f32 %v815_v45, %v796_v47 }
0x10d6   : > { %820 = vadd.xlane.f32.xlu1 %v819_v49 }
0x112f   : > { %v785_v50 = vpop.xlane.xlu1 %784 }
0x1130   : > { %v786_v51 = vsel %vm766_vm5, %v785_v50, %v760_v26  ;;  %vm1098_vm5 = vcmp.eq.s32.totalorder %v1466_v7, 2 }
0x1131   : > { %v809_v52 = vmul.f32 %v789_v21, %v786_v51 }
0x1133   : > { %v803_v53 = vpop.xlane.xlu0 %802  ;;  %810 = vadd.xlane.f32.xlu0 %v809_v52  ;;  %v799_v54 = vpop.xlane.xlu1 %798 }
0x1134   : > { %v804_v55 = vsel %vm792_vm6, %v803_v53, %v778_v32  ;;  %v800_v56 = vsel %vm792_vm6, %v799_v54, %v774_v31 }
0x1135   : > { %v827_v57 = vmul.f32 %v815_v45, %v804_v55  ;;  %v823_v58 = vmul.f32 %v815_v45, %v800_v56 }
0x1137   : > { %828 = vadd.xlane.f32.xlu1 %v827_v57  ;;  %824 = vadd.xlane.f32.xlu0 %v823_v58 }
0x1149   : > { %v807_v59 = vpop.xlane.xlu1 %806 }
0x114a   : > { %v808_v60 = vsel %vm792_vm6, %v807_v59, %v782_v38 }
0x114b   : > { %v831_v61 = vmul.f32 %v815_v45, %v808_v60 }
0x114d   : > { %832 = vadd.xlane.f32.xlu0 %v831_v61 }
0x1163   : > { %v821_v0 = vpop.xlane.xlu1 %820 }
0x1164   : > { %v822_v1 = vsel %vm818_vm7, %v821_v0, %v796_v47 }
0x1165   : > { %v845_v2 = vmul.f32 %v841_v63, %v822_v1 }
0x1167   : > { %846 = vadd.xlane.f32.xlu0 %v845_v2  ;;  %v918_v2 = vld [vmem:[#allocation2 + $0x8] ss:$0 sm:$0xff] }
0x11c0   : > { %v811_v3 = vpop.xlane.xlu0 %810 }
0x11c1   : > { %v812_v4 = vsel %vm792_vm6, %v811_v3, %v786_v51  ;;  %vm1128_vm6 = vcmp.eq.s32.totalorder %v1466_v7, 1 }
0x11c2   : > { %v835_v5 = vmul.f32 %v815_v45, %v812_v4 }
0x11c4   : > { %836 = vadd.xlane.f32.xlu1 %v835_v5  ;;  %v825_v6 = vpop.xlane.xlu0 %824  ;;  %v829_v9 = vpop.xlane.xlu1 %828 }
0x11c5   : > { %v826_v10 = vsel %vm818_vm7, %v825_v6, %v800_v56  ;;  %v830_v11 = vsel %vm818_vm7, %v829_v9, %v804_v55  ;;  %v919_v6 = vxor.u32 2147483648, %v918_v2 }
0x11c6   : > { %v849_v12 = vmul.f32 %v841_v63, %v826_v10  ;;  %v853_v15 = vmul.f32 %v841_v63, %v830_v11 }
0x11c8   : > { %850 = vadd.xlane.f32.xlu1 %v849_v12  ;;  %854 = vadd.xlane.f32.xlu0 %v853_v15 }
0x11da   : > { %v833_v16 = vpop.xlane.xlu0 %832 }
0x11db   : > { %v834_v17 = vsel %vm818_vm7, %v833_v16, %v808_v60 }
0x11dc   : > { %v857_v18 = vmul.f32 %v841_v63, %v834_v17 }
0x11de   : > { %858 = vadd.xlane.f32.xlu1 %v857_v18 }
0x11f4   : > { %v847_v21 = vpop.xlane.xlu0 %846 }
0x11f5   : > { %v848_v22 = vsel %vm844_vm8, %v847_v21, %v822_v1 }
0x11f6   : > { %v871_v23 = vmul.f32 %v867_v20, %v848_v22 }
0x11f8   : > { %872 = vadd.xlane.f32.xlu1 %v871_v23 }
0x1251   : > { %v837_v24 = vpop.xlane.xlu1 %836 }
0x1252   : > { %v838_v26 = vsel %vm818_vm7, %v837_v24, %v812_v4  ;;  %vm1157_vm7 = vcmp.eq.s32.totalorder %v1466_v7, 0 }
0x1253   : > { %v861_v28 = vmul.f32 %v841_v63, %v838_v26  ;;  %v138_v63 = vsel %vm136_vm10, %v137_v62, 0.0  ;;  %vm1189_vm10 = vweird.f32 %v1664_v40 }
0x1255   : > { %v855_v29 = vpop.xlane.xlu0 %854  ;;  %862 = vadd.xlane.f32.xlu0 %v861_v28  ;;  %v851_v30 = vpop.xlane.xlu1 %850 }
0x1256   : > { %v856_v31 = vsel %vm844_vm8, %v855_v29, %v830_v11  ;;  %v852_v32 = vsel %vm844_vm8, %v851_v30, %v826_v10 }
0x1257   : > { %v879_v33 = vmul.f32 %v867_v20, %v856_v31  ;;  %v875_v34 = vmul.f32 %v867_v20, %v852_v32 }
0x1259   : > { %880 = vadd.xlane.f32.xlu1 %v879_v33  ;;  %876 = vadd.xlane.f32.xlu0 %v875_v34 }
0x126b   : > { %v859_v36 = vpop.xlane.xlu1 %858 }
0x126c   : > { %v860_v38 = vsel %vm844_vm8, %v859_v36, %v834_v17 }
0x126d   : > { %v883_v41 = vmul.f32 %v867_v20, %v860_v38 }
0x126f   : > { %884 = vadd.xlane.f32.xlu0 %v883_v41 }
0x1285   : > { %v873_v45 = vpop.xlane.xlu1 %872 }
0x1286   : > { %v874_v47 = vsel %vm870_vm9, %v873_v45, %v848_v22  ;;  %v143_v22 = vsel %vm142_vm13, %v137_v62, 0.0  ;;  %vm1213_vm13 = vweird.f32 %v1479_v13 }
0x1287   : > { %v897_v49 = vmul.f32 %v893_v44, %v874_v47 }
0x1289   : > { %898 = vadd.xlane.f32.xlu0 %v897_v49 }
0x12e2   : > { %v863_v50 = vpop.xlane.xlu0 %862 }
0x12e3   : > { %v864_v51 = vsel %vm844_vm8, %v863_v50, %v838_v26  ;;  %v233_v26 = vsel %vm232_vm14, -1.0, %v1428_v39 }
0x12e4   : > { %v887_v52 = vmul.f32 %v867_v20, %v864_v51 }
0x12e6   : > { %888 = vadd.xlane.f32.xlu1 %v887_v52  ;;  %v877_v53 = vpop.xlane.xlu0 %876  ;;  %v881_v54 = vpop.xlane.xlu1 %880 }
0x12e7   : > { %v878_v55 = vsel %vm870_vm9, %v877_v53, %v852_v32  ;;  %v882_v56 = vsel %vm870_vm9, %v881_v54, %v856_v31 }
0x12e8   : > { %v901_v57 = vmul.f32 %v893_v44, %v878_v55  ;;  %v905_v58 = vmul.f32 %v893_v44, %v882_v56 }
0x12ea   : > { %902 = vadd.xlane.f32.xlu1 %v901_v57  ;;  %906 = vadd.xlane.f32.xlu0 %v905_v58 }
0x12fc   : > { %v885_v59 = vpop.xlane.xlu0 %884 }
0x12fd   : > { %v886_v60 = vsel %vm870_vm9, %v885_v59, %v860_v38 }
0x12fe   : > { %v909_v61 = vmul.f32 %v893_v44, %v886_v60 }
0x1300   : > { %910 = vadd.xlane.f32.xlu1 %v909_v61 }
0x1304   : > { %139 = vadd.xlane.f32.xlu1 %v138_v63 }
0x1316   : > { %v899_v0 = vpop.xlane.xlu0 %898 }
0x1317   : > { %v900_v5 = vsel %vm896_vm11, %v899_v0, %v874_v47 }
0x1318   : > { %v923_v12 = vmul.f32 %v919_v6, %v900_v5 }
0x1373   : > { %v889_v1 = vpop.xlane.xlu1 %888 }
0x1374   : > { %v890_v3 = vsel %vm870_vm9, %v889_v1, %v864_v51  ;;  %vm1195_vm9 = vweird.f32 %v1580_v25 }
0x1375   : > { %v913_v4 = vmul.f32 %v893_v44, %v890_v3 }
0x1377   : > { %v907_v9 = vpop.xlane.xlu0 %906  ;;  %914 = vadd.xlane.f32.xlu0 %v913_v4  ;;  %v903_v10 = vpop.xlane.xlu1 %902 }
0x1378   : > { %v904_v11 = vsel %vm896_vm11, %v903_v10, %v878_v55  ;;  %v908_v16 = vsel %vm896_vm11, %v907_v9, %v882_v56 }
0x1379   : > { %v927_v15 = vmul.f32 %v919_v6, %v904_v11  ;;  %v931_v17 = vmul.f32 %v919_v6, %v908_v16 }
0x137b   : > { %924 = vadd.xlane.f32.xlu0 %v923_v12  ;;  %928 = vadd.xlane.f32.xlu1 %v927_v15 }
0x137f   : > { %932 = vadd.xlane.f32.xlu0 %v931_v17 }
0x138d   : > { %v911_v18 = vpop.xlane.xlu1 %910 }
0x138e   : > { %v912_v19 = vsel %vm896_vm11, %v911_v18, %v886_v60 }
0x138f   : > { %v935_v20 = vmul.f32 %v919_v6, %v912_v19 }
0x1391   : > { %936 = vadd.xlane.f32.xlu1 %v935_v20  ;;  %v1764_v21 = vpop.xlane.xlu1 %139 }
0x1392   : > { %1401 = vrcp.f32 %v1764_v21  ;;  %vm1184_vm8 = vweird.f32 %v1764_v21 }
0x139c   : > { %v1771_v23 = vpop.eup %1401 }
0x139d   : > { %v145_v24 = vmul.f32 %v1771_v23, %v143_v22 }
0x139f   : > { %146 = vst [vmem:[#allocation2] sm:$0xff] %v145_v24 }
0x13a6   : > { %v944_v28 = vld [vmem:[#allocation2 + $0x7] ss:$0 sm:$0xff]  ;;  %v974_v51 = vld [vmem:[#allocation2 + $0x6] ss:$0 sm:$0xff]  ;;  %v1004_v9 = vld [vmem:[#allocation2 + $0x5] ss:$0 sm:$0xff] }
0x13a7   : > { %v945_v29 = vxor.u32 2147483648, %v944_v28  ;;  %v975_v52 = vxor.u32 2147483648, %v974_v51  ;;  %v1005_v10 = vxor.u32 2147483648, %v1004_v9 }
0x13a9   : > { %v949_v30 = vmul.f32 %v945_v29, %v233_v26 }
0x13ab   : > { %950 = vadd.xlane.f32.xlu1 %v949_v30 }
0x1404   : > { %v915_v31 = vpop.xlane.xlu0 %914 }
0x1405   : > { %v916_v32 = vsel %vm896_vm11, %v915_v31, %v890_v3  ;;  %vm1201_vm11 = vweird.f32 %v1516_v46 }
0x1406   : > { %v939_v33 = vmul.f32 %v919_v6, %v916_v32 }
0x1408   : > { %940 = vadd.xlane.f32.xlu0 %v939_v33  ;;  %v925_v34 = vpop.xlane.xlu0 %924  ;;  %v929_v36 = vpop.xlane.xlu1 %928 }
0x1409   : > { %v926_v38 = vsel %vm922_vm0, %v925_v34, %v900_v5  ;;  %v930_v8 = vsel %vm922_vm0, %v929_v36, %v904_v11  ;;  %v1034_v36 = vld [vmem:[#allocation2 + $0x4] ss:$0 sm:$0xff] }
0x140a   : > { %v953_v39 = vmul.f32 %v945_v29, %v926_v38  ;;  %v957_v41 = vmul.f32 %v945_v29, %v930_v8 }
0x140c   : > { %v933_v43 = vpop.xlane.xlu0 %932  ;;  %954 = vadd.xlane.f32.xlu0 %v953_v39  ;;  %958 = vadd.xlane.f32.xlu1 %v957_v41 }
0x140d   : > { %v934_v44 = vsel %vm922_vm0, %v933_v43, %v908_v16 }
0x140e   : > { %v961_v45 = vmul.f32 %v945_v29, %v934_v44 }
0x1410   : > { %962 = vadd.xlane.f32.xlu0 %v961_v45 }
0x141e   : > { %v937_v47 = vpop.xlane.xlu1 %936 }
0x141f   : > { %v938_v49 = vsel %vm922_vm0, %v937_v47, %v912_v19 }
0x1420   : > { %v965_v50 = vmul.f32 %v945_v29, %v938_v49 }
0x1422   : > { %966 = vadd.xlane.f32.xlu1 %v965_v50 }
0x1438   : > { %v951_v53 = vpop.xlane.xlu1 %950 }
0x1439   : > { %v952_v54 = vsel %vm948_vm15, %v951_v53, %v233_v26 }
0x143a   : > { %v979_v55 = vmul.f32 %v975_v52, %v952_v54 }
0x143c   : > { %980 = vadd.xlane.f32.xlu1 %v979_v55 }
0x1495   : > { %v941_v56 = vpop.xlane.xlu0 %940 }
0x1496   : > { %v942_v57 = vsel %vm922_vm0, %v941_v56, %v916_v32 }
0x1497   : > { %v969_v58 = vmul.f32 %v945_v29, %v942_v57 }
0x1499   : > { %970 = vadd.xlane.f32.xlu0 %v969_v58  ;;  %v955_v59 = vpop.xlane.xlu0 %954  ;;  %v959_v60 = vpop.xlane.xlu1 %958 }
0x149a   : > { %v956_v61 = vsel %vm948_vm15, %v955_v59, %v926_v38  ;;  %v960_v62 = vsel %vm948_vm15, %v959_v60, %v930_v8  ;;  %v1035_v38 = vxor.u32 2147483648, %v1034_v36  ;;  %v1064_v60 = vld [vmem:[#allocation2 + $0x3] ss:$0 sm:$0xff] }
0x149b   : > { %v983_v63 = vmul.f32 %v975_v52, %v956_v61  ;;  %v987_v0 = vmul.f32 %v975_v52, %v960_v62 }
0x149d   : > { %984 = vadd.xlane.f32.xlu0 %v983_v63  ;;  %v963_v1 = vpop.xlane.xlu0 %962  ;;  %988 = vadd.xlane.f32.xlu1 %v987_v0 }
0x149e   : > { %v964_v2 = vsel %vm948_vm15, %v963_v1, %v934_v44 }
0x149f   : > { %v991_v3 = vmul.f32 %v975_v52, %v964_v2 }
0x14a1   : > { %992 = vadd.xlane.f32.xlu0 %v991_v3 }
0x14af   : > { %v967_v4 = vpop.xlane.xlu1 %966 }
0x14b0   : > { %v968_v5 = vsel %vm948_vm15, %v967_v4, %v938_v49 }
0x14b1   : > { %v995_v6 = vmul.f32 %v975_v52, %v968_v5 }
0x14b3   : > { %996 = vadd.xlane.f32.xlu1 %v995_v6 }
0x14c9   : > { %v981_v11 = vpop.xlane.xlu1 %980 }
0x14ca   : > { %v982_v12 = vsel %vm978_vm1, %v981_v11, %v952_v54 }
0x14cb   : > { %v1009_v15 = vmul.f32 %v1005_v10, %v982_v12 }
0x14cd   : > { %1010 = vadd.xlane.f32.xlu1 %v1009_v15 }
0x1526   : > { %v971_v16 = vpop.xlane.xlu0 %970 }
0x1527   : > { %v972_v17 = vsel %vm948_vm15, %v971_v16, %v942_v57 }
0x1528   : > { %v999_v18 = vmul.f32 %v975_v52, %v972_v17 }
0x152a   : > { %1000 = vadd.xlane.f32.xlu0 %v999_v18  ;;  %v985_v19 = vpop.xlane.xlu0 %984  ;;  %v989_v20 = vpop.xlane.xlu1 %988 }
0x152b   : > { %v986_v22 = vsel %vm978_vm1, %v985_v19, %v956_v61  ;;  %v990_v24 = vsel %vm978_vm1, %v989_v20, %v960_v62  ;;  %v1065_v61 = vxor.u32 2147483648, %v1064_v60  ;;  %v1094_v20 = vld [vmem:[#allocation2 + $0x2] ss:$0 sm:$0xff] }
0x152c   : > { %v1013_v26 = vmul.f32 %v1005_v10, %v986_v22  ;;  %v1017_v28 = vmul.f32 %v1005_v10, %v990_v24 }
0x152e   : > { %1014 = vadd.xlane.f32.xlu0 %v1013_v26  ;;  %v993_v29 = vpop.xlane.xlu0 %992  ;;  %1018 = vadd.xlane.f32.xlu1 %v1017_v28 }
0x152f   : > { %v994_v30 = vsel %vm978_vm1, %v993_v29, %v964_v2 }
0x1530   : > { %v1021_v31 = vmul.f32 %v1005_v10, %v994_v30 }
0x1532   : > { %1022 = vadd.xlane.f32.xlu0 %v1021_v31 }
0x1540   : > { %v997_v32 = vpop.xlane.xlu1 %996 }
0x1541   : > { %v998_v33 = vsel %vm978_vm1, %v997_v32, %v968_v5 }
0x1542   : > { %v1025_v34 = vmul.f32 %v1005_v10, %v998_v33 }
0x1544   : > { %1026 = vadd.xlane.f32.xlu1 %v1025_v34 }
0x155a   : > { %v1011_v8 = vpop.xlane.xlu1 %1010 }
0x155b   : > { %v1012_v39 = vsel %vm1008_vm2, %v1011_v8, %v982_v12 }
0x155c   : > { %v1039_v41 = vmul.f32 %v1035_v38, %v1012_v39 }
0x155e   : > { %1040 = vadd.xlane.f32.xlu1 %v1039_v41 }
0x15b7   : > { %v1001_v43 = vpop.xlane.xlu0 %1000 }
0x15b8   : > { %v1002_v44 = vsel %vm978_vm1, %v1001_v43, %v972_v17 }
0x15b9   : > { %v1029_v45 = vmul.f32 %v1005_v10, %v1002_v44 }
0x15bb   : > { %1030 = vadd.xlane.f32.xlu0 %v1029_v45  ;;  %v1015_v47 = vpop.xlane.xlu0 %1014  ;;  %v1019_v49 = vpop.xlane.xlu1 %1018 }
0x15bc   : > { %v1016_v50 = vsel %vm1008_vm2, %v1015_v47, %v986_v22  ;;  %v1020_v51 = vsel %vm1008_vm2, %v1019_v49, %v990_v24  ;;  %v1095_v22 = vxor.u32 2147483648, %v1094_v20  ;;  %v1124_v49 = vld [vmem:[#allocation2 + $0x1] ss:$0 sm:$0xff] }
0x15bd   : > { %v1043_v52 = vmul.f32 %v1035_v38, %v1016_v50  ;;  %v1047_v53 = vmul.f32 %v1035_v38, %v1020_v51 }
0x15bf   : > { %1044 = vadd.xlane.f32.xlu0 %v1043_v52  ;;  %v1023_v54 = vpop.xlane.xlu0 %1022  ;;  %1048 = vadd.xlane.f32.xlu1 %v1047_v53 }
0x15c0   : > { %v1024_v55 = vsel %vm1008_vm2, %v1023_v54, %v994_v30 }
0x15c1   : > { %v1051_v56 = vmul.f32 %v1035_v38, %v1024_v55 }
0x15c3   : > { %1052 = vadd.xlane.f32.xlu0 %v1051_v56 }
0x15d1   : > { %v1027_v57 = vpop.xlane.xlu1 %1026 }
0x15d2   : > { %v1028_v58 = vsel %vm1008_vm2, %v1027_v57, %v998_v33 }
0x15d3   : > { %v1055_v59 = vmul.f32 %v1035_v38, %v1028_v58 }
0x15d5   : > { %1056 = vadd.xlane.f32.xlu1 %v1055_v59 }
0x15eb   : > { %v1041_v62 = vpop.xlane.xlu1 %1040 }
0x15ec   : > { %v1042_v63 = vsel %vm1038_vm3, %v1041_v62, %v1012_v39 }
0x15ed   : > { %v1069_v0 = vmul.f32 %v1065_v61, %v1042_v63 }
0x15ef   : > { %1070 = vadd.xlane.f32.xlu1 %v1069_v0 }
0x1648   : > { %v1031_v1 = vpop.xlane.xlu0 %1030 }
0x1649   : > { %v1032_v2 = vsel %vm1008_vm2, %v1031_v1, %v1002_v44 }
0x164a   : > { %v1059_v3 = vmul.f32 %v1035_v38, %v1032_v2 }
0x164c   : > { %1060 = vadd.xlane.f32.xlu0 %v1059_v3  ;;  %v1045_v4 = vpop.xlane.xlu0 %1044  ;;  %v1049_v5 = vpop.xlane.xlu1 %1048 }
0x164d   : > { %v1046_v6 = vsel %vm1038_vm3, %v1045_v4, %v1016_v50  ;;  %v1050_v9 = vsel %vm1038_vm3, %v1049_v5, %v1020_v51  ;;  %v1125_v50 = vxor.u32 2147483648, %v1124_v49  ;;  %v1153_v5 = vld [vmem:[#allocation2] ss:$0 sm:$0xff] }
0x164e   : > { %v1073_v10 = vmul.f32 %v1065_v61, %v1046_v6  ;;  %v1077_v11 = vmul.f32 %v1065_v61, %v1050_v9 }
0x1650   : > { %1074 = vadd.xlane.f32.xlu0 %v1073_v10  ;;  %v1053_v12 = vpop.xlane.xlu0 %1052  ;;  %1078 = vadd.xlane.f32.xlu1 %v1077_v11 }
0x1651   : > { %v1054_v15 = vsel %vm1038_vm3, %v1053_v12, %v1024_v55 }
0x1652   : > { %v1081_v16 = vmul.f32 %v1065_v61, %v1054_v15 }
0x1654   : > { %1082 = vadd.xlane.f32.xlu0 %v1081_v16 }
0x1662   : > { %v1057_v17 = vpop.xlane.xlu1 %1056 }
0x1663   : > { %v1058_v18 = vsel %vm1038_vm3, %v1057_v17, %v1028_v58 }
0x1664   : > { %v1085_v19 = vmul.f32 %v1065_v61, %v1058_v18 }
0x1666   : > { %1086 = vadd.xlane.f32.xlu1 %v1085_v19 }
0x167c   : > { %v1071_v24 = vpop.xlane.xlu1 %1070 }
0x167d   : > { %v1072_v26 = vsel %vm1068_vm4, %v1071_v24, %v1042_v63 }
0x167e   : > { %v1099_v28 = vmul.f32 %v1095_v22, %v1072_v26 }
0x1680   : > { %1100 = vadd.xlane.f32.xlu1 %v1099_v28 }
0x16d9   : > { %v1061_v29 = vpop.xlane.xlu0 %1060 }
0x16da   : > { %v1062_v30 = vsel %vm1038_vm3, %v1061_v29, %v1032_v2 }
0x16db   : > { %v1089_v31 = vmul.f32 %v1065_v61, %v1062_v30 }
0x16dd   : > { %1090 = vadd.xlane.f32.xlu0 %v1089_v31  ;;  %v1075_v32 = vpop.xlane.xlu0 %1074  ;;  %v1079_v33 = vpop.xlane.xlu1 %1078 }
0x16de   : > { %v1076_v34 = vsel %vm1068_vm4, %v1075_v32, %v1046_v6  ;;  %v1080_v36 = vsel %vm1068_vm4, %v1079_v33, %v1050_v9  ;;  %v1154_v6 = vxor.u32 2147483648, %v1153_v5 }
0x16df   : > { %v1103_v38 = vmul.f32 %v1095_v22, %v1076_v34  ;;  %v1107_v8 = vmul.f32 %v1095_v22, %v1080_v36 }
0x16e1   : > { %1104 = vadd.xlane.f32.xlu0 %v1103_v38  ;;  %v1083_v39 = vpop.xlane.xlu0 %1082  ;;  %1108 = vadd.xlane.f32.xlu1 %v1107_v8 }
0x16e2   : > { %v1084_v41 = vsel %vm1068_vm4, %v1083_v39, %v1054_v15 }
0x16e3   : > { %v1111_v43 = vmul.f32 %v1095_v22, %v1084_v41 }
0x16e5   : > { %1112 = vadd.xlane.f32.xlu0 %v1111_v43 }
0x16f3   : > { %v1087_v44 = vpop.xlane.xlu1 %1086 }
0x16f4   : > { %v1088_v45 = vsel %vm1068_vm4, %v1087_v44, %v1058_v18 }
0x16f5   : > { %v1115_v47 = vmul.f32 %v1095_v22, %v1088_v45 }
0x16f7   : > { %1116 = vadd.xlane.f32.xlu1 %v1115_v47 }
0x170d   : > { %v1101_v51 = vpop.xlane.xlu1 %1100 }
0x170e   : > { %v1102_v52 = vsel %vm1098_vm5, %v1101_v51, %v1072_v26 }
0x170f   : > { %v1129_v53 = vmul.f32 %v1125_v50, %v1102_v52 }
0x1711   : > { %1130 = vadd.xlane.f32.xlu1 %v1129_v53 }
0x176a   : > { %v1091_v54 = vpop.xlane.xlu0 %1090 }
0x176b   : > { %v1092_v55 = vsel %vm1068_vm4, %v1091_v54, %v1062_v30 }
0x176c   : > { %v1119_v56 = vmul.f32 %v1095_v22, %v1092_v55 }
0x176e   : > { %1120 = vadd.xlane.f32.xlu0 %v1119_v56  ;;  %v1105_v57 = vpop.xlane.xlu0 %1104  ;;  %v1109_v58 = vpop.xlane.xlu1 %1108 }
0x176f   : > { %v1106_v59 = vsel %vm1098_vm5, %v1105_v57, %v1076_v34  ;;  %v1110_v60 = vsel %vm1098_vm5, %v1109_v58, %v1080_v36 }
0x1770   : > { %v1133_v61 = vmul.f32 %v1125_v50, %v1106_v59  ;;  %v1137_v62 = vmul.f32 %v1125_v50, %v1110_v60 }
0x1772   : > { %1134 = vadd.xlane.f32.xlu0 %v1133_v61  ;;  %v1113_v63 = vpop.xlane.xlu0 %1112  ;;  %1138 = vadd.xlane.f32.xlu1 %v1137_v62 }
0x1773   : > { %v1114_v0 = vsel %vm1098_vm5, %v1113_v63, %v1084_v41 }
0x1774   : > { %v1141_v1 = vmul.f32 %v1125_v50, %v1114_v0 }
0x1776   : > { %1142 = vadd.xlane.f32.xlu0 %v1141_v1 }
0x1784   : > { %v1117_v2 = vpop.xlane.xlu1 %1116 }
0x1785   : > { %v1118_v3 = vsel %vm1098_vm5, %v1117_v2, %v1088_v45 }
0x1786   : > { %v1145_v4 = vmul.f32 %v1125_v50, %v1118_v3 }
0x1788   : > { %1146 = vadd.xlane.f32.xlu1 %v1145_v4 }
0x179e   : > { %v1131_v9 = vpop.xlane.xlu1 %1130 }
0x179f   : > { %v1132_v10 = vsel %vm1128_vm6, %v1131_v9, %v1102_v52 }
0x17a0   : > { %v1158_v11 = vmul.f32 %v1154_v6, %v1132_v10 }
0x17a2   : > { %1159 = vadd.xlane.f32.xlu1 %v1158_v11 }
0x17fb   : > { %v1121_v12 = vpop.xlane.xlu0 %1120 }
0x17fc   : > { %v1122_v15 = vsel %vm1098_vm5, %v1121_v12, %v1092_v55 }
0x17fd   : > { %v1149_v16 = vmul.f32 %v1125_v50, %v1122_v15 }
0x17ff   : > { %1150 = vadd.xlane.f32.xlu0 %v1149_v16  ;;  %v1135_v17 = vpop.xlane.xlu0 %1134  ;;  %v1139_v18 = vpop.xlane.xlu1 %1138 }
0x1800   : > { %v1136_v19 = vsel %vm1128_vm6, %v1135_v17, %v1106_v59  ;;  %v1140_v20 = vsel %vm1128_vm6, %v1139_v18, %v1110_v60 }
0x1801   : > { %v1162_v22 = vmul.f32 %v1154_v6, %v1136_v19  ;;  %v1166_v24 = vmul.f32 %v1154_v6, %v1140_v20 }
0x1803   : > { %1163 = vadd.xlane.f32.xlu0 %v1162_v22  ;;  %v1143_v26 = vpop.xlane.xlu0 %1142  ;;  %1167 = vadd.xlane.f32.xlu1 %v1166_v24 }
0x1804   : > { %v1144_v28 = vsel %vm1128_vm6, %v1143_v26, %v1114_v0 }
0x1805   : > { %v1170_v29 = vmul.f32 %v1154_v6, %v1144_v28 }
0x1807   : > { %1171 = vadd.xlane.f32.xlu0 %v1170_v29 }
0x1815   : > { %v1147_v30 = vpop.xlane.xlu1 %1146 }
0x1816   : > { %v1148_v31 = vsel %vm1128_vm6, %v1147_v30, %v1118_v3 }
0x1817   : > { %v1174_v32 = vmul.f32 %v1154_v6, %v1148_v31 }
0x1819   : > { %1175 = vadd.xlane.f32.xlu1 %v1174_v32 }
0x182f   : > { %v1160_v33 = vpop.xlane.xlu1 %1159 }
0x1830   : > { %v1161_v34 = vsel %vm1157_vm7, %v1160_v33, %v1132_v10 }
0x1831   : > { %v1183_v36 = vmul.f32 %v1771_v23, %v1161_v34 }
0x1833   : > { %v1185_v38 = vsel %vm1184_vm8, %v1161_v34, %v1183_v36 }
0x1834   : > { %1266 = vst [vmem:[%s1886_s24] sm:$0xff] %v1185_v38 }
0x188c   : > { %v1151_v8 = vpop.xlane.xlu0 %1150 }
0x188d   : > { %v1152_v39 = vsel %vm1128_vm6, %v1151_v8, %v1122_v15 }
0x188e   : > { %v1178_v41 = vmul.f32 %v1154_v6, %v1152_v39 }
0x1890   : > { %1179 = vadd.xlane.f32.xlu0 %v1178_v41  ;;  %v1164_v43 = vpop.xlane.xlu0 %1163  ;;  %v1168_v44 = vpop.xlane.xlu1 %1167 }
0x1891   : > { %v1165_v45 = vsel %vm1157_vm7, %v1164_v43, %v1136_v19  ;;  %v1169_v23 = vsel %vm1157_vm7, %v1168_v44, %v1140_v20 }
0x1892   : > { %v1188_v21 = vmul.f32 %v1670_v42, %v1165_v45  ;;  %v1194_v47 = vmul.f32 %v1586_v27, %v1169_v23 }
0x1894   : > { %v1190_v49 = vsel %vm1189_vm10, %v1165_v45, %v1188_v21  ;;  %v1196_v50 = vsel %vm1195_vm9, %v1169_v23, %v1194_v47  ;;  %v1172_v51 = vpop.xlane.xlu0 %1171 }
0x1895   : > { %1268 = vst [vmem:[%s1886_s24 + $0x8] sm:$0xff] %v1190_v49  ;;  %1270 = vst [vmem:[%s1886_s24 + $0x10] sm:$0xff] %v1196_v50  ;;  %v1173_v52 = vsel %vm1157_vm7, %v1172_v51, %v1144_v28 }
0x1896   : > { %v1200_v53 = vmul.f32 %v1522_v48, %v1173_v52 }
0x1898   : > { %v1202_v42 = vsel %vm1201_vm11, %v1173_v52, %v1200_v53 }
0x1899   : > { %1272 = vst [vmem:[%s1886_s24 + $0x18] sm:$0xff] %v1202_v42 }
0x18a6   : > { %v1176_v27 = vpop.xlane.xlu1 %1175 }
0x18a7   : > { %v1177_v25 = vsel %vm1157_vm7, %v1176_v27, %v1148_v31 }
0x18a8   : > { %v1206_v40 = vmul.f32 %v1498_v37, %v1177_v25 }
0x18aa   : > { %v1208_v54 = vsel %vm1207_vm12, %v1177_v25, %v1206_v40 }
0x18ab   : > { %1274 = vst [vmem:[%s1886_s24 + $0x20] sm:$0xff] %v1208_v54 }
0x191d   : > { %v1180_v55 = vpop.xlane.xlu0 %1179 }
0x191e   : > { %v1181_v56 = vsel %vm1157_vm7, %v1180_v55, %v1152_v39 }
0x191f   : > { %v1212_v48 = vmul.f32 %v1482_v14, %v1181_v56 }
0x1921   : > { %v1214_v46 = vsel %vm1213_vm13, %v1181_v56, %v1212_v48 }
0x1922   : > { %1276 = vst [vmem:[%s1886_s24 + $0x28] sm:$0xff] %v1214_v46 }
0x1923 PF: > { %s7_s8 = sadd.s32 1, %s1425_s8   ;;  %s1929_s6 = smov %s1421_s7 }
0x1924   : > { %p4_p5 = scmp.ge.s32.totalorder %s7_s8, 4   ;;  %s1930_s7 = smov %s1932_s10 }
0x1926   :  { %6 = sbr.rel (!%p4_p5) target bundleno = 2 (0x2), region = 175 }

// kernel: opt_layer_forward.1
= control target key start
LH: loop header
LB: loop body
LE: loop exit
PB: predicated region body
PF: predicated region fallthrough
CT: control target
= control target key end

     0   :  { %v256_v2 = vmov 0.0|0.0   ;;  %vm257_vm0 = vmmov 0   ;;  %v258_v4 = vmov 0.0   ;;  %v259_v6 = vmov 0   ;;  %s375_s0 = inlined_call_operand.vmem [shape: f32[2,8], index: 0, kind: input, shape index: {}]   ;;  %s376_s1 = inlined_call_operand.vmem [shape: f32[2,8], index: 1, kind: input, shape index: {}]   ;;  %s377_s2 = inlined_call_operand.vmem [shape: f32[2,16], index: 2, kind: input, shape index: {}]   ;;  %s378_s3 = inlined_call_operand.vmem [shape: f32[2,4,1], index: 3, kind: input, shape index: {}]   ;;  %s379_s4 = inlined_call_operand.vmem [shape: f32[16,8], index: 4, kind: input, shape index: {}]   ;;  %s380_s5 = inlined_call_operand.vmem [shape: f32[2,4,8], index: 5, kind: input, shape index: {}]   ;;  %s381_s6 = inlined_call_operand.hbm [shape: f32[2,8], index: 6, kind: output, shape index: {}]  }
   0x1   :  { %v29_v0 = vld [vmem:[%s379_s4] sm:$0xff]  ;;  %v30_v1 = vld [vmem:[%s379_s4 + $0x8] sm:$0xff]  ;;  %222 = vmatprep.subr.bf16.mxu0 %v256_v2  ;;  %219 = vmatprep.mubr.msk.f32.mxu0 %vm257_vm0, %v258_v4  ;;  %vm31_vm1 = vcmask 130048  }
   0x2   :  { %v223_v3 = vpack.c.bf16 %v30_v1, %v29_v0  ;;  %v109_v5 = vld [vmem:[%s378_s3 + $0x4] sm:$0x1]  ;;  %230 = vset.pattern.permute.xlu0 %v259_v6  ;;  %231 = vset.pattern.permute.xlu1 %v259_v6  ;;  %v132_v7 = vld [vmem:[%s378_s3 + $0x5] sm:$0x1]  ;;  %v28_v8 = vld [vmem:[%s377_s2] sm:$0x3] }
   0x3   :  { %117 = vperm.xlu0 %230, %v109_v5   ;;  %140 = vperm.xlu1 %231, %v132_v7   ;;  %v108_v9 = vld [vmem:[%s378_s3] sm:$0x1] }
   0x4   :  { %224 = vmatpush3.bf16.msra.mxu0 %v223_v3 }
   0x5   :  { %11 = vsyncpa [#allocation3], 0  ;;  %v131_v10 = vld [vmem:[%s378_s3 + $0x1] sm:$0x1]  ;;  %v154_v11 = vld [vmem:[%s378_s3 + $0x6] sm:$0x1] }
   0x6   :  { %v153_v12 = vld [vmem:[%s378_s3 + $0x2] sm:$0x1]  ;;  %v176_v13 = vld [vmem:[%s378_s3 + $0x7] sm:$0x1]  ;;  %v175_v14 = vld [vmem:[%s378_s3 + $0x3] sm:$0x1] }
   0x7   :  { %220 = vmatmul.mubr.msk.f32.vlgmr.msra.gmra.mrb[0].mxu0 %vm31_vm1, %v28_v8  ;;  %112 = vperm.xlu0 %230, %v108_v9   ;;  %v25_v19 = vld [vmem:[%s376_s1] sm:$0x3]  ;;  %v107_v20 = vld [vmem:[%s380_s5 + $0x4] sm:$0x1]  ;;  %v130_v22 = vld [vmem:[%s380_s5 + $0x5] sm:$0x1] }
   0x8   :  { %135 = vperm.xlu1 %231, %v131_v10   ;;  %v26_v23 = vmul.f32 0.99998, %v25_v19  ;;  %v24_v25 = vld [vmem:[%s375_s0] sm:$0x3]  ;;  %v152_v27 = vld [vmem:[%s380_s5 + $0x6] sm:$0x1] }
   0x9   :  { %v106_v26 = vld [vmem:[%s380_s5] sm:$0x1]  ;;  %v129_v30 = vld [vmem:[%s380_s5 + $0x1] sm:$0x1]  ;;  %v174_v31 = vld [vmem:[%s380_s5 + $0x7] sm:$0x1] }
   0xa   :  { %v27_v33 = vadd.f32 %v26_v23, %v24_v25  ;;  %vm125_vm2 = vcmask 1041409   ;;  %v151_v37 = vld [vmem:[%s380_s5 + $0x2] sm:$0x1]  ;;  %v173_v42 = vld [vmem:[%s380_s5 + $0x3] sm:$0x1]  ;;  %s260_s9 = smov [#allocation2]  }
   0xb   :  { %162 = vperm.xlu0 %230, %v154_v11   ;;  %s203_s10 = sshll.u32 %s260_s9, 4  ;;  %vm195_vm3 = vcmask 58368   ;;  %s204_s10 = int_to_ptr.vmem [resolvable:$true] %s203_s10 }
   0xc   :  { %157 = vperm.xlu1 %231, %v153_v12   ;;  %s232_s5 = scalar_lea.vmem %s204_s10, 32  ;;  %p237_p1 = scmp.lt.s32.totalorder %s204_s10, %s204_s10 }
   0xd   :  { %p233_p0 = scmp.ne.s32.totalorder %s204_s10, %s232_s5  ;;  %p238_p2 = scmp.lt.s32.totalorder %s232_s5, %s232_s5 }
   0xf   :  { %184 = vperm.xlu0 %230, %v176_v13   ;;  %p239_p3 = por %p238_p2, %p237_p1 }
  0x10   :  { %179 = vperm.xlu1 %231, %v175_v14  }
  0x11   :  { %p240_p4 = pnand %p239_p3, %p233_p0 }
  0x82   :  { %v118_v15 = vpop.permute.xlu0 %117  ;;  %v141_v16 = vpop.permute.xlu1 %140 }
  0x83   :  { %v121_v24 = vmul.f32 %v118_v15, %v107_v20  ;;  %v144_v29 = vmul.f32 %v141_v16, %v130_v22 }
  0x85   :  { %v124_v34 = vrot.slane %v121_v24, 7  ;;  %v147_v38 = vrot.slane %v144_v29, 7 }
  0x86   :  { %v113_v17 = vpop.permute.xlu0 %112 }
  0x87   :  { %v136_v18 = vpop.permute.xlu1 %135  ;;  %v120_v35 = vmul.f32 %v113_v17, %v106_v26 }
  0x88   :  { %v143_v39 = vmul.f32 %v136_v18, %v129_v30 }
  0x89   :  { %v126_v48 = vsel %vm125_vm2, %v124_v34, %v120_v35 }
  0x8a   :  { %v163_v21 = vpop.permute.xlu0 %162  ;;  %v148_v50 = vsel %vm125_vm2, %v147_v38, %v143_v39 }
  0x8b   :  { %v158_v28 = vpop.permute.xlu1 %157  ;;  %v166_v36 = vmul.f32 %v163_v21, %v152_v27 }
  0x8c   :  { %v165_v47 = vmul.f32 %v158_v28, %v151_v37 }
  0x8d   :  { %v169_v46 = vrot.slane %v166_v36, 7 }
  0x8e   :  { %v185_v32 = vpop.permute.xlu0 %184 }
  0x8f   :  { %v188_v40 = vmul.f32 %v185_v32, %v174_v31  ;;  %v180_v43 = vpop.permute.xlu1 %179  ;;  %v170_v54 = vsel %vm125_vm2, %v169_v46, %v165_v47 }
  0x90   :  { %v187_v52 = vmul.f32 %v180_v43, %v173_v42 }
  0x91   :  { %v191_v51 = vrot.slane %v188_v40, 7 }
  0x93   :  { %v192_v56 = vsel %vm125_vm2, %v191_v51, %v187_v52 }
  0xda   :  { %v101_v41 = vpop.f32.mrb[0].mxu0 }
  0xdb   :  { %v105_v44 = vsub.f32 %v27_v33, %v101_v41  ;;  %v221_v45 = vpop.f32.mrb[1].mxu0 }
  0xdd   :  { %v128_v49 = vsub.f32 %v105_v44, %v126_v48 }
  0xdf   :  { %v150_v53 = vsub.f32 %v128_v49, %v148_v50 }
  0xe1   :  { %v172_v55 = vsub.f32 %v150_v53, %v170_v54 }
  0xe3   :  { %v194_v57 = vsub.f32 %v172_v55, %v192_v56 }
  0xe5   :  { %196 = vst.msk [vmem:[#allocation2] sm:$0x3] %vm195_vm3, %v194_v57 }
  0xe6   :  { %243 = shalt.err (!%p240_p4)
}
  0xe7   :  { %s244_s12 = scalar_lea.hbm %s381_s6, 32 }
  0xe8   :  { %p245_p5 = scmp.ne.s32.totalorder %s381_s6, %s244_s12  ;;  %p248_p6 = scmp.lt.u32.totalorder %s244_s12, %s381_s6 }
  0xea   :  { %p250_p7 = pnand %p248_p6, %p245_p5 }
  0xec   :  { %253 = shalt.err (!%p250_p7)
}
  0xed   :  { %206 = dma.vmem_to_hbm [thread:$0]  %s204_s10, 32, %s381_s6, [#allocation3]  }
  0xee   :  { %254 = dma.done.wait [#allocation3], 32  }
  0xef   :  { %255 = vsyncadd [#allocation3], 4294967264 }
  0xf0   :  { %210 = vsyncpa [#allocation3], 1 }

</bundles_post_ra>
